<compile_context>
chip_gen: v7x
topology: tpu7x:2x2x1
jax: 0.10.0
libtpu: 0.0.40
codegen_flags: <defaults>
</compile_context>

<pallas_src>
import jax
import jax.numpy as jnp
from jax.experimental import pallas as pl
from jax.experimental.pallas import tpu as pltpu


# ----------------------------------------------------------------------------
# Kernel
# ----------------------------------------------------------------------------
def attention_kernel(enc_ref, dec_ref, mask_ref,
                     we_ref, wd_ref, bias_ref, wf_ref,
                     awe_ref, alpha_ref):
    # enc_ref:  (Bb, N, E)   dec_ref: (Bb, D)   mask_ref: (Bb, N) f32 (1.0 = valid)
    # we_ref:   (E, A)       wd_ref:  (D, A)
    # bias_ref: (1, A)  = be + bd folded        wf_ref: (1, A) final-projection row
    # awe_ref:  (Bb, E)      alpha_ref: (Bb, N)
    Bb, N, E = enc_ref.shape
    A = we_ref.shape[1]

    enc = enc_ref[...]                                           # (Bb, N, E)

    # Linear_enc as one big (Bb*N, E) x (E, A) MXU matmul.  The reshape is
    # layout-preserving because the wrapper pads N to a multiple of 8 (128).
    att1 = jnp.dot(enc.reshape(Bb * N, E), we_ref[...],
                   preferred_element_type=jnp.float32)           # (Bb*N, A)

    # Linear_dec for the Bb decoder states; folded bias (be + bd).
    att2 = jnp.dot(dec_ref[...], wd_ref[...],
                   preferred_element_type=jnp.float32) + bias_ref[...]   # (Bb, A)

    h = jnp.maximum(att1.reshape(Bb, N, A) + att2[:, None, :], 0.0)      # (Bb, N, A)

    # Width-1 projection as a lane multiply-reduce; bf omitted
    # (softmax is shift-invariant so alpha/awe are unchanged).
    s = jnp.sum(h * wf_ref[...], axis=-1)                        # (Bb, N) f32

    # Masked softmax per batch row over the proposal (lane) axis.
    mask = mask_ref[...]                                         # (Bb, N)
    valid = mask > 0.0
    any_valid = jnp.sum(mask, axis=-1, keepdims=True) > 0.0      # (Bb, 1)
    neg = jnp.float32(-1e30)
    s_masked = jnp.where(valid, s, neg)
    m = jnp.max(s_masked, axis=-1, keepdims=True)
    m = jnp.where(any_valid, m, 0.0)
    e = jnp.where(valid, jnp.exp(s_masked - m), 0.0)
    denom = jnp.maximum(jnp.sum(e, axis=-1, keepdims=True), jnp.float32(1e-30))
    alpha = jnp.where(any_valid, e / denom, 0.0)                 # (Bb, N) f32
    alpha_ref[...] = alpha

    # attention_weighted_encoding: VPU broadcast-multiply + XLU sublane reduce,
    # with alpha kept in f32 (no M=1 MXU pass, no bf16 quantization of alpha).
    awe = jnp.sum(alpha[:, :, None] * enc.astype(jnp.float32), axis=1)   # (Bb, E)
    awe_ref[...] = awe.astype(awe_ref.dtype)


# ----------------------------------------------------------------------------
# Sizing helpers
# ----------------------------------------------------------------------------
def _round_up(x, m):
    return (x + m - 1) // m * m


def _pad_axis(x, axis, target):
    pad = target - x.shape[axis]
    if pad == 0:
        return x
    widths = [(0, 0)] * x.ndim
    widths[axis] = (0, pad)
    return jnp.pad(x, widths)


def _vmem_estimate_bytes(bb, n, e, a, d, act_bytes):
    """Rough per-step VMEM footprint for a (bb, n, e/a/d) block."""
    return int(
        2 * bb * n * e * act_bytes                      # double-buffered enc block
        + 2 * bb * d * act_bytes                        # dec block
        + 2 * bb * n * 4                                # mask block
        + 2 * ((e + d) * a * act_bytes + 2 * a * 4)     # weights + folded bias + wf
        + 2 * (bb * e * act_bytes + bb * n * 4)         # outputs (double-buffered)
        + 2 * bb * n * a * 4                            # f32 att1 / relu intermediates
        + bb * n * e * 4                                # f32 weighted-enc intermediate
    )


_VMEM_BUDGET = 40 << 20   # keep comfortably under v7x's 64 MiB physical VMEM


def _choose_batch_block(B, n, e, a, d, act_bytes):
    """Largest sublane-aligned batch block (<=32) that fits the VMEM budget,
    preferring a multi-step grid (pipelining + v7x second TensorCore)."""
    b8 = _round_up(max(B, 1), 8)
    bb = 8
    for cand in (32, 16, 8):
        if _vmem_estimate_bytes(cand, n, e, a, d, act_bytes) <= _VMEM_BUDGET:
            bb = cand
            break
    while bb > 8 and _round_up(b8, bb) // bb < 2:
        bb //= 2
    return bb, _round_up(b8, bb)


# ----------------------------------------------------------------------------
# Wrapper
# ----------------------------------------------------------------------------
def attention_forward(encoder_out, decoder_hidden, object_mask, params):
    B, N, E = encoder_out.shape
    D = decoder_hidden.shape[1]
    A = params["we"].shape[1]

    act_dtype = encoder_out.dtype
    act_bytes = jnp.dtype(act_dtype).itemsize

    # Lane-dense padding: N/E/A/D -> multiples of 128 (full MXU lanes, unmasked
    # vst on the alpha/awe outputs); zero padding is exact (see header comment).
    Np = _round_up(N, 128)
    Ep = _round_up(E, 128)
    Ap = _round_up(A, 128)
    Dp = _round_up(D, 128)

    Bb, Bp = _choose_batch_block(B, Np, Ep, Ap, Dp, act_bytes)
    grid = (Bp // Bb,)

    # Keep activations in their native dtype (bf16 streams as bf16 and
    # accumulates in f32 on the MXU); weights follow the activation dtype.
    enc = _pad_axis(_pad_axis(_pad_axis(encoder_out, 2, Ep), 1, Np), 0, Bp)
    dec = _pad_axis(_pad_axis(decoder_hidden, 1, Dp), 0, Bp)
    mask = _pad_axis(
        _pad_axis(object_mask.astype(jnp.float32).reshape(B, N), 1, Np), 0, Bp)

    we = _pad_axis(_pad_axis(params["we"], 1, Ap), 0, Ep).astype(act_dtype)
    wd = _pad_axis(_pad_axis(params["wd"], 1, Ap), 0, Dp).astype(act_dtype)
    bias = _pad_axis((params["be"] + params["bd"]).astype(jnp.float32), 1, Ap)
    wf_row = _pad_axis(params["wf"].reshape(1, A).astype(jnp.float32), 1, Ap)

    est = _vmem_estimate_bytes(Bb, Np, Ep, Ap, Dp, act_bytes)
    vmem_limit = int(min(max(est + (8 << 20), 32 << 20), 56 << 20))

    awe_p, alpha_p = pl.pallas_call(
        attention_kernel,
        out_shape=(
            jax.ShapeDtypeStruct((Bp, Ep), act_dtype),
            jax.ShapeDtypeStruct((Bp, Np), jnp.float32),
        ),
        grid_spec=pltpu.PrefetchScalarGridSpec(
            num_scalar_prefetch=0,
            grid=grid,
            in_specs=[
                pl.BlockSpec((Bb, Np, Ep), lambda b: (b, 0, 0)),   # encoder block
                pl.BlockSpec((Bb, Dp), lambda b: (b, 0)),          # decoder block
                pl.BlockSpec((Bb, Np), lambda b: (b, 0)),          # mask block
                pl.BlockSpec((Ep, Ap), lambda b: (0, 0)),          # we
                pl.BlockSpec((Dp, Ap), lambda b: (0, 0)),          # wd
                pl.BlockSpec((1, Ap), lambda b: (0, 0)),           # folded bias
                pl.BlockSpec((1, Ap), lambda b: (0, 0)),           # wf row
            ],
            out_specs=(
                pl.BlockSpec((Bb, Ep), lambda b: (b, 0)),
                pl.BlockSpec((Bb, Np), lambda b: (b, 0)),
            ),
        ),
        compiler_params=pltpu.CompilerParams(
            dimension_semantics=("parallel",),
            vmem_limit_bytes=vmem_limit,
        ),
    )(enc, dec, mask, we, wd, bias, wf_row)

    return awe_p[:B, :E], alpha_p[:B, :N]


# ----------------------------------------------------------------------------
# Params / reference
# ----------------------------------------------------------------------------
def init_params(key, encoder_dim, decoder_dim, attention_dim):
    """Deterministic init mimicking nn.Linear default (uniform +/- 1/sqrt(fan_in)).
    Weights stored pre-transposed as (in, out) for right-multiplication."""
    ks = jax.random.split(key, 6)

    def lin(kw, kb, fan_in, fan_out):
        bound = 1.0 / jnp.sqrt(fan_in)
        w = jax.random.uniform(kw, (fan_in, fan_out), jnp.float32, -bound, bound)
        b = jax.random.uniform(kb, (1, fan_out), jnp.float32, -bound, bound)
        return w, b

    we, be = lin(ks[0], ks[1], encoder_dim, attention_dim)
    wd, bd = lin(ks[2], ks[3], decoder_dim, attention_dim)
    wf, bf = lin(ks[4], ks[5], attention_dim, 1)
    return {"we": we, "be": be, "wd": wd, "bd": bd, "wf": wf, "bf": bf}


def attention_ref(encoder_out, decoder_hidden, object_mask, p):
    """Pure-JAX reference reproducing the PyTorch forward (including bf, which
    is softmax-invariant and therefore output-identical to the kernel)."""
    att1 = encoder_out @ p["we"] + p["be"]                 # (B, N, A)
    att2 = decoder_hidden @ p["wd"] + p["bd"]              # (B, A)
    att = (jnp.maximum(att1 + att2[:, None, :], 0.0) @ p["wf"] + p["bf"])[..., 0]
    mask = object_mask
    neg = jnp.float32(-1e30)
    masked = jnp.where(mask, att, neg)
    m = jnp.max(masked, axis=1, keepdims=True)
    any_v = jnp.any(mask, axis=1, keepdims=True)
    m = jnp.where(any_v, m, 0.0)
    e = jnp.where(mask, jnp.exp(masked - m), 0.0)
    denom = jnp.maximum(jnp.sum(e, axis=1, keepdims=True), 1e-30)
    alpha = jnp.where(any_v, e / denom, 0.0)
    awe = jnp.sum(encoder_out * alpha[..., None], axis=1)
    return awe, alpha


# ----------------------------------------------------------------------------
# Test
# ----------------------------------------------------------------------------
if __name__ == "__main__":
    B, N, E, D, A = 2, 16, 32, 32, 32

    key = jax.random.PRNGKey(0)
    k_enc, k_dec, k_mask, k_par = jax.random.split(key, 4)

    encoder_out = jax.random.normal(k_enc, (B, N, E), jnp.float32)
    decoder_hidden = jax.random.normal(k_dec, (B, D), jnp.float32)
    object_mask = jax.random.bernoulli(k_mask, 0.5, (B, N))
    # Force deterministic coverage of both branches: row 0 has objects, row 1 empty.
    object_mask = object_mask.at[0, 0].set(True)
    object_mask = object_mask.at[1, :].set(False)

    params = init_params(k_par, E, D, A)

    awe, alpha = attention_forward(encoder_out, decoder_hidden, object_mask, params)
    jax.block_until_ready((awe, alpha))

    awe_r, alpha_r = attention_ref(encoder_out, decoder_hidden, object_mask, params)
    assert awe.shape == (B, E) and alpha.shape == (B, N)
    assert jnp.allclose(awe, awe_r, atol=1e-5, rtol=1e-5)
    assert jnp.allclose(alpha, alpha_r, atol=1e-5, rtol=1e-5)

    print("KERNEL_OK")
</pallas_src>

<mosaic_0001>
module attributes {stable_mosaic.version = 11 : i64} {
  func.func @attention_kernel(%arg0: i32, %arg1: memref<8x128x128xf32, #tpu.memory_space<vmem>>, %arg2: memref<8x128xf32, #tpu.memory_space<vmem>>, %arg3: memref<8x128xf32, #tpu.memory_space<vmem>>, %arg4: memref<128x128xf32, #tpu.memory_space<vmem>>, %arg5: memref<128x128xf32, #tpu.memory_space<vmem>>, %arg6: memref<1x128xf32, #tpu.memory_space<vmem>>, %arg7: memref<1x128xf32, #tpu.memory_space<vmem>>, %arg8: memref<8x128xf32, #tpu.memory_space<vmem>>, %arg9: memref<8x128xf32, #tpu.memory_space<vmem>>) attributes {dimension_semantics = [#tpu.dimension_semantics<parallel>], iteration_bounds = array<i64: 1>, scalar_prefetch = 0 : i64, scratch_operands = 0 : i64, tpu.core_type = #tpu.core_type<tc>, window_params = [{transform_indices = @transform_0, window_bounds = array<i64: 8, 128, 128>}, {transform_indices = @transform_1, window_bounds = array<i64: 8, 128>}, {transform_indices = @transform_2, window_bounds = array<i64: 8, 128>}, {pipeline_mode = #tpu.pipeline_mode<synchronous>, transform_indices = @transform_3, window_bounds = array<i64: 128, 128>}, {pipeline_mode = #tpu.pipeline_mode<synchronous>, transform_indices = @transform_4, window_bounds = array<i64: 128, 128>}, {pipeline_mode = #tpu.pipeline_mode<synchronous>, transform_indices = @transform_5, window_bounds = array<i64: 1, 128>}, {pipeline_mode = #tpu.pipeline_mode<synchronous>, transform_indices = @transform_6, window_bounds = array<i64: 1, 128>}, {transform_indices = @transform_7, window_bounds = array<i64: 8, 128>}, {transform_indices = @transform_8, window_bounds = array<i64: 8, 128>}]} {
    %c0 = arith.constant 0 : index
    %c0_0 = arith.constant 0 : index
    %c0_1 = arith.constant 0 : index
    %0 = vector.load %arg1[%c0, %c0_0, %c0_1] : memref<8x128x128xf32, #tpu.memory_space<vmem>>, vector<8x128x128xf32>
    %1 = vector.shape_cast %0 : vector<8x128x128xf32> to vector<1024x128xf32>
    %c0_2 = arith.constant 0 : index
    %c0_3 = arith.constant 0 : index
    %2 = vector.load %arg4[%c0_2, %c0_3] : memref<128x128xf32, #tpu.memory_space<vmem>>, vector<128x128xf32>
    %cst = arith.constant dense<0.000000e+00> : vector<1024x128xf32>
    %3 = tpu.matmul %1, %2, %cst {dimension_numbers = #tpu.dot_dimension_numbers<[1], [0], [0], [1], [0, 0, 1, 1], [], []>} : vector<1024x128xf32>, vector<128x128xf32>, vector<1024x128xf32> -> vector<1024x128xf32>
    %c0_4 = arith.constant 0 : index
    %c0_5 = arith.constant 0 : index
    %4 = vector.load %arg2[%c0_4, %c0_5] : memref<8x128xf32, #tpu.memory_space<vmem>>, vector<8x128xf32>
    %c0_6 = arith.constant 0 : index
    %c0_7 = arith.constant 0 : index
    %5 = vector.load %arg5[%c0_6, %c0_7] : memref<128x128xf32, #tpu.memory_space<vmem>>, vector<128x128xf32>
    %cst_8 = arith.constant dense<0.000000e+00> : vector<8x128xf32>
    %6 = tpu.matmul %4, %5, %cst_8 {dimension_numbers = #tpu.dot_dimension_numbers<[1], [0], [0], [1], [0, 0, 1, 1], [], []>} : vector<8x128xf32>, vector<128x128xf32>, vector<8x128xf32> -> vector<8x128xf32>
    %c0_9 = arith.constant 0 : index
    %c0_10 = arith.constant 0 : index
    %7 = vector.load %arg6[%c0_9, %c0_10] : memref<1x128xf32, #tpu.memory_space<vmem>>, vector<1x128xf32>
    %8 = vector.broadcast %7 : vector<1x128xf32> to vector<8x128xf32>
    %9 = arith.addf %6, %8 : vector<8x128xf32>
    %10 = vector.shape_cast %3 : vector<1024x128xf32> to vector<8x128x128xf32>
    %11 = vector.shape_cast %9 : vector<8x128xf32> to vector<8x1x128xf32>
    %12 = vector.broadcast %11 : vector<8x1x128xf32> to vector<8x128x128xf32>
    %13 = arith.addf %10, %12 : vector<8x128x128xf32>
    %cst_11 = arith.constant 0.000000e+00 : f32
    %14 = vector.broadcast %cst_11 : f32 to vector<8x128x128xf32>
    %15 = arith.maximumf %13, %14 : vector<8x128x128xf32>
    %c0_12 = arith.constant 0 : index
    %c0_13 = arith.constant 0 : index
    %16 = vector.load %arg7[%c0_12, %c0_13] : memref<1x128xf32, #tpu.memory_space<vmem>>, vector<1x128xf32>
    %17 = vector.shape_cast %16 : vector<1x128xf32> to vector<1x1x128xf32>
    %18 = vector.broadcast %17 : vector<1x1x128xf32> to vector<8x128x128xf32>
    %19 = arith.mulf %15, %18 : vector<8x128x128xf32>
    %cst_14 = arith.constant dense<0.000000e+00> : vector<8x128xf32>
    %20 = vector.multi_reduction <add>, %19, %cst_14 [2] : vector<8x128x128xf32> to vector<8x128xf32>
    %c0_15 = arith.constant 0 : index
    %c0_16 = arith.constant 0 : index
    %21 = vector.load %arg3[%c0_15, %c0_16] : memref<8x128xf32, #tpu.memory_space<vmem>>, vector<8x128xf32>
    %cst_17 = arith.constant 0.000000e+00 : f32
    %22 = vector.broadcast %cst_17 : f32 to vector<8x128xf32>
    %23 = arith.cmpf ogt, %21, %22 : vector<8x128xf32>
    %cst_18 = arith.constant dense<0.000000e+00> : vector<8xf32>
    %24 = vector.multi_reduction <add>, %21, %cst_18 [1] : vector<8x128xf32> to vector<8xf32>
    %25 = vector.shape_cast %24 : vector<8xf32> to vector<8x1xf32>
    %cst_19 = arith.constant 0.000000e+00 : f32
    %26 = vector.broadcast %cst_19 : f32 to vector<8x1xf32>
    %27 = arith.cmpf ogt, %25, %26 : vector<8x1xf32>
    %cst_20 = arith.constant -1.000000e+30 : f32
    %28 = vector.broadcast %cst_20 : f32 to vector<8x128xf32>
    %29 = arith.select %23, %20, %28 : vector<8x128xi1>, vector<8x128xf32>
    %cst_21 = arith.constant dense<0xFF800000> : vector<8xf32>
    %30 = vector.multi_reduction <maximumf>, %29, %cst_21 [1] : vector<8x128xf32> to vector<8xf32>
    %31 = vector.shape_cast %30 : vector<8xf32> to vector<8x1xf32>
    %cst_22 = arith.constant 0.000000e+00 : f32
    %32 = vector.broadcast %cst_22 : f32 to vector<8x1xf32>
    %33 = arith.select %27, %31, %32 : vector<8x1xi1>, vector<8x1xf32>
    %34 = vector.broadcast %33 : vector<8x1xf32> to vector<8x128xf32>
    %35 = arith.subf %29, %34 : vector<8x128xf32>
    %36 = math.exp %35 : vector<8x128xf32>
    %cst_23 = arith.constant 0.000000e+00 : f32
    %37 = vector.broadcast %cst_23 : f32 to vector<8x128xf32>
    %38 = arith.select %23, %36, %37 : vector<8x128xi1>, vector<8x128xf32>
    %cst_24 = arith.constant dense<0.000000e+00> : vector<8xf32>
    %39 = vector.multi_reduction <add>, %38, %cst_24 [1] : vector<8x128xf32> to vector<8xf32>
    %40 = vector.shape_cast %39 : vector<8xf32> to vector<8x1xf32>
    %cst_25 = arith.constant 1.000000e-30 : f32
    %41 = vector.broadcast %cst_25 : f32 to vector<8x1xf32>
    %42 = arith.maximumf %40, %41 : vector<8x1xf32>
    %43 = vector.broadcast %42 : vector<8x1xf32> to vector<8x128xf32>
    %44 = arith.divf %38, %43 : vector<8x128xf32>
    %cst_26 = arith.constant 0.000000e+00 : f32
    %45 = vector.shape_cast %27 : vector<8x1xi1> to vector<8x1xi1>
    %46 = vector.broadcast %45 : vector<8x1xi1> to vector<8x128xi1>
    %47 = vector.broadcast %cst_26 : f32 to vector<8x128xf32>
    %48 = arith.select %46, %44, %47 : vector<8x128xi1>, vector<8x128xf32>
    %c0_27 = arith.constant 0 : index
    %c0_28 = arith.constant 0 : index
    %49 = vector.load %arg9[%c0_27, %c0_28] : memref<8x128xf32, #tpu.memory_space<vmem>>, vector<8x128xf32>
    tpu.vector_store %arg9[%c0_27, %c0_28], %48 {strides = array<i32>} : memref<8x128xf32, #tpu.memory_space<vmem>>, vector<8x128xf32>,
    %50 = vector.shape_cast %48 : vector<8x128xf32> to vector<8x128x1xf32>
    %51 = vector.broadcast %50 : vector<8x128x1xf32> to vector<8x128x128xf32>
    %52 = arith.mulf %51, %0 : vector<8x128x128xf32>
    %cst_29 = arith.constant dense<0.000000e+00> : vector<8x128xf32>
    %53 = vector.multi_reduction <add>, %52, %cst_29 [1] : vector<8x128x128xf32> to vector<8x128xf32>
    %c0_30 = arith.constant 0 : index
    %c0_31 = arith.constant 0 : index
    %54 = vector.load %arg8[%c0_30, %c0_31] : memref<8x128xf32, #tpu.memory_space<vmem>>, vector<8x128xf32>
    tpu.vector_store %arg8[%c0_30, %c0_31], %53 {strides = array<i32>} : memref<8x128xf32, #tpu.memory_space<vmem>>, vector<8x128xf32>,
    return
  }
  func.func @transform_0(%arg0: i32) -> (i32, i32, i32) {
    %c0_i32 = arith.constant 0 : i32
    %c0_i32_0 = arith.constant 0 : i32
    %c0_i32_1 = arith.constant 0 : i32
    return %arg0, %c0_i32, %c0_i32_0 : i32, i32, i32
  }
  func.func @transform_1(%arg0: i32) -> (i32, i32) {
    %c0_i32 = arith.constant 0 : i32
    %c0_i32_0 = arith.constant 0 : i32
    return %arg0, %c0_i32 : i32, i32
  }
  func.func @transform_2(%arg0: i32) -> (i32, i32) {
    %c0_i32 = arith.constant 0 : i32
    %c0_i32_0 = arith.constant 0 : i32
    return %arg0, %c0_i32 : i32, i32
  }
  func.func @transform_3(%arg0: i32) -> (i32, i32) {
    %c0_i32 = arith.constant 0 : i32
    %c0_i32_0 = arith.constant 0 : i32
    %c0_i32_1 = arith.constant 0 : i32
    return %c0_i32, %c0_i32_0 : i32, i32
  }
  func.func @transform_4(%arg0: i32) -> (i32, i32) {
    %c0_i32 = arith.constant 0 : i32
    %c0_i32_0 = arith.constant 0 : i32
    %c0_i32_1 = arith.constant 0 : i32
    return %c0_i32, %c0_i32_0 : i32, i32
  }
  func.func @transform_5(%arg0: i32) -> (i32, i32) {
    %c0_i32 = arith.constant 0 : i32
    %c0_i32_0 = arith.constant 0 : i32
    %c0_i32_1 = arith.constant 0 : i32
    return %c0_i32, %c0_i32_0 : i32, i32
  }
  func.func @transform_6(%arg0: i32) -> (i32, i32) {
    %c0_i32 = arith.constant 0 : i32
    %c0_i32_0 = arith.constant 0 : i32
    %c0_i32_1 = arith.constant 0 : i32
    return %c0_i32, %c0_i32_0 : i32, i32
  }
  func.func @transform_7(%arg0: i32) -> (i32, i32) {
    %c0_i32 = arith.constant 0 : i32
    %c0_i32_0 = arith.constant 0 : i32
    return %arg0, %c0_i32 : i32, i32
  }
  func.func @transform_8(%arg0: i32) -> (i32, i32) {
    %c0_i32 = arith.constant 0 : i32
    %c0_i32_0 = arith.constant 0 : i32
    return %arg0, %c0_i32 : i32, i32
  }
}

</mosaic_0001>

<bundles_post_ra>
// kernel: tpu_custom_call.1
= control target key start
LH: loop header
LB: loop body
LE: loop exit
PB: predicated region body
PF: predicated region fallthrough
CT: control target
= control target key end

     0   :  { %14 = vsyncpa [#allocation3], 0  ;;  %s6176_s0 = inlined_call_operand.hbm [shape: f32[8,128,128], index: 0, kind: input, shape index: {}]   ;;  %s6177_s1 = inlined_call_operand.hbm [shape: f32[8,128], index: 1, kind: input, shape index: {}]   ;;  %s6178_s2 = inlined_call_operand.hbm [shape: f32[8,128], index: 2, kind: input, shape index: {}]   ;;  %s6179_s3 = inlined_call_operand.hbm [shape: f32[128,128], index: 3, kind: input, shape index: {}]   ;;  %s6180_s4 = inlined_call_operand.hbm [shape: f32[128,128], index: 4, kind: input, shape index: {}]   ;;  %s6181_s5 = inlined_call_operand.vmem [shape: f32[1,128], index: 5, kind: input, shape index: {}]   ;;  %s6182_s6 = inlined_call_operand.vmem [shape: f32[1,128], index: 6, kind: input, shape index: {}]   ;;  %s6183_s7 = inlined_call_operand.hbm [shape: f32[8,128], index: 7, kind: output, shape index: {0}]   ;;  %s6184_s8 = inlined_call_operand.hbm [shape: f32[8,128], index: 8, kind: output, shape index: {1}]  }
   0x1   :  { %15 = vsyncpa [#allocation6], 0 }
   0x2   :  { %16 = vsyncpa [#allocation9], 0 }
   0x3   :  { %17 = vsyncpa [#allocation4], 0 }
   0x4   :  { %18 = vsyncpa [#allocation13], 0  ;;  %s4287_s27 = smov [#allocation5]   ;;  %s4123_s9 = scalar_lea.hbm %s6177_s1, 128 }
   0x5   :  { %s37_s28 = sshll.u32 %s4287_s27, 4  ;;  %p4124_p0 = scmp.ne.s32.totalorder %s6177_s1, %s4123_s9  ;;  %s38_s28 = int_to_ptr.vmem [resolvable:$true] %s37_s28 }
   0x6   :  { %p4127_p1 = scmp.lt.u32.totalorder %s4123_s9, %s6177_s1 }
   0x8   :  { %p4129_p2 = pnand %p4127_p1, %p4124_p0 }
   0xa   :  { %4132 = shalt.err (!%p4129_p2)
}
   0xb   :  { %s4133_s14 = scalar_lea.vmem %s38_s28, 128  ;;  %p4138_p4 = scmp.lt.s32.totalorder %s38_s28, %s38_s28 }
   0xc   :  { %p4134_p3 = scmp.ne.s32.totalorder %s38_s28, %s4133_s14  ;;  %p4139_p5 = scmp.lt.s32.totalorder %s4133_s14, %s4133_s14 }
   0xe   :  { %p4140_p6 = por %p4139_p5, %p4138_p4 }
  0x10   :  { %p4141_p7 = pnand %p4140_p6, %p4134_p3 }
  0x12   :  { %4144 = shalt.err (!%p4141_p7)
}
  0x13   :  { %40 = dma.hbm_to_vmem [thread:$0]  %s6177_s1, 128, %s38_s28, [#allocation6]  }
  0x14   :  { %s4288_s17 = smov [#allocation8]   ;;  %s4289_s19 = smov [#allocation2]  }
  0x15   :  { %s56_s18 = sshll.u32 %s4288_s17, 4  ;;  %s24_s20 = sshll.u32 %s4289_s19, 4  ;;  %s57_s18 = int_to_ptr.vmem [resolvable:$true] %s56_s18  ;;  %s25_s20 = int_to_ptr.vmem [resolvable:$true] %s24_s20 }
  0x16   :  { %s4145_s23 = scalar_lea.hbm %s6179_s3, 2048 }
  0x17   :  { %p4146_p8 = scmp.ne.s32.totalorder %s6179_s3, %s4145_s23  ;;  %p4149_p9 = scmp.lt.u32.totalorder %s4145_s23, %s6179_s3 }
  0x19   :  { %p4151_p10 = pnand %p4149_p9, %p4146_p8 }
  0x1b   :  { %4154 = shalt.err (!%p4151_p10)
}
  0x1c   :  { %s4155_s1 = scalar_lea.vmem %s57_s18, 2048  ;;  %p4160_p12 = scmp.lt.s32.totalorder %s57_s18, %s57_s18 }
  0x1d   :  { %p4156_p11 = scmp.ne.s32.totalorder %s57_s18, %s4155_s1  ;;  %p4161_p13 = scmp.lt.s32.totalorder %s4155_s1, %s4155_s1 }
  0x1f   :  { %p4162_p0 = por %p4161_p13, %p4160_p12 }
  0x21   :  { %p4163_p1 = pnand %p4162_p0, %p4156_p11 }
  0x23   :  { %4166 = shalt.err (!%p4163_p1)
}
  0x24   :  { %s4290_s28 = smov 128   ;;  %s4291_s29 = smov 8  }
  0x25   :  { %62 = dma.hbm_to_vmem [thread:$0]  %s6179_s3, 2048, %s57_s18, [#allocation9], %s4290_s28, %s4290_s28, %s4291_s29  }
  0x26   :  { %s4167_s12 = scalar_lea.hbm %s6176_s0, 16384 }
  0x27   :  { %p4168_p2 = scmp.ne.s32.totalorder %s6176_s0, %s4167_s12  ;;  %p4171_p3 = scmp.lt.u32.totalorder %s4167_s12, %s6176_s0 }
  0x29   :  { %p4173_p4 = pnand %p4171_p3, %p4168_p2 }
  0x2b   :  { %4176 = shalt.err (!%p4173_p4)
}
  0x2c   :  { %s4177_s17 = scalar_lea.vmem %s25_s20, 16384  ;;  %p4182_p6 = scmp.lt.s32.totalorder %s25_s20, %s25_s20 }
  0x2d   :  { %p4178_p5 = scmp.ne.s32.totalorder %s25_s20, %s4177_s17  ;;  %p4183_p7 = scmp.lt.s32.totalorder %s4177_s17, %s4177_s17 }
  0x2f   :  { %p4184_p8 = por %p4183_p7, %p4182_p6 }
  0x31   :  { %p4185_p9 = pnand %p4184_p8, %p4178_p5 }
  0x33   :  { %4188 = shalt.err (!%p4185_p9)
}
  0x34   :  { %30 = dma.hbm_to_vmem [thread:$0]  %s6176_s0, 16384, %s25_s20, [#allocation3], %s4290_s28, %s4290_s28, %s4291_s29  }
  0x35   :  { %s4292_s19 = smov [#allocation7]   ;;  %s4293_s22 = smov [#allocation10]  }
  0x36   :  { %s47_s21 = sshll.u32 %s4292_s19, 4  ;;  %s68_s23 = sshll.u32 %s4293_s22, 4  ;;  %s48_s21 = int_to_ptr.vmem [resolvable:$true] %s47_s21  ;;  %s69_s23 = int_to_ptr.vmem [resolvable:$true] %s68_s23 }
  0x37   :  { %s4189_s26 = scalar_lea.hbm %s6178_s2, 128 }
  0x38   :  { %p4190_p10 = scmp.ne.s32.totalorder %s6178_s2, %s4189_s26  ;;  %p4193_p11 = scmp.lt.u32.totalorder %s4189_s26, %s6178_s2 }
  0x3a   :  { %p4195_p12 = pnand %p4193_p11, %p4190_p10 }
  0x3c   :  { %4198 = shalt.err (!%p4195_p12)
}
  0x3d   :  { %s4199_s0 = scalar_lea.vmem %s48_s21, 128  ;;  %p4204_p0 = scmp.lt.s32.totalorder %s48_s21, %s48_s21 }
  0x3e   :  { %p4200_p13 = scmp.ne.s32.totalorder %s48_s21, %s4199_s0  ;;  %p4205_p1 = scmp.lt.s32.totalorder %s4199_s0, %s4199_s0 }
  0x40   :  { %p4206_p2 = por %p4205_p1, %p4204_p0 }
  0x42   :  { %p4207_p3 = pnand %p4206_p2, %p4200_p13 }
  0x44   :  { %4210 = shalt.err (!%p4207_p3)
}
  0x45   :  { %50 = dma.hbm_to_vmem [thread:$0]  %s6178_s2, 128, %s48_s21, [#allocation6]  }
  0x46   :  { %s4211_s13 = scalar_lea.hbm %s6180_s4, 2048 }
  0x47   :  { %p4212_p4 = scmp.ne.s32.totalorder %s6180_s4, %s4211_s13  ;;  %p4215_p5 = scmp.lt.u32.totalorder %s4211_s13, %s6180_s4 }
  0x49   :  { %p4217_p6 = pnand %p4215_p5, %p4212_p4 }
  0x4b   :  { %4220 = shalt.err (!%p4217_p6)
}
  0x4c   :  { %s4221_s3 = scalar_lea.vmem %s69_s23, 2048  ;;  %p4226_p8 = scmp.lt.s32.totalorder %s69_s23, %s69_s23 }
  0x4d   :  { %p4222_p7 = scmp.ne.s32.totalorder %s69_s23, %s4221_s3  ;;  %p4227_p9 = scmp.lt.s32.totalorder %s4221_s3, %s4221_s3 }
  0x4f   :  { %p4228_p10 = por %p4227_p9, %p4226_p8 }
  0x51   :  { %p4229_p11 = pnand %p4228_p10, %p4222_p7 }
  0x53   :  { %4232 = shalt.err (!%p4229_p11)
}
  0x54   :  { %74 = dma.hbm_to_vmem [thread:$0]  %s6180_s4, 2048, %s69_s23, [#allocation9], %s4290_s28, %s4290_s28, %s4291_s29  }
  0x55   :  { %4277 = dma.done.wait [#allocation3], 16384  }
  0x56   :  { %4278 = vsyncadd [#allocation3], 4294950912 }
  0x57   :  { %4279 = dma.done.wait [#allocation6], 256  }
  0x58   :  { %4280 = vsyncadd [#allocation6], 4294967040 }
  0x59   :  { %4281 = dma.done.wait [#allocation9], 4096  }
  0x5a   :  { %4282 = vsyncadd [#allocation9], 4294963200  ;;  %v222_v0 = vld [vmem:[#allocation8] sm:$0xff]  ;;  %v223_v1 = vld [vmem:[#allocation8 + $0x8] sm:$0xff]  ;;  %v4294_v31 = vmov 0.0|0.0   ;;  %vm4295_vm0 = vmmov 0  }
  0x5b   :  { %v224_v2 = vld [vmem:[#allocation8 + $0x10] sm:$0xff]  ;;  %v3905_v3 = vpack.c.bf16 %v223_v1, %v222_v0  ;;  %v225_v4 = vld [vmem:[#allocation8 + $0x18] sm:$0xff]  ;;  %v226_v6 = vld [vmem:[#allocation8 + $0x20] sm:$0xff]  ;;  %vm1918_vm1 = vcmask 130112   ;;  %vm1925_vm2 = vcmask 195712   ;;  %vm1932_vm3 = vcmask 261312  }
  0x5c   :  { %v3909_v5 = vpack.c.bf16 %v225_v4, %v224_v2  ;;  %v227_v7 = vld [vmem:[#allocation8 + $0x28] sm:$0xff]  ;;  %v160_v9 = vld [vmem:[#allocation2 + $0x210] sm:$0xff]  ;;  %v228_v10 = vld [vmem:[#allocation8 + $0x30] sm:$0xff]  ;;  %vm1939_vm4 = vcmask 326912   ;;  %vm1946_vm5 = vcmask 392512   ;;  %vm1953_vm6 = vcmask 458112  }
  0x5d   :  { %3961 = vmatprep.subr.bf16.mxu1 %v3905_v3  ;;  %3906 = vmatprep.subr.bf16.mxu0 %v3905_v3  ;;  %v3913_v8 = vpack.c.bf16 %v227_v7, %v226_v6  ;;  %v229_v11 = vld [vmem:[#allocation8 + $0x38] sm:$0xff]  ;;  %v94_v12 = vld [vmem:[#allocation2] sm:$0xff]  ;;  %v230_v14 = vld [vmem:[#allocation8 + $0x40] sm:$0xff]  ;;  %vm1960_vm7 = vcmask 523712   ;;  %vm1967_vm8 = vcmask 589312   ;;  %vm1974_vm9 = vcmask 654912  }
  0x5e   :  { %3969 = vmatpush3.bf16.msra.mxu1 %v3905_v3  ;;  %3908 = vmatpush3.bf16.msra.mxu0 %v3905_v3  ;;  %v3917_v13 = vpack.c.bf16 %v229_v11, %v228_v10  ;;  %v231_v15 = vld [vmem:[#allocation8 + $0x48] sm:$0xff]  ;;  %v232_v17 = vld [vmem:[#allocation8 + $0x50] sm:$0xff]  ;;  %v233_v18 = vld [vmem:[#allocation8 + $0x58] sm:$0xff]  ;;  %vm6195_vm10 = vcmask 720512   ;;  %vm1988_vm11 = vcmask 786112   ;;  %vm1995_vm12 = vcmask 851712  }
  0x5f   :  { %3962 = vmatprep.subr.bf16.mxu1 %v3909_v5  ;;  %3910 = vmatprep.subr.bf16.mxu0 %v3909_v5  ;;  %v3921_v16 = vpack.c.bf16 %v231_v15, %v230_v14  ;;  %v3925_v19 = vpack.c.bf16 %v233_v18, %v232_v17  ;;  %v234_v20 = vld [vmem:[#allocation8 + $0x60] sm:$0xff]  ;;  %v235_v21 = vld [vmem:[#allocation8 + $0x68] sm:$0xff]  ;;  %v236_v23 = vld [vmem:[#allocation8 + $0x70] sm:$0xff]  ;;  %vm2002_vm13 = vcmask 917312   ;;  %vm2009_vm14 = vcmask 982912  }
  0x60   :  { %3777 = vmatprep.mubr.f32.mxu1 %v160_v9  ;;  %3678 = vmatprep.mubr.f32.mxu0 %v94_v12  ;;  %v3929_v22 = vpack.c.bf16 %v235_v21, %v234_v20  ;;  %v237_v24 = vld [vmem:[#allocation8 + $0x78] sm:$0xff]  ;;  %v944_v26 = vld [vmem:[#allocation10] sm:$0xff]  ;;  %v945_v27 = vld [vmem:[#allocation10 + $0x8] sm:$0xff]  ;;  %vm2016_vm15 = vcmask 1048512  }
  0x61   :  { %v3933_v25 = vpack.c.bf16 %v237_v24, %v236_v23  ;;  %v161_v28 = vld [vmem:[#allocation2 + $0x218] sm:$0xff]  ;;  %v3938_v29 = vpack.c.bf16 %v945_v27, %v944_v26  ;;  %v95_v30 = vld [vmem:[#allocation2 + $0x8] sm:$0xff]  ;;  %v162_v32 = vld [vmem:[#allocation2 + $0x220] sm:$0xff] }
  0x62   :  { %3970 = vmatpush3.bf16.msra.mxu1 %v3909_v5  ;;  %3912 = vmatpush3.bf16.msra.mxu0 %v3909_v5  ;;  %v96_v33 = vld [vmem:[#allocation2 + $0x10] sm:$0xff]  ;;  %v946_v34 = vld [vmem:[#allocation10 + $0x10] sm:$0xff]  ;;  %v947_v35 = vld [vmem:[#allocation10 + $0x18] sm:$0xff] }
  0x63   :  { %3963 = vmatprep.subr.bf16.mxu1 %v3913_v8  ;;  %3914 = vmatprep.subr.bf16.mxu0 %v3913_v8  ;;  %v163_v36 = vld [vmem:[#allocation2 + $0x228] sm:$0xff]  ;;  %v97_v37 = vld [vmem:[#allocation2 + $0x18] sm:$0xff]  ;;  %v164_v38 = vld [vmem:[#allocation2 + $0x230] sm:$0xff]  ;;  %v3941_v40 = vpack.c.bf16 %v947_v35, %v946_v34 }
  0x64   :  { %v98_v39 = vld [vmem:[#allocation2 + $0x20] sm:$0xff]  ;;  %v948_v41 = vld [vmem:[#allocation10 + $0x20] sm:$0xff]  ;;  %v949_v42 = vld [vmem:[#allocation10 + $0x28] sm:$0xff] }
  0x65   :  { %v165_v43 = vld [vmem:[#allocation2 + $0x238] sm:$0xff]  ;;  %v99_v44 = vld [vmem:[#allocation2 + $0x28] sm:$0xff]  ;;  %v166_v45 = vld [vmem:[#allocation2 + $0x240] sm:$0xff]  ;;  %v3944_v47 = vpack.c.bf16 %v949_v42, %v948_v41 }
  0x66   :  { %3971 = vmatpush3.bf16.msra.mxu1 %v3913_v8  ;;  %3916 = vmatpush3.bf16.msra.mxu0 %v3913_v8  ;;  %v100_v46 = vld [vmem:[#allocation2 + $0x30] sm:$0xff]  ;;  %v950_v48 = vld [vmem:[#allocation10 + $0x30] sm:$0xff]  ;;  %v951_v49 = vld [vmem:[#allocation10 + $0x38] sm:$0xff] }
  0x67   :  { %3964 = vmatprep.subr.bf16.mxu1 %v3917_v13  ;;  %3918 = vmatprep.subr.bf16.mxu0 %v3917_v13  ;;  %v167_v50 = vld [vmem:[#allocation2 + $0x248] sm:$0xff]  ;;  %v101_v51 = vld [vmem:[#allocation2 + $0x38] sm:$0xff]  ;;  %v168_v52 = vld [vmem:[#allocation2 + $0x250] sm:$0xff]  ;;  %v3947_v54 = vpack.c.bf16 %v951_v49, %v950_v48 }
  0x68   :  { %v102_v53 = vld [vmem:[#allocation2 + $0x40] sm:$0xff]  ;;  %v952_v55 = vld [vmem:[#allocation10 + $0x40] sm:$0xff]  ;;  %v953_v56 = vld [vmem:[#allocation10 + $0x48] sm:$0xff] }
  0x69   :  { %v169_v57 = vld [vmem:[#allocation2 + $0x258] sm:$0xff]  ;;  %v103_v58 = vld [vmem:[#allocation2 + $0x48] sm:$0xff]  ;;  %v170_v59 = vld [vmem:[#allocation2 + $0x260] sm:$0xff]  ;;  %v3950_v61 = vpack.c.bf16 %v953_v56, %v952_v55 }
  0x6a   :  { %3972 = vmatpush3.bf16.msra.mxu1 %v3917_v13  ;;  %3920 = vmatpush3.bf16.msra.mxu0 %v3917_v13  ;;  %v104_v60 = vld [vmem:[#allocation2 + $0x50] sm:$0xff]  ;;  %v954_v62 = vld [vmem:[#allocation10 + $0x50] sm:$0xff]  ;;  %v955_v63 = vld [vmem:[#allocation10 + $0x58] sm:$0xff] }
  0x6b   :  { %3965 = vmatprep.subr.bf16.mxu1 %v3921_v16  ;;  %3922 = vmatprep.subr.bf16.mxu0 %v3921_v16  ;;  %v171_v0 = vld [vmem:[#allocation2 + $0x268] sm:$0xff]  ;;  %v105_v1 = vld [vmem:[#allocation2 + $0x58] sm:$0xff]  ;;  %v172_v2 = vld [vmem:[#allocation2 + $0x270] sm:$0xff]  ;;  %v3953_v4 = vpack.c.bf16 %v955_v63, %v954_v62 }
  0x6c   :  { %v106_v3 = vld [vmem:[#allocation2 + $0x60] sm:$0xff]  ;;  %v956_v5 = vld [vmem:[#allocation10 + $0x60] sm:$0xff]  ;;  %v957_v6 = vld [vmem:[#allocation10 + $0x68] sm:$0xff] }
  0x6d   :  { %v173_v7 = vld [vmem:[#allocation2 + $0x278] sm:$0xff]  ;;  %v107_v8 = vld [vmem:[#allocation2 + $0x68] sm:$0xff]  ;;  %v174_v9 = vld [vmem:[#allocation2 + $0x280] sm:$0xff]  ;;  %v3956_v11 = vpack.c.bf16 %v957_v6, %v956_v5 }
  0x6e   :  { %3973 = vmatpush3.bf16.msra.mxu1 %v3921_v16  ;;  %3924 = vmatpush3.bf16.msra.mxu0 %v3921_v16  ;;  %v108_v10 = vld [vmem:[#allocation2 + $0x70] sm:$0xff]  ;;  %v958_v12 = vld [vmem:[#allocation10 + $0x70] sm:$0xff]  ;;  %v959_v13 = vld [vmem:[#allocation10 + $0x78] sm:$0xff] }
  0x6f   :  { %3966 = vmatprep.subr.bf16.mxu1 %v3925_v19  ;;  %3926 = vmatprep.subr.bf16.mxu0 %v3925_v19  ;;  %v175_v14 = vld [vmem:[#allocation2 + $0x288] sm:$0xff]  ;;  %v109_v15 = vld [vmem:[#allocation2 + $0x78] sm:$0xff]  ;;  %v176_v16 = vld [vmem:[#allocation2 + $0x290] sm:$0xff]  ;;  %v3959_v18 = vpack.c.bf16 %v959_v13, %v958_v12 }
  0x70   :  { %v110_v17 = vld [vmem:[#allocation2 + $0x80] sm:$0xff]  ;;  %v111_v20 = vld [vmem:[#allocation2 + $0x88] sm:$0xff]  ;;  %v113_v24 = vld [vmem:[#allocation2 + $0x98] sm:$0xff] }
  0x71   :  { %v178_v21 = vld [vmem:[#allocation2 + $0x2a0] sm:$0xff]  ;;  %v179_v23 = vld [vmem:[#allocation2 + $0x2a8] sm:$0xff]  ;;  %v181_v27 = vld [vmem:[#allocation2 + $0x2b8] sm:$0xff] }
  0x72   :  { %3974 = vmatpush3.bf16.msra.mxu1 %v3925_v19  ;;  %3928 = vmatpush3.bf16.msra.mxu0 %v3925_v19  ;;  %v177_v19 = vld [vmem:[#allocation2 + $0x298] sm:$0xff]  ;;  %v114_v26 = vld [vmem:[#allocation2 + $0xa0] sm:$0xff]  ;;  %v188_v41 = vld [vmem:[#allocation2 + $0x2f0] sm:$0xff] }
  0x73   :  { %3967 = vmatprep.subr.bf16.mxu1 %v3929_v22  ;;  %3930 = vmatprep.subr.bf16.mxu0 %v3929_v22  ;;  %v118_v34 = vld [vmem:[#allocation2 + $0xc0] sm:$0xff]  ;;  %v185_v35 = vld [vmem:[#allocation2 + $0x2d8] sm:$0xff]  ;;  %v192_v49 = vld [vmem:[#allocation2 + $0x310] sm:$0xff] }
  0x74   :  { %v122_v42 = vld [vmem:[#allocation2 + $0xe0] sm:$0xff]  ;;  %v125_v48 = vld [vmem:[#allocation2 + $0xf8] sm:$0xff]  ;;  %v195_v55 = vld [vmem:[#allocation2 + $0x328] sm:$0xff] }
  0x75   :  { %v129_v56 = vld [vmem:[#allocation2 + $0x118] sm:$0xff]  ;;  %v132_v62 = vld [vmem:[#allocation2 + $0x130] sm:$0xff]  ;;  %v199_v63 = vld [vmem:[#allocation2 + $0x348] sm:$0xff] }
  0x76   :  { %3975 = vmatpush3.bf16.msra.mxu1 %v3929_v22  ;;  %3932 = vmatpush3.bf16.msra.mxu0 %v3929_v22  ;;  %v112_v22 = vld [vmem:[#allocation2 + $0x90] sm:$0xff]  ;;  %v202_v5 = vld [vmem:[#allocation2 + $0x360] sm:$0xff]  ;;  %v139_v12 = vld [vmem:[#allocation2 + $0x168] sm:$0xff] }
  0x77   :  { %3968 = vmatprep.subr.bf16.mxu1 %v3933_v25  ;;  %3934 = vmatprep.subr.bf16.mxu0 %v3933_v25  ;;  %v136_v6 = vld [vmem:[#allocation2 + $0x150] sm:$0xff]  ;;  %v206_v13 = vld [vmem:[#allocation2 + $0x380] sm:$0xff] }
  0x7a   :  { %3976 = vmatpush3.bf16.msra.mxu1 %v3933_v25  ;;  %3936 = vmatpush3.bf16.msra.mxu0 %v3933_v25  ;;  %v180_v25 = vld [vmem:[#allocation2 + $0x2b0] sm:$0xff] }
  0x7b   :  { %3937 = vmatprep.subr.bf16.mxu1 %v4294_v31 }
  0x7d   :  { %3778 = vmatmul.mubr.f32.vlgmr.msra.gmra.mrb[0].mxu1 %v161_v28  ;;  %3679 = vmatmul.mubr.f32.vlgmr.msra.gmra.mrb[0].mxu0 %v95_v30  ;;  %v115_v28 = vld [vmem:[#allocation2 + $0xa8] sm:$0xff]  ;;  %v116_v30 = vld [vmem:[#allocation2 + $0xb0] sm:$0xff] }
  0x7e   :  { %3939 = vmatpush3.bf16.msra.mxu1 %v3938_v29  ;;  %3780 = vmatprep.mubr.f32.mxu1 %v162_v32  ;;  %v182_v29 = vld [vmem:[#allocation2 + $0x2c0] sm:$0xff]  ;;  %v117_v32 = vld [vmem:[#allocation2 + $0xb8] sm:$0xff] }
  0x7f   :  { %3681 = vmatprep.mubr.f32.mxu0 %v96_v33  ;;  %3940 = vmatprep.subr.bf16.mxu1 %v4294_v31  ;;  %v184_v33 = vld [vmem:[#allocation2 + $0x2d0] sm:$0xff] }
  0x81   :  { %3781 = vmatmul.mubr.f32.gmra.mrb[2].mxu1 %v163_v36  ;;  %3682 = vmatmul.mubr.f32.gmra.mrb[2].mxu0 %v97_v37  ;;  %v119_v36 = vld [vmem:[#allocation2 + $0xc8] sm:$0xff]  ;;  %v186_v37 = vld [vmem:[#allocation2 + $0x2e0] sm:$0xff] }
  0x82   :  { %3783 = vmatprep.mubr.f32.mxu1 %v164_v38  ;;  %3684 = vmatprep.mubr.f32.mxu0 %v98_v39  ;;  %v120_v38 = vld [vmem:[#allocation2 + $0xd0] sm:$0xff]  ;;  %v187_v39 = vld [vmem:[#allocation2 + $0x2e8] sm:$0xff] }
  0x83   :  { %3942 = vmatpush3.bf16.msra.mxu1 %v3941_v40  ;;  %v121_v40 = vld [vmem:[#allocation2 + $0xd8] sm:$0xff] }
  0x84   :  { %3943 = vmatprep.subr.bf16.mxu1 %v4294_v31 }
  0x85   :  { %3784 = vmatmul.mubr.f32.gmra.mrb[4].mxu1 %v165_v43  ;;  %3685 = vmatmul.mubr.f32.gmra.mrb[4].mxu0 %v99_v44  ;;  %v189_v43 = vld [vmem:[#allocation2 + $0x2f8] sm:$0xff]  ;;  %v123_v44 = vld [vmem:[#allocation2 + $0xe8] sm:$0xff] }
  0x86   :  { %3786 = vmatprep.mubr.f32.mxu1 %v166_v45  ;;  %3687 = vmatprep.mubr.f32.mxu0 %v100_v46  ;;  %v190_v45 = vld [vmem:[#allocation2 + $0x300] sm:$0xff]  ;;  %v124_v46 = vld [vmem:[#allocation2 + $0xf0] sm:$0xff] }
  0x87   :  { %3945 = vmatpush3.bf16.msra.mxu1 %v3944_v47  ;;  %v191_v47 = vld [vmem:[#allocation2 + $0x308] sm:$0xff] }
  0x88   :  { %3946 = vmatprep.subr.bf16.mxu1 %v4294_v31 }
  0x89   :  { %3787 = vmatmul.mubr.f32.gmra.mrb[6].mxu1 %v167_v50  ;;  %3688 = vmatmul.mubr.f32.gmra.mrb[6].mxu0 %v101_v51  ;;  %v126_v50 = vld [vmem:[#allocation2 + $0x100] sm:$0xff]  ;;  %v193_v51 = vld [vmem:[#allocation2 + $0x318] sm:$0xff] }
  0x8a   :  { %3789 = vmatprep.mubr.f32.mxu1 %v168_v52  ;;  %3690 = vmatprep.mubr.f32.mxu0 %v102_v53  ;;  %v127_v52 = vld [vmem:[#allocation2 + $0x108] sm:$0xff]  ;;  %v194_v53 = vld [vmem:[#allocation2 + $0x320] sm:$0xff] }
  0x8b   :  { %3948 = vmatpush3.bf16.msra.mxu1 %v3947_v54  ;;  %v128_v54 = vld [vmem:[#allocation2 + $0x110] sm:$0xff] }
  0x8c   :  { %3949 = vmatprep.subr.bf16.mxu1 %v4294_v31 }
  0x8d   :  { %3790 = vmatmul.mubr.f32.gmra.mrb[8].mxu1 %v169_v57  ;;  %3691 = vmatmul.mubr.f32.gmra.mrb[8].mxu0 %v103_v58  ;;  %v196_v57 = vld [vmem:[#allocation2 + $0x330] sm:$0xff]  ;;  %v130_v58 = vld [vmem:[#allocation2 + $0x120] sm:$0xff] }
  0x8e   :  { %3792 = vmatprep.mubr.f32.mxu1 %v170_v59  ;;  %3693 = vmatprep.mubr.f32.mxu0 %v104_v60  ;;  %v197_v59 = vld [vmem:[#allocation2 + $0x338] sm:$0xff]  ;;  %v131_v60 = vld [vmem:[#allocation2 + $0x128] sm:$0xff] }
  0x8f   :  { %3951 = vmatpush3.bf16.msra.mxu1 %v3950_v61  ;;  %v198_v61 = vld [vmem:[#allocation2 + $0x340] sm:$0xff] }
  0x90   :  { %3952 = vmatprep.subr.bf16.mxu1 %v4294_v31 }
  0x91   :  { %3793 = vmatmul.mubr.f32.gmra.mrb[10].mxu1 %v171_v0  ;;  %3694 = vmatmul.mubr.f32.gmra.mrb[10].mxu0 %v105_v1  ;;  %v133_v0 = vld [vmem:[#allocation2 + $0x138] sm:$0xff]  ;;  %v200_v1 = vld [vmem:[#allocation2 + $0x350] sm:$0xff] }
  0x92   :  { %3795 = vmatprep.mubr.f32.mxu1 %v172_v2  ;;  %3696 = vmatprep.mubr.f32.mxu0 %v106_v3  ;;  %v134_v2 = vld [vmem:[#allocation2 + $0x140] sm:$0xff]  ;;  %v201_v3 = vld [vmem:[#allocation2 + $0x358] sm:$0xff] }
  0x93   :  { %3954 = vmatpush3.bf16.msra.mxu1 %v3953_v4  ;;  %v135_v4 = vld [vmem:[#allocation2 + $0x148] sm:$0xff] }
  0x94   :  { %3955 = vmatprep.subr.bf16.mxu1 %v4294_v31 }
  0x95   :  { %3796 = vmatmul.mubr.f32.gmra.mrb[12].mxu1 %v173_v7  ;;  %3697 = vmatmul.mubr.f32.gmra.mrb[12].mxu0 %v107_v8  ;;  %v203_v7 = vld [vmem:[#allocation2 + $0x368] sm:$0xff]  ;;  %v137_v8 = vld [vmem:[#allocation2 + $0x158] sm:$0xff] }
  0x96   :  { %3798 = vmatprep.mubr.f32.mxu1 %v174_v9  ;;  %3699 = vmatprep.mubr.f32.mxu0 %v108_v10  ;;  %v204_v9 = vld [vmem:[#allocation2 + $0x370] sm:$0xff]  ;;  %v138_v10 = vld [vmem:[#allocation2 + $0x160] sm:$0xff] }
  0x97   :  { %3957 = vmatpush3.bf16.msra.mxu1 %v3956_v11  ;;  %v205_v11 = vld [vmem:[#allocation2 + $0x378] sm:$0xff] }
  0x98   :  { %3958 = vmatprep.subr.bf16.mxu1 %v4294_v31  ;;  %v183_v31 = vld [vmem:[#allocation2 + $0x2c8] sm:$0xff] }
  0x99   :  { %3799 = vmatmul.mubr.f32.gmra.mrb[14].mxu1 %v175_v14  ;;  %3700 = vmatmul.mubr.f32.gmra.mrb[14].mxu0 %v109_v15  ;;  %v140_v14 = vld [vmem:[#allocation2 + $0x170] sm:$0xff]  ;;  %v207_v15 = vld [vmem:[#allocation2 + $0x388] sm:$0xff] }
  0x9a   :  { %3801 = vmatprep.mubr.f32.mxu1 %v176_v16  ;;  %3702 = vmatprep.mubr.f32.mxu0 %v110_v17  ;;  %v141_v16 = vld [vmem:[#allocation2 + $0x178] sm:$0xff]  ;;  %v208_v17 = vld [vmem:[#allocation2 + $0x390] sm:$0xff] }
  0x9b   :  { %3960 = vmatpush3.bf16.msra.mxu1 %v3959_v18  ;;  %v142_v18 = vld [vmem:[#allocation2 + $0x180] sm:$0xff] }
  0x9d   :  { %3802 = vmatmul.mubr.f32.gmra.mrb[16].mxu1 %v177_v19  ;;  %3703 = vmatmul.mubr.f32.gmra.mrb[16].mxu0 %v111_v20  ;;  %v209_v19 = vld [vmem:[#allocation2 + $0x398] sm:$0xff]  ;;  %v143_v20 = vld [vmem:[#allocation2 + $0x188] sm:$0xff] }
  0x9e   :  { %3804 = vmatprep.mubr.f32.mxu1 %v178_v21  ;;  %3705 = vmatprep.mubr.f32.mxu0 %v112_v22  ;;  %v210_v21 = vld [vmem:[#allocation2 + $0x3a0] sm:$0xff]  ;;  %v144_v22 = vld [vmem:[#allocation2 + $0x190] sm:$0xff] }
  0xa1   :  { %3805 = vmatmul.mubr.f32.gmra.mrb[18].mxu1 %v179_v23  ;;  %3706 = vmatmul.mubr.f32.gmra.mrb[18].mxu0 %v113_v24  ;;  %v211_v23 = vld [vmem:[#allocation2 + $0x3a8] sm:$0xff]  ;;  %v145_v24 = vld [vmem:[#allocation2 + $0x198] sm:$0xff] }
  0xa2   :  { %3807 = vmatprep.mubr.f32.mxu1 %v180_v25  ;;  %3708 = vmatprep.mubr.f32.mxu0 %v114_v26  ;;  %v212_v25 = vld [vmem:[#allocation2 + $0x3b0] sm:$0xff]  ;;  %v146_v26 = vld [vmem:[#allocation2 + $0x1a0] sm:$0xff] }
  0xa5   :  { %3808 = vmatmul.mubr.f32.gmra.mrb[20].mxu1 %v181_v27  ;;  %3709 = vmatmul.mubr.f32.gmra.mrb[20].mxu0 %v115_v28  ;;  %v213_v27 = vld [vmem:[#allocation2 + $0x3b8] sm:$0xff]  ;;  %v147_v28 = vld [vmem:[#allocation2 + $0x1a8] sm:$0xff] }
  0xa6   :  { %3810 = vmatprep.mubr.f32.mxu1 %v182_v29  ;;  %3711 = vmatprep.mubr.f32.mxu0 %v116_v30  ;;  %v214_v29 = vld [vmem:[#allocation2 + $0x3c0] sm:$0xff]  ;;  %v148_v30 = vld [vmem:[#allocation2 + $0x1b0] sm:$0xff] }
  0xa9   :  { %3811 = vmatmul.mubr.f32.gmra.mrb[22].mxu1 %v183_v31  ;;  %3712 = vmatmul.mubr.f32.gmra.mrb[22].mxu0 %v117_v32  ;;  %v215_v31 = vld [vmem:[#allocation2 + $0x3c8] sm:$0xff]  ;;  %v149_v32 = vld [vmem:[#allocation2 + $0x1b8] sm:$0xff] }
  0xaa   :  { %3813 = vmatprep.mubr.f32.mxu1 %v184_v33  ;;  %3714 = vmatprep.mubr.f32.mxu0 %v118_v34  ;;  %v216_v33 = vld [vmem:[#allocation2 + $0x3d0] sm:$0xff]  ;;  %v150_v34 = vld [vmem:[#allocation2 + $0x1c0] sm:$0xff] }
  0xad   :  { %3814 = vmatmul.mubr.f32.gmra.mrb[24].mxu1 %v185_v35  ;;  %3715 = vmatmul.mubr.f32.gmra.mrb[24].mxu0 %v119_v36  ;;  %v217_v35 = vld [vmem:[#allocation2 + $0x3d8] sm:$0xff]  ;;  %v151_v36 = vld [vmem:[#allocation2 + $0x1c8] sm:$0xff] }
  0xae   :  { %3816 = vmatprep.mubr.f32.mxu1 %v186_v37  ;;  %3717 = vmatprep.mubr.f32.mxu0 %v120_v38  ;;  %v218_v37 = vld [vmem:[#allocation2 + $0x3e0] sm:$0xff]  ;;  %v152_v38 = vld [vmem:[#allocation2 + $0x1d0] sm:$0xff] }
  0xb1   :  { %3817 = vmatmul.mubr.f32.gmra.mrb[26].mxu1 %v187_v39  ;;  %3718 = vmatmul.mubr.f32.gmra.mrb[26].mxu0 %v121_v40  ;;  %v219_v39 = vld [vmem:[#allocation2 + $0x3e8] sm:$0xff]  ;;  %v153_v40 = vld [vmem:[#allocation2 + $0x1d8] sm:$0xff] }
  0xb2   :  { %3819 = vmatprep.mubr.f32.mxu1 %v188_v41  ;;  %3720 = vmatprep.mubr.f32.mxu0 %v122_v42  ;;  %v220_v41 = vld [vmem:[#allocation2 + $0x3f0] sm:$0xff]  ;;  %v154_v42 = vld [vmem:[#allocation2 + $0x1e0] sm:$0xff] }
  0xb5   :  { %3820 = vmatmul.mubr.f32.gmra.mrb[28].mxu1 %v189_v43  ;;  %3721 = vmatmul.mubr.f32.gmra.mrb[28].mxu0 %v123_v44  ;;  %v221_v43 = vld [vmem:[#allocation2 + $0x3f8] sm:$0xff]  ;;  %v155_v44 = vld [vmem:[#allocation2 + $0x1e8] sm:$0xff] }
  0xb6   :  { %3822 = vmatprep.mubr.f32.mxu1 %v190_v45  ;;  %3723 = vmatprep.mubr.f32.mxu0 %v124_v46  ;;  %v156_v45 = vld [vmem:[#allocation2 + $0x1f0] sm:$0xff]  ;;  %v4296_v46 = vmov 0.0  }
  0xb9   :  { %3823 = vmatmul.mubr.f32.gmra.mrb[30].mxu1 %v191_v47  ;;  %3724 = vmatmul.mubr.f32.gmra.mrb[30].mxu0 %v125_v48  ;;  %v943_v47 = vld [vmem:[#allocation5] sm:$0xff]  ;;  %v157_v48 = vld [vmem:[#allocation2 + $0x1f8] sm:$0xff] }
  0xba   :  { %3825 = vmatprep.mubr.f32.mxu1 %v192_v49  ;;  %3726 = vmatprep.mubr.f32.mxu0 %v126_v50  ;;  %v158_v49 = vld [vmem:[#allocation2 + $0x200] sm:$0xff]  ;;  %v159_v50 = vld [vmem:[#allocation2 + $0x208] sm:$0xff] }
  0xbd   :  { %3826 = vmatmul.mubr.f32.gmra.mrb[32].mxu1 %v193_v51  ;;  %3727 = vmatmul.mubr.f32.gmra.mrb[32].mxu0 %v127_v52 }
  0xbe   :  { %3828 = vmatprep.mubr.f32.mxu1 %v194_v53  ;;  %3729 = vmatprep.mubr.f32.mxu0 %v128_v54 }
  0xc1   :  { %3829 = vmatmul.mubr.f32.gmra.mrb[34].mxu1 %v195_v55  ;;  %3730 = vmatmul.mubr.f32.gmra.mrb[34].mxu0 %v129_v56 }
  0xc2   :  { %3831 = vmatprep.mubr.f32.mxu1 %v196_v57  ;;  %3732 = vmatprep.mubr.f32.mxu0 %v130_v58 }
  0xc5   :  { %3832 = vmatmul.mubr.f32.gmra.mrb[36].mxu1 %v197_v59  ;;  %3733 = vmatmul.mubr.f32.gmra.mrb[36].mxu0 %v131_v60 }
  0xc6   :  { %3834 = vmatprep.mubr.f32.mxu1 %v198_v61  ;;  %3735 = vmatprep.mubr.f32.mxu0 %v132_v62 }
  0xc9   :  { %3835 = vmatmul.mubr.f32.gmra.mrb[38].mxu1 %v199_v63  ;;  %3736 = vmatmul.mubr.f32.gmra.mrb[38].mxu0 %v133_v0 }
  0xca   :  { %3837 = vmatprep.mubr.f32.mxu1 %v200_v1  ;;  %3738 = vmatprep.mubr.f32.mxu0 %v134_v2 }
  0xcd   :  { %3838 = vmatmul.mubr.f32.gmra.mrb[40].mxu1 %v201_v3  ;;  %3739 = vmatmul.mubr.f32.gmra.mrb[40].mxu0 %v135_v4 }
  0xce   :  { %3840 = vmatprep.mubr.f32.mxu1 %v202_v5  ;;  %3741 = vmatprep.mubr.f32.mxu0 %v136_v6 }
  0xd1   :  { %3841 = vmatmul.mubr.f32.gmra.mrb[42].mxu1 %v203_v7  ;;  %3742 = vmatmul.mubr.f32.gmra.mrb[42].mxu0 %v137_v8 }
  0xd2   :  { %3843 = vmatprep.mubr.f32.mxu1 %v204_v9  ;;  %3744 = vmatprep.mubr.f32.mxu0 %v138_v10 }
  0xd5   :  { %3844 = vmatmul.mubr.f32.gmra.mrb[44].mxu1 %v205_v11  ;;  %3745 = vmatmul.mubr.f32.gmra.mrb[44].mxu0 %v139_v12 }
  0xd6   :  { %3846 = vmatprep.mubr.f32.mxu1 %v206_v13  ;;  %3747 = vmatprep.mubr.f32.mxu0 %v140_v14 }
  0xd9   :  { %3847 = vmatmul.mubr.f32.gmra.mrb[46].mxu1 %v207_v15  ;;  %3748 = vmatmul.mubr.f32.gmra.mrb[46].mxu0 %v141_v16 }
  0xda   :  { %3849 = vmatprep.mubr.f32.mxu1 %v208_v17  ;;  %3750 = vmatprep.mubr.f32.mxu0 %v142_v18 }
  0xdd   :  { %3850 = vmatmul.mubr.f32.gmra.mrb[48].mxu1 %v209_v19  ;;  %3751 = vmatmul.mubr.f32.gmra.mrb[48].mxu0 %v143_v20 }
  0xde   :  { %3852 = vmatprep.mubr.f32.mxu1 %v210_v21  ;;  %3753 = vmatprep.mubr.f32.mxu0 %v144_v22 }
  0xe1   :  { %3853 = vmatmul.mubr.f32.gmra.mrb[50].mxu1 %v211_v23  ;;  %3754 = vmatmul.mubr.f32.gmra.mrb[50].mxu0 %v145_v24 }
  0xe2   :  { %3855 = vmatprep.mubr.f32.mxu1 %v212_v25  ;;  %3756 = vmatprep.mubr.f32.mxu0 %v146_v26 }
  0xe5   :  { %3856 = vmatmul.mubr.f32.gmra.mrb[52].mxu1 %v213_v27  ;;  %3757 = vmatmul.mubr.f32.gmra.mrb[52].mxu0 %v147_v28 }
  0xe6   :  { %3858 = vmatprep.mubr.f32.mxu1 %v214_v29  ;;  %3759 = vmatprep.mubr.f32.mxu0 %v148_v30 }
  0xe9   :  { %3859 = vmatmul.mubr.f32.gmra.mrb[54].mxu1 %v215_v31  ;;  %3760 = vmatmul.mubr.f32.gmra.mrb[54].mxu0 %v149_v32 }
  0xea   :  { %3861 = vmatprep.mubr.f32.mxu1 %v216_v33  ;;  %3762 = vmatprep.mubr.f32.mxu0 %v150_v34 }
  0xed   :  { %3862 = vmatmul.mubr.f32.gmra.mrb[56].mxu1 %v217_v35  ;;  %3763 = vmatmul.mubr.f32.gmra.mrb[56].mxu0 %v151_v36 }
  0xee   :  { %3864 = vmatprep.mubr.f32.mxu1 %v218_v37  ;;  %3765 = vmatprep.mubr.f32.mxu0 %v152_v38 }
  0xf1   :  { %3865 = vmatmul.mubr.f32.gmra.mrb[58].mxu1 %v219_v39  ;;  %3766 = vmatmul.mubr.f32.gmra.mrb[58].mxu0 %v153_v40 }
  0xf2   :  { %3867 = vmatprep.mubr.f32.mxu1 %v220_v41  ;;  %3768 = vmatprep.mubr.f32.mxu0 %v154_v42 }
  0xf5   :  { %3868 = vmatmul.mubr.f32.gmra.mrb[60].mxu1 %v221_v43  ;;  %3769 = vmatmul.mubr.f32.gmra.mrb[60].mxu0 %v155_v44 }
  0xf6   :  { %3902 = vmatprep.mubr.msk.f32.mxu1 %vm4295_vm0, %v4296_v46  ;;  %3771 = vmatprep.mubr.f32.mxu0 %v156_v45  ;;  %vm6194_vm0 = vcmask 1041409  }
  0xf9   :  { %3903 = vmatmul.mubr.f32.vlgmr.msra.gmra.mrb[62].mxu1 %v943_v47  ;;  %3772 = vmatmul.mubr.f32.gmra.mrb[62].mxu0 %v157_v48 }
  0xfa   :  { %3774 = vmatprep.mubr.f32.mxu0 %v158_v49 }
  0xfd   :  { %3775 = vmatmul.mubr.f32.gmra.mrb[64].mxu0 %v159_v50 }
 0x150   :  { %v4422_v51 = vpop.f32.mrb[0].mxu1  ;;  %v4424_v52 = vpop.f32.mrb[0].mxu0 }
 0x151   :  { %6196 = vst [vmem:[#allocation19_spill] sm:$0xff] %v4422_v51  ;;  %v4426_v53 = vpop.f32.mrb[1].mxu1  ;;  %v4428_v54 = vpop.f32.mrb[1].mxu0 }
 0x152   :  { %6197 = vst [vmem:[#allocation20_spill] sm:$0xff] %v4426_v53 }
 0x154   :  { %v4430_v55 = vpop.f32.mrb[2].mxu1  ;;  %v4432_v56 = vpop.f32.mrb[2].mxu0 }
 0x155   :  { %6198 = vst [vmem:[#allocation21_spill] sm:$0xff] %v4430_v55  ;;  %v4434_v57 = vpop.f32.mrb[3].mxu1  ;;  %v4436_v58 = vpop.f32.mrb[3].mxu0 }
 0x156   :  { %6199 = vst [vmem:[#allocation22_spill] sm:$0xff] %v4434_v57 }
 0x158   :  { %v4438_v59 = vpop.f32.mrb[4].mxu1  ;;  %v4440_v60 = vpop.f32.mrb[4].mxu0 }
 0x159   :  { %6200 = vst [vmem:[#allocation23_spill] sm:$0xff] %v4438_v59  ;;  %v4442_v61 = vpop.f32.mrb[5].mxu1  ;;  %v4444_v62 = vpop.f32.mrb[5].mxu0 }
 0x15a   :  { %6201 = vst [vmem:[#allocation24_spill] sm:$0xff] %v4442_v61 }
 0x15c   :  { %v4446_v63 = vpop.f32.mrb[6].mxu1  ;;  %v4448_v0 = vpop.f32.mrb[6].mxu0 }
 0x15d   :  { %6202 = vst [vmem:[#allocation25_spill] sm:$0xff] %v4446_v63  ;;  %v4450_v1 = vpop.f32.mrb[7].mxu1  ;;  %v4452_v2 = vpop.f32.mrb[7].mxu0 }
 0x15e   :  { %6203 = vst [vmem:[#allocation26_spill] sm:$0xff] %v4450_v1 }
 0x160   :  { %v4454_v3 = vpop.f32.mrb[8].mxu1  ;;  %v4456_v4 = vpop.f32.mrb[8].mxu0 }
 0x161   :  { %6204 = vst [vmem:[#allocation27_spill] sm:$0xff] %v4454_v3  ;;  %v4458_v5 = vpop.f32.mrb[9].mxu1  ;;  %v4460_v6 = vpop.f32.mrb[9].mxu0 }
 0x162   :  { %6205 = vst [vmem:[#allocation28_spill] sm:$0xff] %v4458_v5 }
 0x164   :  { %v4462_v7 = vpop.f32.mrb[10].mxu1  ;;  %v4464_v8 = vpop.f32.mrb[10].mxu0 }
 0x165   :  { %6206 = vst [vmem:[#allocation29_spill] sm:$0xff] %v4462_v7  ;;  %v4466_v9 = vpop.f32.mrb[11].mxu1  ;;  %v4468_v10 = vpop.f32.mrb[11].mxu0 }
 0x166   :  { %6207 = vst [vmem:[#allocation30_spill] sm:$0xff] %v4466_v9 }
 0x168   :  { %v4470_v11 = vpop.f32.mrb[12].mxu1  ;;  %v4472_v12 = vpop.f32.mrb[12].mxu0 }
 0x169   :  { %6208 = vst [vmem:[#allocation31_spill] sm:$0xff] %v4470_v11  ;;  %v4474_v13 = vpop.f32.mrb[13].mxu1  ;;  %v4476_v14 = vpop.f32.mrb[13].mxu0 }
 0x16a   :  { %6209 = vst [vmem:[#allocation32_spill] sm:$0xff] %v4474_v13 }
 0x16c   :  { %v4478_v15 = vpop.f32.mrb[14].mxu1  ;;  %v4480_v16 = vpop.f32.mrb[14].mxu0 }
 0x16d   :  { %6210 = vst [vmem:[#allocation33_spill] sm:$0xff] %v4478_v15  ;;  %v4482_v17 = vpop.f32.mrb[15].mxu1  ;;  %v4484_v18 = vpop.f32.mrb[15].mxu0 }
 0x16e   :  { %6211 = vst [vmem:[#allocation34_spill] sm:$0xff] %v4482_v17 }
 0x170   :  { %v4486_v19 = vpop.f32.mrb[16].mxu1  ;;  %v4488_v20 = vpop.f32.mrb[16].mxu0 }
 0x171   :  { %6212 = vst [vmem:[#allocation35_spill] sm:$0xff] %v4486_v19  ;;  %v4490_v21 = vpop.f32.mrb[17].mxu1  ;;  %v4492_v22 = vpop.f32.mrb[17].mxu0 }
 0x172   :  { %6213 = vst [vmem:[#allocation36_spill] sm:$0xff] %v4490_v21 }
 0x174   :  { %v4494_v23 = vpop.f32.mrb[18].mxu1  ;;  %v4496_v24 = vpop.f32.mrb[18].mxu0 }
 0x175   :  { %6214 = vst [vmem:[#allocation37_spill] sm:$0xff] %v4494_v23  ;;  %v4498_v25 = vpop.f32.mrb[19].mxu1  ;;  %v4500_v26 = vpop.f32.mrb[19].mxu0 }
 0x176   :  { %6215 = vst [vmem:[#allocation38_spill] sm:$0xff] %v4498_v25 }
 0x178   :  { %v4502_v27 = vpop.f32.mrb[20].mxu1  ;;  %v4504_v28 = vpop.f32.mrb[20].mxu0 }
 0x179   :  { %6216 = vst [vmem:[#allocation39_spill] sm:$0xff] %v4502_v27  ;;  %v4506_v29 = vpop.f32.mrb[21].mxu1  ;;  %v4508_v30 = vpop.f32.mrb[21].mxu0 }
 0x17a   :  { %6217 = vst [vmem:[#allocation40_spill] sm:$0xff] %v4506_v29 }
 0x17c   :  { %v4510_v31 = vpop.f32.mrb[22].mxu1  ;;  %v4512_v32 = vpop.f32.mrb[22].mxu0 }
 0x17d   :  { %6218 = vst [vmem:[#allocation41_spill] sm:$0xff] %v4510_v31  ;;  %v4514_v33 = vpop.f32.mrb[23].mxu1  ;;  %v4516_v34 = vpop.f32.mrb[23].mxu0 }
 0x17e   :  { %6219 = vst [vmem:[#allocation42_spill] sm:$0xff] %v4514_v33 }
 0x180   :  { %v4518_v35 = vpop.f32.mrb[24].mxu1  ;;  %v4520_v36 = vpop.f32.mrb[24].mxu0 }
 0x181   :  { %6220 = vst [vmem:[#allocation43_spill] sm:$0xff] %v4518_v35  ;;  %v4522_v37 = vpop.f32.mrb[25].mxu1  ;;  %v4524_v38 = vpop.f32.mrb[25].mxu0 }
 0x182   :  { %6221 = vst [vmem:[#allocation44_spill] sm:$0xff] %v4522_v37 }
 0x184   :  { %v4526_v39 = vpop.f32.mrb[26].mxu1  ;;  %v4528_v40 = vpop.f32.mrb[26].mxu0 }
 0x185   :  { %6222 = vst [vmem:[#allocation45_spill] sm:$0xff] %v4526_v39  ;;  %v4530_v41 = vpop.f32.mrb[27].mxu1  ;;  %v4532_v42 = vpop.f32.mrb[27].mxu0 }
 0x186   :  { %6223 = vst [vmem:[#allocation46_spill] sm:$0xff] %v4530_v41 }
 0x188   :  { %v4534_v43 = vpop.f32.mrb[28].mxu1  ;;  %v4536_v44 = vpop.f32.mrb[28].mxu0 }
 0x189   :  { %6224 = vst [vmem:[#allocation47_spill] sm:$0xff] %v4534_v43  ;;  %v4538_v45 = vpop.f32.mrb[29].mxu1  ;;  %v4540_v46 = vpop.f32.mrb[29].mxu0 }
 0x18a   :  { %6225 = vst [vmem:[#allocation48_spill] sm:$0xff] %v4538_v45 }
 0x18c   :  { %v4542_v47 = vpop.f32.mrb[30].mxu1  ;;  %v4544_v48 = vpop.f32.mrb[30].mxu0 }
 0x18d   :  { %6226 = vst [vmem:[#allocation49_spill] sm:$0xff] %v4542_v47  ;;  %v4546_v49 = vpop.f32.mrb[31].mxu1  ;;  %v4548_v50 = vpop.f32.mrb[31].mxu0 }
 0x18e   :  { %6227 = vst [vmem:[#allocation50_spill] sm:$0xff] %v4546_v49 }
 0x190   :  { %v4550_v29 = vpop.f32.mrb[32].mxu1  ;;  %v4552_v39 = vpop.f32.mrb[32].mxu0 }
 0x191   :  { %6228 = vst [vmem:[#allocation51_spill] sm:$0xff] %v4550_v29  ;;  %v4554_v41 = vpop.f32.mrb[33].mxu1  ;;  %v4556_v43 = vpop.f32.mrb[33].mxu0 }
 0x192   :  { %6229 = vst [vmem:[#allocation52_spill] sm:$0xff] %v4554_v41 }
 0x194   :  { %v4558_v25 = vpop.f32.mrb[34].mxu1  ;;  %v4560_v45 = vpop.f32.mrb[34].mxu0 }
 0x195   :  { %6230 = vst [vmem:[#allocation53_spill] sm:$0xff] %v4558_v25  ;;  %v4562_v35 = vpop.f32.mrb[35].mxu1  ;;  %v4564_v19 = vpop.f32.mrb[35].mxu0 }
 0x196   :  { %6231 = vst [vmem:[#allocation54_spill] sm:$0xff] %v4562_v35 }
 0x198   :  { %v4566_v37 = vpop.f32.mrb[36].mxu1  ;;  %v4568_v49 = vpop.f32.mrb[36].mxu0 }
 0x199   :  { %6232 = vst [vmem:[#allocation55_spill] sm:$0xff] %v4566_v37  ;;  %v4570_v31 = vpop.f32.mrb[37].mxu1  ;;  %v4572_v15 = vpop.f32.mrb[37].mxu0 }
 0x19a   :  { %6233 = vst [vmem:[#allocation56_spill] sm:$0xff] %v4570_v31 }
 0x19c   :  { %v4574_v33 = vpop.f32.mrb[38].mxu1  ;;  %v4576_v27 = vpop.f32.mrb[38].mxu0 }
 0x19d   :  { %6234 = vst [vmem:[#allocation57_spill] sm:$0xff] %v4574_v33  ;;  %6235 = vst [vmem:[#allocation58_spill] sm:$0xff] %v4576_v27  ;;  %v4578_v23 = vpop.f32.mrb[39].mxu1  ;;  %v4580_v25 = vpop.f32.mrb[39].mxu0 }
 0x19e   :  { %6236 = vst [vmem:[#allocation59_spill] sm:$0xff] %v4578_v23  ;;  %6237 = vst [vmem:[#allocation60_spill] sm:$0xff] %v4580_v25 }
 0x1a0   :  { %v4582_v29 = vpop.f32.mrb[40].mxu1  ;;  %v4584_v35 = vpop.f32.mrb[40].mxu0 }
 0x1a1   :  { %6238 = vst [vmem:[#allocation61_spill] sm:$0xff] %v4582_v29  ;;  %6239 = vst [vmem:[#allocation62_spill] sm:$0xff] %v4584_v35  ;;  %v4586_v41 = vpop.f32.mrb[41].mxu1  ;;  %v4588_v37 = vpop.f32.mrb[41].mxu0 }
 0x1a2   :  { %6240 = vst [vmem:[#allocation63_spill] sm:$0xff] %v4586_v41  ;;  %6241 = vst [vmem:[#allocation64_spill] sm:$0xff] %v4588_v37 }
 0x1a4   :  { %v4590_v47 = vpop.f32.mrb[42].mxu1  ;;  %v4592_v31 = vpop.f32.mrb[42].mxu0 }
 0x1a5   :  { %6242 = vst [vmem:[#allocation65_spill] sm:$0xff] %v4590_v47  ;;  %6243 = vst [vmem:[#allocation66_spill] sm:$0xff] %v4592_v31  ;;  %v4594_v21 = vpop.f32.mrb[43].mxu1  ;;  %v4596_v33 = vpop.f32.mrb[43].mxu0 }
 0x1a6   :  { %6244 = vst [vmem:[#allocation67_spill] sm:$0xff] %v4594_v21  ;;  %6245 = vst [vmem:[#allocation68_spill] sm:$0xff] %v4596_v33 }
 0x1a8   :  { %v4598_v17 = vpop.f32.mrb[44].mxu1  ;;  %v4600_v23 = vpop.f32.mrb[44].mxu0 }
 0x1a9   :  { %6246 = vst [vmem:[#allocation69_spill] sm:$0xff] %v4598_v17  ;;  %6247 = vst [vmem:[#allocation70_spill] sm:$0xff] %v4600_v23  ;;  %v4602_v11 = vpop.f32.mrb[45].mxu1  ;;  %v4604_v29 = vpop.f32.mrb[45].mxu0 }
 0x1aa   :  { %6248 = vst [vmem:[#allocation71_spill] sm:$0xff] %v4602_v11  ;;  %6249 = vst [vmem:[#allocation72_spill] sm:$0xff] %v4604_v29 }
 0x1ac   :  { %v4606_v13 = vpop.f32.mrb[46].mxu1  ;;  %v4608_v41 = vpop.f32.mrb[46].mxu0 }
 0x1ad   :  { %6250 = vst [vmem:[#allocation73_spill] sm:$0xff] %v4606_v13  ;;  %6251 = vst [vmem:[#allocation74_spill] sm:$0xff] %v4608_v41  ;;  %v4610_v7 = vpop.f32.mrb[47].mxu1  ;;  %v4612_v47 = vpop.f32.mrb[47].mxu0 }
 0x1ae   :  { %6252 = vst [vmem:[#allocation75_spill] sm:$0xff] %v4610_v7  ;;  %6253 = vst [vmem:[#allocation76_spill] sm:$0xff] %v4612_v47 }
 0x1b0   :  { %v4614_v9 = vpop.f32.mrb[48].mxu1  ;;  %v4616_v21 = vpop.f32.mrb[48].mxu0 }
 0x1b1   :  { %6254 = vst [vmem:[#allocation77_spill] sm:$0xff] %v4614_v9  ;;  %6255 = vst [vmem:[#allocation78_spill] sm:$0xff] %v4616_v21  ;;  %v4618_v3 = vpop.f32.mrb[49].mxu1  ;;  %v4620_v17 = vpop.f32.mrb[49].mxu0 }
 0x1b2   :  { %6256 = vst [vmem:[#allocation79_spill] sm:$0xff] %v4618_v3  ;;  %6257 = vst [vmem:[#allocation80_spill] sm:$0xff] %v4620_v17 }
 0x1b4   :  { %v4622_v5 = vpop.f32.mrb[50].mxu1  ;;  %v4624_v11 = vpop.f32.mrb[50].mxu0 }
 0x1b5   :  { %6258 = vst [vmem:[#allocation81_spill] sm:$0xff] %v4622_v5  ;;  %6259 = vst [vmem:[#allocation82_spill] sm:$0xff] %v4624_v11  ;;  %v4626_v63 = vpop.f32.mrb[51].mxu1  ;;  %v4628_v13 = vpop.f32.mrb[51].mxu0 }
 0x1b6   :  { %6260 = vst [vmem:[#allocation83_spill] sm:$0xff] %v4626_v63  ;;  %6261 = vst [vmem:[#allocation84_spill] sm:$0xff] %v4628_v13 }
 0x1b8   :  { %v4630_v1 = vpop.f32.mrb[52].mxu1  ;;  %v4632_v7 = vpop.f32.mrb[52].mxu0 }
 0x1b9   :  { %6262 = vst [vmem:[#allocation85_spill] sm:$0xff] %v4630_v1  ;;  %6263 = vst [vmem:[#allocation86_spill] sm:$0xff] %v4632_v7  ;;  %v4634_v61 = vpop.f32.mrb[53].mxu1  ;;  %v4636_v9 = vpop.f32.mrb[53].mxu0  ;;  %v4297_v1 = vmov 1966171168   ;;  %v6185_v7 = vlaneseq }
 0x1ba   :  { %6264 = vst [vmem:[#allocation87_spill] sm:$0xff] %v4634_v61  ;;  %6265 = vst [vmem:[#allocation88_spill] sm:$0xff] %v4636_v9  ;;  %v1040_v57 = vunpack.c.l.s4 %v4297_v1  ;;  %v3483_v1 = vld [vmem:[%s6181_s5] ss:$0 sm:$0xff] }
 0x1bc   :  { %v4638_v21 = vpop.f32.mrb[54].mxu1  ;;  %v4640_v3 = vpop.f32.mrb[54].mxu0  ;;  %v1041_v53 = vunpack.c.0.s8 %v1040_v57 }
 0x1bd   :  { %6266 = vst [vmem:[#allocation89_spill] sm:$0xff] %v4638_v21  ;;  %6267 = vst [vmem:[#allocation90_spill] sm:$0xff] %v4640_v3  ;;  %v4642_v17 = vpop.f32.mrb[55].mxu1  ;;  %v574_v5 = vpop.f32.mrb[55].mxu0  ;;  %v4653_v3 = vshrl.u32 %v6185_v7, 7 }
 0x1be   :  { %6268 = vst [vmem:[#allocation91_spill] sm:$0xff] %v4642_v17 }
 0x1bf   :  { %6273 = vst [vmem:[#allocation96_spill] sm:$0xff] %v4653_v3  ;;  %v4664_v33 = vsub.s32 0, %v4653_v3 }
 0x1c0   :  { %v4644_v11 = vpop.f32.mrb[56].mxu1  ;;  %v3764_v63 = vpop.f32.mrb[56].mxu0 }
 0x1c1   :  { %6269 = vst [vmem:[#allocation92_spill] sm:$0xff] %v4644_v11  ;;  %v4646_v59 = vpop.f32.mrb[57].mxu1  ;;  %v584_v13 = vpop.f32.mrb[57].mxu0  ;;  %6276 = vst [vmem:[#allocation99_spill] sm:$0xff] %v4664_v33 }
 0x1c2   :  { %6270 = vst [vmem:[#allocation93_spill] sm:$0xff] %v4646_v59 }
 0x1c4   :  { %v4648_v55 = vpop.f32.mrb[58].mxu1  ;;  %v3767_v61 = vpop.f32.mrb[58].mxu0 }
 0x1c5   :  { %6271 = vst [vmem:[#allocation94_spill] sm:$0xff] %v4648_v55  ;;  %v4650_v9 = vpop.f32.mrb[59].mxu1  ;;  %v594_v21 = vpop.f32.mrb[59].mxu0  ;;  %v1044_v55 = vsub.s32 %v1041_v53, %v4653_v3 }
 0x1c6   :  { %6272 = vst [vmem:[#allocation95_spill] sm:$0xff] %v4650_v9 }
 0x1c8   :  { %v4655_v17 = vpop.f32.mrb[60].mxu1  ;;  %v3770_v11 = vpop.f32.mrb[60].mxu0 }
 0x1c9   :  { %6274 = vst [vmem:[#allocation97_spill] sm:$0xff] %v4655_v17  ;;  %v4657_v51 = vpop.f32.mrb[61].mxu1  ;;  %v604_v59 = vpop.f32.mrb[61].mxu0 }
 0x1ca   :  { %6275 = vst [vmem:[#allocation98_spill] sm:$0xff] %v4657_v51 }
 0x1cc   :  { %v1033_v47 = vpop.f32.mrb[62].mxu1  ;;  %v3773_v41 = vpop.f32.mrb[62].mxu0 }
 0x1cd   :  { %v1034_v9 = vadd.f32 %v3483_v1, %v1033_v47  ;;  %v3904_v29 = vpop.f32.mrb[63].mxu1  ;;  %v614_v57 = vpop.f32.mrb[63].mxu0 }
 0x1cf   :  { %v1038_v23 = vcombine.high %v1034_v9, %v1034_v9  ;;  %v1045_v7 = vrot.slane %v1034_v9, %v1044_v55 }
 0x1d0   :  { %v3776_v17 = vpop.f32.mrb[64].mxu0 }
 0x1d1   :  { %v1052_v31 = vrot.slane %v1038_v23, %v1044_v55  ;;  %v1053_v51 = vcombine.high %v1045_v7, %v1045_v7  ;;  %v4666_v37 = vrot.slane %v1045_v7, %v1044_v55  ;;  %v624_v35 = vpop.f32.mrb[65].mxu0 }
 0x1d3   :  { %v1054_v25 = vcombine.high %v1052_v31, %v1052_v31  ;;  %v4668_v27 = vrot.slane %v1052_v31, %v1044_v55  ;;  %v1075_v53 = vrot.slane %v1053_v51, %v1044_v55  ;;  %v1090_v47 = vrot.slane %v4666_v37, %v4664_v33 }
 0x1d5   :  { %6277 = vst [vmem:[#allocation100_spill] sm:$0xff] %v4668_v27  ;;  %v4672_v29 = vrot.slane %v1054_v25, %v1044_v55  ;;  %v1085_v1 = vcombine.high %v1075_v53, %v1075_v53  ;;  %v4676_v9 = vrot.slane %v4668_v27, %v4664_v33  ;;  %v1127_v23 = vadd.f32 %v1090_v47, %v4428_v54 }
 0x1d6   :  { %v1129_v7 = vadd.f32 %v1090_v47, %v4436_v58 }
 0x1d7   :  { %v4681_v3 = vrot.slane %v1085_v1, %v4664_v33  ;;  %v4684_v31 = vadd.f32 %v3776_v17, %v4676_v9  ;;  %v4687_v51 = vadd.f32 %v4676_v9, %v624_v35  ;;  %v1255_v55 = vmax.f32 %v1127_v23, 0.0 }
 0x1d8   :  { %v1257_v58 = vmax.f32 %v1129_v7, 0.0  ;;  %v1132_v7 = vadd.f32 %v4440_v60, %v1090_v47 }
 0x1d9   :  { %v4690_v25 = vadd.f32 %v4681_v3, %v574_v5  ;;  %v4693_v27 = vadd.f32 %v3764_v63, %v4681_v3  ;;  %v4696_v54 = vadd.f32 %v4681_v3, %v584_v13  ;;  %v4699_v1 = vadd.f32 %v3767_v61, %v4681_v3  ;;  %v4716_v63 = vld [vmem:[%s6182_s6] ss:$0 sm:$0xff] }
 0x1da   :  { %v4702_v17 = vadd.f32 %v4681_v3, %v594_v21  ;;  %v4705_v35 = vadd.f32 %v3770_v11, %v4681_v3  ;;  %v4708_v23 = vadd.f32 %v4681_v3, %v604_v59  ;;  %v4711_v5 = vadd.f32 %v3773_v41, %v4681_v3 }
 0x1db   :  { %6278 = vst [vmem:[#allocation101_spill] sm:$0xff] %v4690_v25  ;;  %6279 = vst [vmem:[#allocation102_spill] sm:$0xff] %v4696_v54  ;;  %v4719_v61 = vadd.f32 %v4681_v3, %v614_v57  ;;  %v1390_v13 = vmul.f32 %v4716_v63, %v1255_v55  ;;  %v1392_v21 = vmul.f32 %v4716_v63, %v1257_v58 }
 0x1dc   :  { %6280 = vst [vmem:[#allocation103_spill] sm:$0xff] %v4702_v17  ;;  %6281 = vst [vmem:[#allocation104_spill] sm:$0xff] %v4708_v23  ;;  %v1128_v11 = vadd.f32 %v4424_v52, %v1090_v47  ;;  %v1130_v59 = vadd.f32 %v4432_v56, %v1090_v47  ;;  %v1131_v41 = vadd.f32 %v1090_v47, %v4444_v62 }
 0x1dd   :  { %6282 = vst [vmem:[#allocation105_spill] sm:$0xff] %v4719_v61  ;;  %v1134_v23 = vadd.f32 %v4448_v0, %v1090_v47  ;;  %1518 = vadd.xlane.f32.xlu0 %v1390_v13  ;;  %1522 = vadd.xlane.f32.xlu1 %v1392_v21  ;;  %v1133_v57 = vadd.f32 %v1090_v47, %v4452_v2  ;;  %v1260_v61 = vmax.f32 %v1132_v7, 0.0 }
 0x1de   :  { %v1256_v17 = vmax.f32 %v1128_v11, 0.0  ;;  %v1258_v54 = vmax.f32 %v1130_v59, 0.0  ;;  %v1136_v55 = vadd.f32 %v4456_v4, %v1090_v47  ;;  %v1135_v58 = vadd.f32 %v1090_v47, %v4460_v6 }
 0x1df   :  { %v1094_v52 = vrot.slane %v1075_v53, %v4664_v33  ;;  %v1259_v62 = vmax.f32 %v1131_v41, 0.0  ;;  %v1262_v0 = vmax.f32 %v1134_v23, 0.0  ;;  %v1261_v13 = vmax.f32 %v1133_v57, 0.0 }
 0x1e0   :  { %v1391_v56 = vmul.f32 %v4716_v63, %v1256_v17  ;;  %v1393_v60 = vmul.f32 %v4716_v63, %v1258_v54  ;;  %v1138_v21 = vadd.f32 %v4464_v8, %v1090_v47  ;;  %v1395_v2 = vmul.f32 %v4716_v63, %v1260_v61 }
 0x1e1   :  { %v1137_v4 = vadd.f32 %v1090_v47, %v4468_v10  ;;  %v1140_v11 = vadd.f32 %v4472_v12, %v1090_v47  ;;  %v1139_v6 = vadd.f32 %v1090_v47, %v4476_v14  ;;  %v1394_v53 = vmul.f32 %v4716_v63, %v1259_v62 }
 0x1e2   :  { %1520 = vadd.xlane.f32.xlu0 %v1391_v56  ;;  %1524 = vadd.xlane.f32.xlu1 %v1393_v60  ;;  %v1142_v17 = vadd.f32 %v4480_v16, %v1090_v47  ;;  %v1141_v54 = vadd.f32 %v1090_v47, %v4484_v18  ;;  %v1144_v59 = vadd.f32 %v4488_v20, %v1094_v52  ;;  %v1264_v10 = vmax.f32 %v1136_v55, 0.0 }
 0x1e3   :  { %v1143_v23 = vadd.f32 %v1094_v52, %v4492_v22  ;;  %v1083_v8 = vcombine.high %v4666_v37, %v4666_v37  ;;  %v1397_v12 = vmul.f32 %v4716_v63, %v1262_v0  ;;  %v1396_v14 = vmul.f32 %v4716_v63, %v1261_v13 }
 0x1e4   :  { %v1263_v61 = vmax.f32 %v1135_v58, 0.0  ;;  %v4749_v7 = vadd.f32 %v4496_v24, %v1094_v52  ;;  %v4752_v16 = vadd.f32 %v1094_v52, %v4500_v26  ;;  %v4755_v18 = vadd.f32 %v4504_v28, %v1094_v52 }
 0x1e5   :  { %v4758_v20 = vadd.f32 %v1094_v52, %v4508_v30  ;;  %v1266_v22 = vmax.f32 %v1138_v21, 0.0  ;;  %v4761_v37 = vadd.f32 %v4512_v32, %v1094_v52  ;;  %v4764_v47 = vadd.f32 %v1094_v52, %v4516_v34 }
 0x1e6   :  { %1528 = vadd.xlane.f32.xlu1 %v1395_v2  ;;  %1526 = vadd.xlane.f32.xlu0 %v1394_v53  ;;  %v4767_v24 = vadd.f32 %v4520_v36, %v1094_v52  ;;  %v1265_v26 = vmax.f32 %v1137_v4, 0.0  ;;  %v4770_v41 = vadd.f32 %v1094_v52, %v4524_v38  ;;  %v1098_v28 = vrot.slane %v1083_v8, %v4664_v33  ;;  %v6283_v4 = vld [vmem:[#allocation58_spill] sm:$0xff] }
 0x1e7   :  { %v1399_v30 = vmul.f32 %v4716_v63, %v1264_v10  ;;  %v1398_v57 = vmul.f32 %v4716_v63, %v1263_v61  ;;  %v1401_v32 = vmul.f32 %v4716_v63, %v1266_v22  ;;  %v1268_v55 = vmax.f32 %v1140_v11, 0.0  ;;  %v6287_v10 = vld [vmem:[#allocation66_spill] sm:$0xff] }
 0x1e8   :  { %v1267_v34 = vmax.f32 %v1139_v6, 0.0  ;;  %v1400_v58 = vmul.f32 %v4716_v63, %v1265_v26  ;;  %v4778_v36 = vadd.f32 %v4528_v40, %v1094_v52  ;;  %v4781_v38 = vadd.f32 %v1094_v52, %v4532_v42  ;;  %v6284_v6 = vld [vmem:[#allocation60_spill] sm:$0xff]  ;;  %v6289_v22 = vld [vmem:[#allocation70_spill] sm:$0xff] }
 0x1e9   :  { %v4784_v56 = vadd.f32 %v4536_v44, %v1094_v52  ;;  %v4787_v60 = vadd.f32 %v1094_v52, %v4540_v46  ;;  %v4790_v62 = vadd.f32 %v4544_v48, %v1094_v52  ;;  %v4793_v0 = vadd.f32 %v1094_v52, %v4548_v50 }
 0x1ea   :  { %1532 = vadd.xlane.f32.xlu1 %v1397_v12  ;;  %1530 = vadd.xlane.f32.xlu0 %v1396_v14  ;;  %v4796_v13 = vadd.f32 %v4552_v39, %v1098_v28  ;;  %v4799_v40 = vadd.f32 %v1098_v28, %v4556_v43  ;;  %v1403_v42 = vmul.f32 %v4716_v63, %v1268_v55  ;;  %v1270_v46 = vmax.f32 %v1142_v17, 0.0  ;;  %v6288_v14 = vld [vmem:[#allocation68_spill] sm:$0xff]  ;;  %v6291_v55 = vld [vmem:[#allocation74_spill] sm:$0xff] }
 0x1eb   :  { %v1402_v44 = vmul.f32 %v4716_v63, %v1267_v34  ;;  %v1269_v21 = vmax.f32 %v1141_v54, 0.0  ;;  %v1272_v2 = vmax.f32 %v1144_v59, 0.0  ;;  %v4804_v48 = vadd.f32 %v4560_v45, %v1098_v28  ;;  %v6285_v45 = vld [vmem:[#allocation62_spill] sm:$0xff]  ;;  %v6286_v54 = vld [vmem:[#allocation64_spill] sm:$0xff] }
 0x1ec   :  { %v4807_v50 = vadd.f32 %v1098_v28, %v4564_v19  ;;  %v4810_v39 = vadd.f32 %v4568_v49, %v1098_v28  ;;  %v1271_v43 = vmax.f32 %v1143_v23, 0.0  ;;  %v4813_v52 = vadd.f32 %v1098_v28, %v4572_v15 }
 0x1ed   :  { %v4816_v11 = vadd.f32 %v6283_v4, %v1098_v28  ;;  %v4819_v53 = vadd.f32 %v1098_v28, %v6284_v6  ;;  %v4822_v17 = vadd.f32 %v6285_v45, %v1098_v28  ;;  %v1405_v19 = vmul.f32 %v4716_v63, %v1270_v46  ;;  %v6296_v45 = vld [vmem:[#allocation22_spill] sm:$0xff] }
 0x1ee   :  { %1536 = vadd.xlane.f32.xlu1 %v1399_v30  ;;  %1534 = vadd.xlane.f32.xlu0 %v1398_v57  ;;  %v1404_v49 = vmul.f32 %v4716_v63, %v1269_v21  ;;  %v4827_v59 = vadd.f32 %v1098_v28, %v6286_v54  ;;  %v1407_v15 = vmul.f32 %v4716_v63, %v1272_v2  ;;  %v1274_v8 = vmax.f32 %v4749_v7, 0.0  ;;  %v6290_v57 = vld [vmem:[#allocation72_spill] sm:$0xff] }
 0x1ef   :  { %v1406_v23 = vmul.f32 %v4716_v63, %v1271_v43  ;;  %v4833_v12 = vadd.f32 %v6287_v10, %v1098_v28  ;;  %v4836_v61 = vadd.f32 %v1098_v28, %v6288_v14  ;;  %v4839_v26 = vadd.f32 %v6289_v22, %v1098_v28  ;;  %v6294_v43 = vld [vmem:[#allocation20_spill] sm:$0xff] }
 0x1f0   :  { %v1273_v30 = vmax.f32 %v4752_v16, 0.0  ;;  %v4846_v34 = vadd.f32 %v6291_v55, %v1098_v28  ;;  %v1276_v7 = vmax.f32 %v4755_v18, 0.0  ;;  %v1409_v21 = vmul.f32 %v4716_v63, %v1274_v8  ;;  %v6298_v54 = vld [vmem:[#allocation24_spill] sm:$0xff]  ;;  %v6300_v8 = vld [vmem:[#allocation26_spill] sm:$0xff] }
 0x1f1   :  { %v1275_v2 = vmax.f32 %v4758_v20, 0.0  ;;  %v4861_v4 = vadd.f32 %v4676_v9, %v6294_v43  ;;  %v4869_v18 = vadd.f32 %v4676_v9, %v6296_v45  ;;  %v4877_v20 = vadd.f32 %v4676_v9, %v6298_v54  ;;  %v6301_v55 = vld [vmem:[#allocation82_spill] sm:$0xff] }
 0x1f2   :  { %1540 = vadd.xlane.f32.xlu1 %v1401_v32  ;;  %1538 = vadd.xlane.f32.xlu0 %v1400_v58  ;;  %v4843_v32 = vadd.f32 %v1098_v28, %v6290_v57  ;;  %v6292_v58 = vld [vmem:[#allocation76_spill] sm:$0xff]  ;;  %v1408_v16 = vmul.f32 %v4716_v63, %v1273_v30  ;;  %v4885_v10 = vadd.f32 %v4676_v9, %v6300_v8  ;;  %v1278_v14 = vmax.f32 %v4761_v37, 0.0  ;;  %v6302_v37 = vld [vmem:[#allocation25_spill] sm:$0xff] }
 0x1f3   :  { %v1411_v22 = vmul.f32 %v4716_v63, %v1276_v7  ;;  %v1410_v30 = vmul.f32 %v4716_v63, %v1275_v2  ;;  %v1277_v57 = vmax.f32 %v4764_v47, 0.0  ;;  %v4900_v43 = vadd.f32 %v6302_v37, %v4676_v9  ;;  %v6303_v7 = vld [vmem:[#allocation86_spill] sm:$0xff]  ;;  %v6304_v47 = vld [vmem:[#allocation28_spill] sm:$0xff] }
 0x1f4   :  { %v4904_v2 = vadd.f32 %v6303_v7, %v4681_v3 }
 0x1f5   :  { %v1412_v45 = vmul.f32 %v4716_v63, %v1277_v57  ;;  %v6309_v57 = vld [vmem:[#allocation29_spill] sm:$0xff] }
 0x1f6   :  { %1544 = vadd.xlane.f32.xlu1 %v1403_v42  ;;  %1542 = vadd.xlane.f32.xlu0 %v1402_v44  ;;  %v4849_v42 = vadd.f32 %v1098_v28, %v6292_v58  ;;  %v6293_v44 = vld [vmem:[#allocation19_spill] sm:$0xff]  ;;  %v6295_v28 = vld [vmem:[#allocation21_spill] sm:$0xff]  ;;  %v4893_v58 = vadd.f32 %v6301_v55, %v4681_v3  ;;  %v4931_v55 = vadd.f32 %v6309_v57, %v4676_v9 }
 0x1f7   :  { %v4854_v46 = vadd.f32 %v6293_v44, %v4676_v9  ;;  %v4865_v6 = vadd.f32 %v6295_v28, %v4676_v9  ;;  %v1280_v44 = vmax.f32 %v4767_v24, 0.0  ;;  %v4908_v28 = vadd.f32 %v4676_v9, %v6304_v47  ;;  %v6305_v24 = vld [vmem:[#allocation90_spill] sm:$0xff] }
 0x1f8   :  { %v1282_v47 = vmax.f32 %v4778_v36, 0.0  ;;  %v6313_v36 = vld [vmem:[#allocation80_spill] sm:$0xff] }
 0x1f9   :  { %v1415_v37 = vmul.f32 %v4716_v63, %v1280_v44 }
 0x1fa   :  { %1548 = vadd.xlane.f32.xlu1 %v1405_v19  ;;  %1546 = vadd.xlane.f32.xlu0 %v1404_v49  ;;  %v6297_v19 = vld [vmem:[#allocation23_spill] sm:$0xff] }
 0x1fb   :  { %v4873_v49 = vadd.f32 %v6297_v19, %v4676_v9  ;;  %v4913_v19 = vadd.f32 %v6305_v24, %v4681_v3  ;;  %v1281_v24 = vmax.f32 %v4781_v38, 0.0  ;;  %v4954_v38 = vadd.f32 %v4681_v3, %v6313_v36  ;;  %v6315_v36 = vld [vmem:[#allocation84_spill] sm:$0xff] }
 0x1fc   :  { %v4968_v25 = vadd.f32 %v4681_v3, %v6315_v36  ;;  %v1287_v36 = vmax.f32 %v4799_v40, 0.0  ;;  %v6321_v40 = vld [vmem:[#allocation53_spill] sm:$0xff] }
 0x1fe   :  { %1552 = vadd.xlane.f32.xlu1 %v1407_v15  ;;  %1550 = vadd.xlane.f32.xlu0 %v1406_v23  ;;  %v6299_v15 = vld [vmem:[#allocation78_spill] sm:$0xff] }
 0x1ff   :  { %v4881_v23 = vadd.f32 %v6299_v15, %v4681_v3  ;;  %v6307_v15 = vld [vmem:[#allocation30_spill] sm:$0xff] }
 0x200   :  { %v4921_v8 = vadd.f32 %v4676_v9, %v6307_v15 }
 0x202   :  { %1556 = vadd.xlane.f32.xlu1 %v1409_v21  ;;  %1554 = vadd.xlane.f32.xlu0 %v1408_v16  ;;  %v1279_v21 = vmax.f32 %v4770_v41, 0.0  ;;  %v1413_v16 = vmul.f32 %v4716_v63, %v1278_v14  ;;  %v6306_v41 = vld [vmem:[#allocation27_spill] sm:$0xff]  ;;  %v4925_v14 = vrot.slane %v4672_v29, %v4664_v33 }
 0x203   :  { %v4917_v54 = vadd.f32 %v6306_v41, %v4676_v9  ;;  %v6310_v41 = vld [vmem:[#allocation32_spill] sm:$0xff] }
 0x204   :  { %v1414_v7 = vmul.f32 %v4716_v63, %v1279_v21  ;;  %v4939_v15 = vadd.f32 %v4676_v9, %v6310_v41  ;;  %v1417_v21 = vmul.f32 %v4716_v63, %v1282_v47  ;;  %v1416_v41 = vmul.f32 %v4716_v63, %v1281_v24 }
 0x206   :  { %1560 = vadd.xlane.f32.xlu1 %v1411_v22  ;;  %1558 = vadd.xlane.f32.xlu0 %v1410_v30  ;;  %v6308_v22 = vld [vmem:[#allocation100_spill] sm:$0xff] }
 0x207   :  { %v1084_v30 = vcombine.high %v6308_v22, %v6308_v22  ;;  %v6312_v22 = vld [vmem:[#allocation34_spill] sm:$0xff] }
 0x208   :  { %v4947_v57 = vadd.f32 %v4925_v14, %v6312_v22  ;;  %v1285_v22 = vmax.f32 %v4793_v0, 0.0 }
 0x209   :  { %v4950_v44 = vrot.slane %v1084_v30, %v4664_v33  ;;  %v1286_v30 = vmax.f32 %v4790_v62, 0.0  ;;  %v6318_v62 = vld [vmem:[#allocation52_spill] sm:$0xff] }
 0x20a   :  { %1564 = vadd.xlane.f32.xlu1 %v1413_v16  ;;  %1562 = vadd.xlane.f32.xlu0 %v1412_v45  ;;  %v6311_v16 = vld [vmem:[#allocation31_spill] sm:$0xff] }
 0x20b   :  { %v4943_v45 = vadd.f32 %v6311_v16, %v4676_v9  ;;  %v1284_v9 = vmax.f32 %v4784_v56, 0.0  ;;  %v4982_v0 = vadd.f32 %v4950_v44, %v6318_v62 }
 0x20d   :  { %v1419_v47 = vmul.f32 %v4716_v63, %v1284_v9  ;;  %v1420_v9 = vmul.f32 %v4716_v63, %v1285_v22  ;;  %v6320_v22 = vld [vmem:[#allocation37_spill] sm:$0xff] }
 0x20e   :  { %1568 = vadd.xlane.f32.xlu1 %v1415_v37  ;;  %1566 = vadd.xlane.f32.xlu0 %v1414_v7  ;;  %v1283_v37 = vmax.f32 %v4787_v60, 0.0  ;;  %v6314_v7 = vld [vmem:[#allocation36_spill] sm:$0xff]  ;;  %v6316_v60 = vld [vmem:[#allocation49_spill] sm:$0xff]  ;;  %v4998_v62 = vadd.f32 %v6320_v22, %v4925_v14 }
 0x20f   :  { %v4962_v16 = vadd.f32 %v4925_v14, %v6314_v7  ;;  %v4974_v24 = vadd.f32 %v6316_v60, %v4950_v44  ;;  %v1421_v7 = vmul.f32 %v4716_v63, %v1286_v30  ;;  %v6319_v60 = vld [vmem:[#allocation51_spill] sm:$0xff]  ;;  %v1289_v30 = vmax.f32 %v4807_v50, 0.0 }
 0x210   :  { %v1418_v56 = vmul.f32 %v4716_v63, %v1283_v37  ;;  %v1288_v37 = vmax.f32 %v4796_v13, 0.0  ;;  %v1292_v13 = vmax.f32 %v4810_v39, 0.0  ;;  %v1294_v50 = vmax.f32 %v4816_v11, 0.0  ;;  %v6326_v11 = vld [vmem:[#allocation41_spill] sm:$0xff] }
 0x212   :  { %1572 = vadd.xlane.f32.xlu1 %v1417_v21  ;;  %1570 = vadd.xlane.f32.xlu0 %v1416_v41  ;;  %v6317_v21 = vld [vmem:[#allocation88_spill] sm:$0xff]  ;;  %v1427_v39 = vmul.f32 %v4716_v63, %v1292_v13 }
 0x213   :  { %v4978_v41 = vadd.f32 %v4681_v3, %v6317_v21  ;;  %v4990_v3 = vadd.f32 %v6319_v60, %v4950_v44  ;;  %v1290_v21 = vmax.f32 %v4804_v48, 0.0  ;;  %v1291_v48 = vmax.f32 %v4813_v52, 0.0  ;;  %v6329_v13 = vld [vmem:[#allocation44_spill] sm:$0xff] }
 0x215   :  { %v1426_v52 = vmul.f32 %v4716_v63, %v1291_v48  ;;  %v6333_v48 = vld [vmem:[#allocation43_spill] sm:$0xff] }
 0x216   :  { %1576 = vadd.xlane.f32.xlu1 %v1419_v47  ;;  %1574 = vadd.xlane.f32.xlu0 %v1418_v56  ;;  %v1423_v47 = vmul.f32 %v4716_v63, %v1288_v37  ;;  %v1422_v56 = vmul.f32 %v4716_v63, %v1287_v36  ;;  %v1424_v37 = vmul.f32 %v4716_v63, %v1289_v30  ;;  %v6322_v36 = vld [vmem:[#allocation39_spill] sm:$0xff] }
 0x217   :  { %v5011_v60 = vadd.f32 %v6322_v36, %v4925_v14  ;;  %v1086_v36 = vcombine.high %v4672_v29, %v4672_v29 }
 0x21a   :  { %1580 = vadd.xlane.f32.xlu1 %v1421_v7  ;;  %1578 = vadd.xlane.f32.xlu0 %v1420_v9  ;;  %v5003_v7 = vadd.f32 %v6321_v40, %v4950_v44  ;;  %v1425_v9 = vmul.f32 %v4716_v63, %v1290_v21  ;;  %v6324_v21 = vld [vmem:[#allocation33_spill] sm:$0xff]  ;;  %v5026_v40 = vadd.f32 %v6326_v11, %v4925_v14  ;;  %v1296_v11 = vmax.f32 %v4822_v17, 0.0 }
 0x21b   :  { %v5021_v30 = vadd.f32 %v6324_v21, %v4925_v14 }
 0x21d   :  { %6325 = vst [vmem:[#allocation58_spill] sm:$0xff] %v5021_v30  ;;  %v5044_v30 = vadd.f32 %v6333_v48, %v4925_v14 }
 0x21e   :  { %1584 = vadd.xlane.f32.xlu1 %v1423_v47  ;;  %1582 = vadd.xlane.f32.xlu0 %v1422_v56  ;;  %v1293_v47 = vmax.f32 %v4819_v53, 0.0  ;;  %v6323_v56 = vld [vmem:[#allocation42_spill] sm:$0xff]  ;;  %v5034_v53 = vadd.f32 %v4925_v14, %v6329_v13 }
 0x21f   :  { %v5017_v22 = vadd.f32 %v4925_v14, %v6323_v56  ;;  %v6331_v56 = vld [vmem:[#allocation35_spill] sm:$0xff] }
 0x220   :  { %6330 = vst [vmem:[#allocation62_spill] sm:$0xff] %v5034_v53  ;;  %v5040_v21 = vadd.f32 %v6331_v56, %v4925_v14  ;;  %v1428_v13 = vmul.f32 %v4716_v63, %v1293_v47  ;;  %v1295_v53 = vmax.f32 %v4827_v59, 0.0  ;;  %v5055_v56 = vrot.slane %v1086_v36, %v4664_v33  ;;  %v6339_v47 = vld [vmem:[#allocation40_spill] sm:$0xff] }
 0x221   :  { %v1297_v33 = vmax.f32 %v4836_v61, 0.0 }
 0x222   :  { %1588 = vadd.xlane.f32.xlu1 %v1425_v9  ;;  %1586 = vadd.xlane.f32.xlu0 %v1424_v37  ;;  %v6327_v9 = vld [vmem:[#allocation50_spill] sm:$0xff]  ;;  %6332 = vst [vmem:[#allocation64_spill] sm:$0xff] %v5040_v21 }
 0x223   :  { %v5030_v37 = vadd.f32 %v4950_v44, %v6327_v9  ;;  %v1429_v9 = vmul.f32 %v4716_v63, %v1294_v50  ;;  %v6335_v21 = vld [vmem:[#allocation46_spill] sm:$0xff]  ;;  %v6337_v50 = vld [vmem:[#allocation45_spill] sm:$0xff] }
 0x224   :  { %v5059_v48 = vadd.f32 %v4925_v14, %v6335_v21  ;;  %v5067_v59 = vadd.f32 %v6337_v50, %v4925_v14  ;;  %v1298_v21 = vmax.f32 %v4833_v12, 0.0  ;;  %v1430_v50 = vmul.f32 %v4716_v63, %v1295_v53  ;;  %v6347_v53 = vld [vmem:[#allocation77_spill] sm:$0xff] }
 0x225   :  { %6328 = vst [vmem:[#allocation60_spill] sm:$0xff] %v5030_v37  ;;  %v6334_v37 = vld [vmem:[#allocation38_spill] sm:$0xff]  ;;  %v1299_v12 = vmax.f32 %v4843_v32, 0.0  ;;  %v6352_v32 = vld [vmem:[#allocation57_spill] sm:$0xff] }
 0x226   :  { %1592 = vadd.xlane.f32.xlu1 %v1427_v39  ;;  %1590 = vadd.xlane.f32.xlu0 %v1426_v52  ;;  %v5052_v29 = vadd.f32 %v4925_v14, %v6334_v37  ;;  %v6336_v39 = vld [vmem:[#allocation54_spill] sm:$0xff]  ;;  %6338 = vst [vmem:[#allocation66_spill] sm:$0xff] %v5067_v59  ;;  %v5071_v52 = vadd.f32 %v4925_v14, %v6339_v47  ;;  %v6340_v37 = vld [vmem:[#allocation48_spill] sm:$0xff]  ;;  %v6344_v59 = vld [vmem:[#allocation73_spill] sm:$0xff] }
 0x227   :  { %v5063_v17 = vadd.f32 %v4950_v44, %v6336_v39  ;;  %v5075_v36 = vadd.f32 %v4925_v14, %v6340_v37  ;;  %v6342_v39 = vld [vmem:[#allocation56_spill] sm:$0xff]  ;;  %v5087_v47 = vadd.f32 %v6344_v59, %v5055_v56  ;;  %v1300_v37 = vmax.f32 %v4839_v26, 0.0  ;;  %v6348_v59 = vld [vmem:[#allocation59_spill] sm:$0xff] }
 0x228   :  { %v1433_v61 = vmul.f32 %v4716_v63, %v1298_v21  ;;  %v5111_v21 = vadd.f32 %v6352_v32, %v4950_v44  ;;  %v1302_v32 = vmax.f32 %v4846_v34, 0.0  ;;  %v6363_v34 = vld [vmem:[#allocation85_spill] sm:$0xff] }
 0x229   :  { %6341 = vst [vmem:[#allocation68_spill] sm:$0xff] %v5075_v36  ;;  %v1432_v36 = vmul.f32 %v4716_v63, %v1297_v33  ;;  %v6354_v33 = vld [vmem:[#allocation69_spill] sm:$0xff] }
 0x22a   :  { %1596 = vadd.xlane.f32.xlu1 %v1429_v9  ;;  %1594 = vadd.xlane.f32.xlu0 %v1428_v13  ;;  %v5081_v9 = vadd.f32 %v4950_v44, %v6342_v39  ;;  %v1431_v13 = vmul.f32 %v4716_v63, %v1296_v11  ;;  %v6345_v39 = vld [vmem:[#allocation55_spill] sm:$0xff]  ;;  %v5099_v11 = vadd.f32 %v6347_v53, %v5055_v56 }
 0x22b   :  { %6353 = vst [vmem:[#allocation19_spill] sm:$0xff] %v5111_v21  ;;  %v1301_v21 = vmax.f32 %v4849_v42, 0.0  ;;  %v6365_v42 = vld [vmem:[#allocation65_spill] sm:$0xff] }
 0x22c   :  { %6343 = vst [vmem:[#allocation70_spill] sm:$0xff] %v5081_v9  ;;  %v5095_v9 = vadd.f32 %v6345_v39, %v4950_v44  ;;  %v5115_v39 = vadd.f32 %v6354_v33, %v4950_v44  ;;  %v6358_v33 = vld [vmem:[#allocation61_spill] sm:$0xff] }
 0x22e   :  { %1600 = vadd.xlane.f32.xlu1 %v1431_v13  ;;  %1598 = vadd.xlane.f32.xlu0 %v1430_v50  ;;  %6346 = vst [vmem:[#allocation72_spill] sm:$0xff] %v5095_v9  ;;  %v5103_v13 = vadd.f32 %v4950_v44, %v6348_v59  ;;  %v6350_v50 = vld [vmem:[#allocation71_spill] sm:$0xff]  ;;  %6355 = vst [vmem:[#allocation20_spill] sm:$0xff] %v5115_v39  ;;  %v6357_v59 = vld [vmem:[#allocation81_spill] sm:$0xff]  ;;  %v5131_v39 = vadd.f32 %v6358_v33, %v4950_v44 }
 0x22f   :  { %v5107_v26 = vadd.f32 %v4950_v44, %v6350_v50  ;;  %v6356_v9 = vld [vmem:[#allocation63_spill] sm:$0xff]  ;;  %v1435_v50 = vmul.f32 %v4716_v63, %v1300_v37  ;;  %v5148_v33 = vadd.f32 %v6365_v42, %v4950_v44  ;;  %v1322_v42 = vmax.f32 %v4854_v46, 0.0 }
 0x230   :  { %6349 = vst [vmem:[#allocation74_spill] sm:$0xff] %v5103_v13  ;;  %v5119_v53 = vadd.f32 %v4950_v44, %v6356_v9  ;;  %v5123_v13 = vadd.f32 %v6357_v59, %v5055_v56  ;;  %6359 = vst [vmem:[#allocation21_spill] sm:$0xff] %v5131_v39  ;;  %v6360_v9 = vld [vmem:[#allocation87_spill] sm:$0xff]  ;;  %v1319_v39 = vmax.f32 %v4687_v51, 0.0 }
 0x231   :  { %6351 = vst [vmem:[#allocation76_spill] sm:$0xff] %v5107_v26  ;;  %v1434_v26 = vmul.f32 %v4716_v63, %v1299_v12  ;;  %v6362_v59 = vld [vmem:[#allocation67_spill] sm:$0xff]  ;;  %v5144_v12 = vadd.f32 %v6363_v34, %v5055_v56  ;;  %v6369_v34 = vld [vmem:[#allocation89_spill] sm:$0xff] }
 0x232   :  { %1604 = vadd.xlane.f32.xlu1 %v1433_v61  ;;  %1602 = vadd.xlane.f32.xlu0 %v1432_v36  ;;  %v5135_v61 = vadd.f32 %v5055_v56, %v6360_v9  ;;  %v1320_v36 = vmax.f32 %v4684_v31, 0.0  ;;  %v5140_v37 = vadd.f32 %v4950_v44, %v6362_v59  ;;  %v6366_v9 = vld [vmem:[#allocation91_spill] sm:$0xff]  ;;  %v1437_v31 = vmul.f32 %v4716_v63, %v1302_v32 }
 0x233   :  { %6364 = vst [vmem:[#allocation23_spill] sm:$0xff] %v5144_v12  ;;  %v5163_v12 = vadd.f32 %v6369_v34, %v5055_v56  ;;  %v1454_v44 = vmul.f32 %v4716_v63, %v1319_v39  ;;  %v6373_v34 = vld [vmem:[#allocation83_spill] sm:$0xff] }
 0x234   :  { %6361 = vst [vmem:[#allocation22_spill] sm:$0xff] %v5135_v61  ;;  %v5153_v61 = vadd.f32 %v5055_v56, %v6366_v9  ;;  %v1455_v51 = vmul.f32 %v4716_v63, %v1320_v36  ;;  %v6370_v9 = vld [vmem:[#allocation79_spill] sm:$0xff]  ;;  %v6375_v36 = vld [vmem:[#allocation92_spill] sm:$0xff] }
 0x235   :  { %v5170_v32 = vadd.f32 %v5055_v56, %v6370_v9  ;;  %v6377_v46 = vld [vmem:[#allocation47_spill] sm:$0xff] }
 0x236   :  { %1608 = vadd.xlane.f32.xlu1 %v1435_v50  ;;  %1606 = vadd.xlane.f32.xlu0 %v1434_v26  ;;  %v1436_v26 = vmul.f32 %v4716_v63, %v1301_v21  ;;  %v6367_v50 = vld [vmem:[#allocation75_spill] sm:$0xff]  ;;  %v6372_v21 = vld [vmem:[#allocation93_spill] sm:$0xff]  ;;  %v5187_v39 = vadd.f32 %v6377_v46, %v4925_v14  ;;  %v1324_v14 = vmax.f32 %v4865_v6, 0.0  ;;  %v1323_v46 = vmax.f32 %v4869_v18, 0.0 }
 0x237   :  { %v5159_v59 = vadd.f32 %v5055_v56, %v6367_v50  ;;  %6371 = vst [vmem:[#allocation78_spill] sm:$0xff] %v5170_v32  ;;  %v5174_v50 = vadd.f32 %v5055_v56, %v6372_v21  ;;  %v6378_v9 = vld [vmem:[#allocation95_spill] sm:$0xff] }
 0x238   :  { %v5191_v32 = vadd.f32 %v5055_v56, %v6378_v9  ;;  %v6381_v9 = vld [vmem:[#allocation98_spill] sm:$0xff] }
 0x239   :  { %6368 = vst [vmem:[#allocation24_spill] sm:$0xff] %v5159_v59  ;;  %v1321_v59 = vmax.f32 %v4861_v4, 0.0  ;;  %v6379_v4 = vld [vmem:[#allocation94_spill] sm:$0xff] }
 0x23a   :  { %1612 = vadd.xlane.f32.xlu1 %v1437_v31  ;;  %1610 = vadd.xlane.f32.xlu0 %v1436_v26  ;;  %v5179_v31 = vadd.f32 %v5055_v56, %v6373_v34  ;;  %v5183_v26 = vadd.f32 %v6375_v36, %v5055_v56  ;;  %v5195_v21 = vadd.f32 %v6379_v4, %v5055_v56  ;;  %v6380_v34 = vld [vmem:[#allocation97_spill] sm:$0xff] }
 0x23b   :  { %v1457_v36 = vmul.f32 %v4716_v63, %v1322_v42  ;;  %v1458_v4 = vmul.f32 %v4716_v63, %v1323_v46  ;;  %v1325_v42 = vmax.f32 %v4877_v20, 0.0  ;;  %v1328_v20 = vmax.f32 %v4900_v43, 0.0 }
 0x23c   :  { %6374 = vst [vmem:[#allocation26_spill] sm:$0xff] %v5179_v31  ;;  %6376 = vst [vmem:[#allocation82_spill] sm:$0xff] %v5183_v26  ;;  %v5199_v31 = vadd.f32 %v6380_v34, %v5055_v56  ;;  %v1456_v26 = vmul.f32 %v4716_v63, %v1321_v59  ;;  %v1326_v34 = vmax.f32 %v4873_v49, 0.0  ;;  %v1304_v59 = vmax.f32 %v4881_v23, 0.0 }
 0x23d   :  { %v1460_v18 = vmul.f32 %v4716_v63, %v1325_v42  ;;  %v1306_v49 = vmax.f32 %v4893_v58, 0.0  ;;  %v1463_v46 = vmul.f32 %v4716_v63, %v1328_v20  ;;  %v1308_v23 = vmax.f32 %v4904_v2, 0.0 }
 0x23e   :  { %1648 = vadd.xlane.f32.xlu1 %v1455_v51  ;;  %1646 = vadd.xlane.f32.xlu0 %v1454_v44  ;;  %v5207_v51 = vadd.f32 %v5055_v56, %v6381_v9  ;;  %v1459_v44 = vmul.f32 %v4716_v63, %v1324_v14  ;;  %v1461_v6 = vmul.f32 %v4716_v63, %v1326_v34  ;;  %v1327_v56 = vmax.f32 %v4885_v10, 0.0 }
 0x23f   :  { %v1441_v14 = vmul.f32 %v4716_v63, %v1306_v49  ;;  %v1329_v10 = vmax.f32 %v4908_v28, 0.0  ;;  %v1443_v9 = vmul.f32 %v4716_v63, %v1308_v23  ;;  %v1310_v58 = vmax.f32 %v4913_v19, 0.0  ;;  %v6383_v23 = vld [vmem:[#allocation96_spill] sm:$0xff] }
 0x240   :  { %v1330_v43 = vmax.f32 %v4917_v54, 0.0  ;;  %v1331_v28 = vmax.f32 %v4921_v8, 0.0  ;;  %v1314_v42 = vmax.f32 %v4699_v1, 0.0  ;;  %v1332_v54 = vmax.f32 %v4931_v55, 0.0 }
 0x241   :  { %v1445_v34 = vmul.f32 %v4716_v63, %v1310_v58  ;;  %v1333_v8 = vmax.f32 %v4939_v15, 0.0  ;;  %v1318_v1 = vmax.f32 %v4711_v5, 0.0  ;;  %v1334_v55 = vmax.f32 %v4943_v45, 0.0 }
 0x242   :  { %1652 = vadd.xlane.f32.xlu1 %v1457_v36  ;;  %1650 = vadd.xlane.f32.xlu0 %v1456_v26  ;;  %v1439_v26 = vmul.f32 %v4716_v63, %v1304_v59  ;;  %v1462_v36 = vmul.f32 %v4716_v63, %v1327_v56  ;;  %v1465_v2 = vmul.f32 %v4716_v63, %v1330_v43  ;;  %v1303_v5 = vmax.f32 %v4954_v38, 0.0 }
 0x243   :  { %v1466_v19 = vmul.f32 %v4716_v63, %v1331_v28  ;;  %v1467_v59 = vmul.f32 %v4716_v63, %v1332_v54  ;;  %v1453_v20 = vmul.f32 %v4716_v63, %v1318_v1  ;;  %v1469_v15 = vmul.f32 %v4716_v63, %v1334_v55  ;;  %v6384_v28 = vld [vmem:[#allocation101_spill] sm:$0xff] }
 0x246   :  { %1656 = vadd.xlane.f32.xlu1 %v1459_v44  ;;  %1654 = vadd.xlane.f32.xlu0 %v1458_v4  ;;  %v1464_v44 = vmul.f32 %v4716_v63, %v1329_v10  ;;  %v1312_v4 = vmax.f32 %v4693_v27, 0.0  ;;  %v1316_v27 = vmax.f32 %v4705_v35, 0.0 }
 0x248   :  { %v1451_v56 = vmul.f32 %v4716_v63, %v1316_v27 }
 0x24a   :  { %1660 = vadd.xlane.f32.xlu1 %v1461_v6  ;;  %1658 = vadd.xlane.f32.xlu0 %v1460_v18  ;;  %v1447_v6 = vmul.f32 %v4716_v63, %v1312_v4  ;;  %v1449_v18 = vmul.f32 %v4716_v63, %v1314_v42  ;;  %v1438_v4 = vmul.f32 %v4716_v63, %v1303_v5  ;;  %v1309_v42 = vmax.f32 %v6384_v28, 0.0 }
 0x24e   :  { %1616 = vadd.xlane.f32.xlu1 %v1439_v26  ;;  %1662 = vadd.xlane.f32.xlu0 %v1462_v36  ;;  %v1468_v26 = vmul.f32 %v4716_v63, %v1333_v8  ;;  %v6382_v36 = vlaneseq }
 0x250   :  { %v5246_v49 = vand.u32 127, %v6382_v36 }
 0x252   :  { %1620 = vadd.xlane.f32.xlu1 %v1441_v14  ;;  %1664 = vadd.xlane.f32.xlu0 %v1463_v46  ;;  %v1913_v35 = vadd.s32 4294967288, %v5246_v49  ;;  %v1335_v14 = vmax.f32 %v4947_v57, 0.0  ;;  %v1920_v46 = vadd.s32 4294967280, %v5246_v49  ;;  %v1927_v45 = vadd.s32 4294967272, %v5246_v49 }
 0x253   :  { %v5257_v10 = vsub.s32 %v5246_v49, %v6383_v23  ;;  %v1941_v43 = vadd.s32 4294967256, %v5246_v49  ;;  %v1934_v57 = vadd.s32 4294967264, %v5246_v49  ;;  %v1955_v54 = vadd.s32 4294967240, %v5246_v49 }
 0x254   :  { %v5260_v58 = vsub.s32 %v1913_v35, %v6383_v23  ;;  %v1470_v38 = vmul.f32 %v4716_v63, %v1335_v14  ;;  %v5275_v27 = vsub.s32 %v1927_v45, %v6383_v23 }
 0x255   :  { %v5282_v8 = vsub.s32 %v1934_v57, %v6383_v23  ;;  %v5292_v35 = vsub.s32 %v1955_v54, %v6383_v23  ;;  %v1444_v54 = vmul.f32 %v4716_v63, %v1309_v42 }
 0x256   :  { %1624 = vadd.xlane.f32.xlu1 %v1443_v9  ;;  %1666 = vadd.xlane.f32.xlu0 %v1464_v44 }
 0x25a   :  { %1628 = vadd.xlane.f32.xlu1 %v1445_v34  ;;  %1668 = vadd.xlane.f32.xlu0 %v1465_v2  ;;  %v1337_v34 = vmax.f32 %v4962_v16, 0.0  ;;  %v1305_v2 = vmax.f32 %v4968_v25, 0.0  ;;  %v1307_v16 = vmax.f32 %v4978_v41, 0.0 }
 0x25c   :  { %v1440_v55 = vmul.f32 %v4716_v63, %v1305_v2  ;;  %v1442_v14 = vmul.f32 %v4716_v63, %v1307_v16  ;;  %v6385_v2 = vld [vmem:[#allocation102_spill] sm:$0xff] }
 0x25d   :  { %v1311_v28 = vmax.f32 %v6385_v2, 0.0  ;;  %v1340_v2 = vmax.f32 %v4998_v62, 0.0  ;;  %v2011_v62 = vadd.s32 4294967176, %v5246_v49 }
 0x25e   :  { %1632 = vadd.xlane.f32.xlu1 %v1447_v6  ;;  %1670 = vadd.xlane.f32.xlu0 %v1466_v19  ;;  %v5270_v6 = vsub.s32 %v1920_v46, %v6383_v23  ;;  %v1352_v19 = vmax.f32 %v4974_v24, 0.0  ;;  %v1948_v24 = vadd.s32 4294967248, %v5246_v49 }
 0x260   :  { %v1487_v36 = vmul.f32 %v4716_v63, %v1352_v19 }
 0x262   :  { %1636 = vadd.xlane.f32.xlu1 %v1449_v18  ;;  %1672 = vadd.xlane.f32.xlu0 %v1467_v59  ;;  %v5279_v59 = vsub.s32 %v1941_v43, %v6383_v23  ;;  %v1969_v43 = vadd.s32 4294967224, %v5246_v49 }
 0x266   :  { %1640 = vadd.xlane.f32.xlu1 %v1451_v56  ;;  %1674 = vadd.xlane.f32.xlu0 %v1468_v26  ;;  %v1472_v26 = vmul.f32 %v4716_v63, %v1337_v34  ;;  %v1962_v34 = vadd.s32 4294967232, %v5246_v49 }
 0x268   :  { %v5320_v42 = vsub.s32 %v1962_v34, %v6383_v23 }
 0x26a   :  { %1644 = vadd.xlane.f32.xlu1 %v1453_v20  ;;  %1676 = vadd.xlane.f32.xlu0 %v1469_v15  ;;  %v1519_v9 = vpop.xlane.xlu0 %1518  ;;  %v1523_v44 = vpop.xlane.xlu1 %1522 }
 0x26b   :  { %v1912_v1 = vrot.slane %v1519_v9, %v5257_v10  ;;  %v1924_v41 = vrot.slane %v1523_v44, %v5270_v6  ;;  %v5299_v9 = vsub.s32 %v1948_v24, %v6383_v23  ;;  %v1353_v44 = vmax.f32 %v4982_v0, 0.0 }
 0x26c   :  { %v1983_v0 = vadd.s32 4294967208, %v5246_v49 }
 0x26d   :  { %v1488_v24 = vmul.f32 %v4716_v63, %v1353_v44 }
 0x26e   :  { %1678 = vadd.xlane.f32.xlu1 %v1470_v38  ;;  %1614 = vadd.xlane.f32.xlu0 %v1438_v4 }
 0x26f   :  { %v1521_v18 = vpop.xlane.xlu0 %1520  ;;  %v1525_v25 = vpop.xlane.xlu1 %1524 }
 0x270   :  { %v1917_v56 = vrot.slane %v1521_v18, %v5260_v58  ;;  %v1931_v15 = vrot.slane %v1525_v25, %v5275_v27 }
 0x272   :  { %v1919_v20 = vsel %vm1918_vm1, %v1917_v56, %v1912_v1  ;;  %1682 = vadd.xlane.f32.xlu1 %v1472_v26  ;;  %1618 = vadd.xlane.f32.xlu0 %v1440_v55  ;;  %v5314_v1 = vsub.s32 %v1969_v43, %v6383_v23  ;;  %v1354_v56 = vmax.f32 %v4990_v3, 0.0  ;;  %v1997_v3 = vadd.s32 4294967192, %v5246_v49 }
 0x273   :  { %v1926_v5 = vsel %vm1925_vm2, %v1924_v41, %v1919_v20  ;;  %v1529_v46 = vpop.xlane.xlu1 %1528  ;;  %v1527_v45 = vpop.xlane.xlu0 %1526  ;;  %v1976_v41 = vadd.s32 4294967216, %v5246_v49  ;;  %v5330_v43 = vsub.s32 %v1983_v0, %v6383_v23 }
 0x274   :  { %v1933_v57 = vsel %vm1932_vm3, %v1931_v15, %v1926_v5  ;;  %v1945_v38 = vrot.slane %v1529_v46, %v5279_v59  ;;  %v1938_v4 = vrot.slane %v1527_v45, %v5282_v8  ;;  %v1489_v44 = vmul.f32 %v4716_v63, %v1354_v56 }
 0x275   :  { %v5336_v34 = vsub.s32 %v1976_v41, %v6383_v23 }
 0x276   :  { %v1940_v19 = vsel %vm1939_vm4, %v1938_v4, %v1933_v57  ;;  %1712 = vadd.xlane.f32.xlu1 %v1487_v36  ;;  %1622 = vadd.xlane.f32.xlu0 %v1442_v14  ;;  %v6386_v36 = vld [vmem:[#allocation103_spill] sm:$0xff]  ;;  %v1446_v14 = vmul.f32 %v4716_v63, %v1311_v28  ;;  %v1990_v57 = vadd.s32 4294967200, %v5246_v49  ;;  %v6387_v28 = vld [vmem:[#allocation104_spill] sm:$0xff] }
 0x277   :  { %v1533_v16 = vpop.xlane.xlu1 %1532  ;;  %v1947_v18 = vsel %vm1946_vm5, %v1945_v38, %v1940_v19  ;;  %v1531_v25 = vpop.xlane.xlu0 %1530  ;;  %v1313_v20 = vmax.f32 %v6386_v36, 0.0  ;;  %v1315_v19 = vmax.f32 %v6387_v28, 0.0  ;;  %v1475_v36 = vmul.f32 %v4716_v63, %v1340_v2 }
 0x278   :  { %v1959_v26 = vrot.slane %v1533_v16, %v5292_v35  ;;  %v1952_v55 = vrot.slane %v1531_v25, %v5299_v9  ;;  %v5343_v16 = vsub.s32 %v1997_v3, %v6383_v23  ;;  %v5347_v56 = vsub.s32 %v1990_v57, %v6383_v23 }
 0x279   :  { %v1448_v0 = vmul.f32 %v4716_v63, %v1313_v20  ;;  %v1356_v20 = vmax.f32 %v5003_v7, 0.0  ;;  %v1342_v2 = vmax.f32 %v5011_v60, 0.0 }
 0x27a   :  { %v1954_v15 = vsel %vm1953_vm6, %v1952_v55, %v1947_v18  ;;  %1714 = vadd.xlane.f32.xlu1 %v1488_v24  ;;  %1626 = vadd.xlane.f32.xlu0 %v1444_v54 }
 0x27b   :  { %v1537_v5 = vpop.xlane.xlu1 %1536  ;;  %v1961_v46 = vsel %vm1960_vm7, %v1959_v26, %v1954_v15  ;;  %v1535_v45 = vpop.xlane.xlu0 %1534  ;;  %v2004_v26 = vadd.s32 4294967184, %v5246_v49  ;;  %v6388_v15 = vld [vmem:[#allocation105_spill] sm:$0xff]  ;;  %v1477_v60 = vmul.f32 %v4716_v63, %v1342_v2  ;;  %v6392_v2 = vld [vmem:[#allocation62_spill] sm:$0xff] }
 0x27c   :  { %v1973_v38 = vrot.slane %v1537_v5, %v5314_v1  ;;  %v1966_v4 = vrot.slane %v1535_v45, %v5320_v42  ;;  %v1450_v5 = vmul.f32 %v4716_v63, %v1315_v19 }
 0x27d   :  { %v5363_v57 = vsub.s32 %v2004_v26, %v6383_v23  ;;  %v6390_v26 = vld [vmem:[#allocation58_spill] sm:$0xff] }
 0x27e   :  { %v1968_v54 = vsel %vm1967_vm8, %v1966_v4, %v1961_v46  ;;  %1716 = vadd.xlane.f32.xlu1 %v1489_v44  ;;  %1630 = vadd.xlane.f32.xlu0 %v1446_v14  ;;  %v1317_v14 = vmax.f32 %v6388_v15, 0.0  ;;  %v5360_v44 = vsub.s32 %v2011_v62, %v6383_v23  ;;  %v1491_v4 = vmul.f32 %v4716_v63, %v1356_v20 }
 0x27f   :  { %v1541_v18 = vpop.xlane.xlu1 %1540  ;;  %v1975_v25 = vsel %vm1974_vm9, %v1973_v38, %v1968_v54  ;;  %v1539_v24 = vpop.xlane.xlu0 %1538 }
 0x280   :  { %v1987_v55 = vrot.slane %v1541_v18, %v5330_v43  ;;  %v1980_v41 = vrot.slane %v1539_v24, %v5336_v34  ;;  %6389 = vst [vmem:[#allocation25_spill] sm:$0xff] %v5360_v44  ;;  %v1452_v18 = vmul.f32 %v4716_v63, %v1317_v14  ;;  %v1344_v14 = vmax.f32 %v5026_v40, 0.0 }
 0x282   :  { %v1982_v3 = vsel %vm6195_vm10, %v1980_v41, %v1975_v25  ;;  %1688 = vadd.xlane.f32.xlu1 %v1475_v36  ;;  %1634 = vadd.xlane.f32.xlu0 %v1448_v0  ;;  %v1343_v25 = vmax.f32 %v5017_v22, 0.0  ;;  %v6391_v22 = vld [vmem:[#allocation60_spill] sm:$0xff] }
 0x283   :  { %v1545_v46 = vpop.xlane.xlu1 %1544  ;;  %v1989_v49 = vsel %vm1988_vm11, %v1987_v55, %v1982_v3  ;;  %v1543_v45 = vpop.xlane.xlu0 %1542  ;;  %v1336_v55 = vmax.f32 %v6390_v26, 0.0  ;;  %v1351_v3 = vmax.f32 %v6391_v22, 0.0 }
 0x284   :  { %v2001_v7 = vrot.slane %v1545_v46, %v5343_v16  ;;  %v1994_v38 = vrot.slane %v1543_v45, %v5347_v56 }
 0x285   :  { %v1471_v45 = vmul.f32 %v4716_v63, %v1336_v55 }
 0x286   :  { %v1996_v28 = vsel %vm1995_vm12, %v1994_v38, %v1989_v49  ;;  %1720 = vadd.xlane.f32.xlu1 %v1491_v4  ;;  %1638 = vadd.xlane.f32.xlu0 %v1450_v5  ;;  %v1478_v49 = vmul.f32 %v4716_v63, %v1343_v25  ;;  %v1486_v25 = vmul.f32 %v4716_v63, %v1351_v3  ;;  %v1339_v3 = vmax.f32 %v5052_v29, 0.0 }
 0x287   :  { %v1549_v19 = vpop.xlane.xlu1 %1548  ;;  %v2003_v54 = vsel %vm2002_vm13, %v2001_v7, %v1996_v28  ;;  %v1547_v0 = vpop.xlane.xlu0 %1546  ;;  %v1345_v28 = vmax.f32 %v6392_v2, 0.0  ;;  %v1355_v29 = vmax.f32 %v5063_v17, 0.0 }
 0x288   :  { %v2015_v24 = vrot.slane %v1549_v19, %v5360_v44  ;;  %v2008_v62 = vrot.slane %v1547_v0, %v5363_v57  ;;  %v6393_v19 = vld [vmem:[#allocation64_spill] sm:$0xff] }
 0x289   :  { %v1338_v40 = vmax.f32 %v6393_v19, 0.0  ;;  %v1480_v55 = vmul.f32 %v4716_v63, %v1345_v28 }
 0x28a   :  { %v2010_v41 = vsel %vm2009_vm14, %v2008_v62, %v2003_v54  ;;  %1692 = vadd.xlane.f32.xlu1 %v1477_v60  ;;  %1642 = vadd.xlane.f32.xlu0 %v1452_v18  ;;  %v1479_v18 = vmul.f32 %v4716_v63, %v1344_v14  ;;  %v5403_v14 = vld [vmem:[%s6182_s6] ss:$0 sm:$0xff]  ;;  %s4298_s6 = smov [#allocation12]  }
 0x28b   :  { %v5379_v36 = vsel %vm2016_vm15, %v2015_v24, %v2010_v41  ;;  %v1553_v20 = vpop.xlane.xlu1 %1552  ;;  %v1551_v15 = vpop.xlane.xlu0 %1550  ;;  %v1346_v41 = vmax.f32 %v5044_v30, 0.0  ;;  %v1473_v22 = vmul.f32 %v5403_v14, %v1338_v40  ;;  %v1490_v17 = vmul.f32 %v5403_v14, %v1355_v29  ;;  %s3468_s22 = sshll.u32 %s4298_s6, 4  ;;  %s3469_s22 = int_to_ptr.vmem [resolvable:$true] %s3468_s22 }
 0x28c   :  { %v2025_v5 = vrot.slane %v1553_v20, %v5260_v58  ;;  %v2021_v46 = vrot.slane %v1551_v15, %v5257_v10  ;;  %s4233_s23 = scalar_lea.vmem %s3469_s22, 128  ;;  %p4238_p13 = scmp.lt.s32.totalorder %s3469_s22, %s3469_s22 }
 0x28d   :  { %p4234_p12 = scmp.ne.s32.totalorder %s3469_s22, %s4233_s23  ;;  %p4239_p0 = scmp.lt.s32.totalorder %s4233_s23, %s4233_s23 }
 0x28e   :  { %v2026_v7 = vsel %vm1918_vm1, %v2025_v5, %v2021_v46  ;;  %1694 = vadd.xlane.f32.xlu1 %v1478_v49  ;;  %1680 = vadd.xlane.f32.xlu0 %v1471_v45  ;;  %v1481_v49 = vmul.f32 %v5403_v14, %v1346_v41  ;;  %v1347_v45 = vmax.f32 %v5059_v48, 0.0  ;;  %v1341_v48 = vmax.f32 %v5071_v52, 0.0  ;;  %v6395_v41 = vld [vmem:[#allocation68_spill] sm:$0xff] }
 0x28f   :  { %v1557_v38 = vpop.xlane.xlu1 %1556  ;;  %v1555_v4 = vpop.xlane.xlu0 %1554  ;;  %p4240_p1 = por %p4239_p0, %p4238_p13 }
 0x290   :  { %v2035_v54 = vrot.slane %v1557_v38, %v5275_v27  ;;  %v2030_v0 = vrot.slane %v1555_v4, %v5270_v6  ;;  %v1474_v4 = vmul.f32 %v5403_v14, %v1339_v3 }
 0x291   :  { %p4241_p2 = pnand %p4240_p1, %p4234_p12 }
 0x292   :  { %v2031_v24 = vsel %vm1925_vm2, %v2030_v0, %v2026_v7  ;;  %1696 = vadd.xlane.f32.xlu1 %v1479_v18  ;;  %1710 = vadd.xlane.f32.xlu0 %v1486_v25 }
 0x293   :  { %v1561_v62 = vpop.xlane.xlu1 %1560  ;;  %v2036_v60 = vsel %vm1932_vm3, %v2035_v54, %v2031_v24  ;;  %v1559_v26 = vpop.xlane.xlu0 %1558  ;;  %v6394_v54 = vld [vmem:[#allocation66_spill] sm:$0xff]  ;;  %v1482_v24 = vmul.f32 %v5403_v14, %v1347_v45 }
 0x294   :  { %v2045_v20 = vrot.slane %v1561_v62, %v5279_v59  ;;  %v2040_v15 = vrot.slane %v1559_v26, %v5282_v8  ;;  %v1348_v0 = vmax.f32 %v6394_v54, 0.0 }
 0x296   :  { %v2041_v5 = vsel %vm1939_vm4, %v2040_v15, %v2036_v60  ;;  %1698 = vadd.xlane.f32.xlu1 %v1480_v55  ;;  %1684 = vadd.xlane.f32.xlu0 %v1473_v22  ;;  %v6396_v15 = vld [vmem:[#allocation70_spill] sm:$0xff] }
 0x297   :  { %v1565_v63 = vpop.xlane.xlu1 %1564  ;;  %v2046_v30 = vsel %vm1946_vm5, %v2045_v20, %v2041_v5  ;;  %v1563_v46 = vpop.xlane.xlu0 %1562  ;;  %v1349_v20 = vmax.f32 %v6395_v41, 0.0  ;;  %v1357_v52 = vmax.f32 %v6396_v15, 0.0  ;;  %v1483_v5 = vmul.f32 %v5403_v14, %v1348_v0 }
 0x298   :  { %v2055_v7 = vrot.slane %v1565_v63, %v5292_v35  ;;  %v2050_v38 = vrot.slane %v1563_v46, %v5299_v9  ;;  %v1476_v63 = vmul.f32 %v5403_v14, %v1341_v48 }
 0x29a   :  { %v2051_v2 = vsel %vm1953_vm6, %v2050_v38, %v2046_v30  ;;  %1700 = vadd.xlane.f32.xlu1 %v1481_v49  ;;  %1686 = vadd.xlane.f32.xlu0 %v1474_v4  ;;  %v1368_v38 = vmax.f32 %v5087_v47, 0.0  ;;  %v1370_v47 = vmax.f32 %v5099_v11, 0.0  ;;  %v6399_v11 = vld [vmem:[#allocation76_spill] sm:$0xff] }
 0x29b   :  { %v1569_v28 = vpop.xlane.xlu1 %1568  ;;  %v2056_v19 = vsel %vm1960_vm7, %v2055_v7, %v2051_v2  ;;  %v1567_v40 = vpop.xlane.xlu0 %1566  ;;  %v1484_v7 = vmul.f32 %v5403_v14, %v1349_v20  ;;  %v1492_v2 = vmul.f32 %v5403_v14, %v1357_v52  ;;  %v1365_v15 = vmax.f32 %v6399_v11, 0.0 }
 0x29c   :  { %v2065_v18 = vrot.slane %v1569_v28, %v5314_v1  ;;  %v2060_v25 = vrot.slane %v1567_v40, %v5320_v42  ;;  %v6397_v28 = vld [vmem:[#allocation72_spill] sm:$0xff]  ;;  %v1364_v11 = vmax.f32 %v5148_v33, 0.0 }
 0x29e   :  { %v2061_v62 = vsel %vm1967_vm8, %v2060_v25, %v2056_v19  ;;  %1702 = vadd.xlane.f32.xlu1 %v1482_v24  ;;  %1718 = vadd.xlane.f32.xlu0 %v1490_v17  ;;  %v1358_v19 = vmax.f32 %v6397_v28, 0.0 }
 0x29f   :  { %v1573_v60 = vpop.xlane.xlu1 %1572  ;;  %v2066_v26 = vsel %vm1974_vm9, %v2065_v18, %v2061_v62  ;;  %v1571_v55 = vpop.xlane.xlu0 %1570  ;;  %v1503_v18 = vmul.f32 %v5403_v14, %v1368_v38  ;;  %v6398_v62 = vld [vmem:[#allocation74_spill] sm:$0xff] }
 0x2a0   :  { %v2075_v22 = vrot.slane %v1573_v60, %v5330_v43  ;;  %v2070_v3 = vrot.slane %v1571_v55, %v5336_v34  ;;  %v1493_v17 = vmul.f32 %v5403_v14, %v1358_v19  ;;  %v1359_v60 = vmax.f32 %v6398_v62, 0.0 }
 0x2a1   :  { %v1372_v19 = vmax.f32 %v5123_v13, 0.0 }
 0x2a2   :  { %v2071_v30 = vsel %vm6195_vm10, %v2070_v3, %v2066_v26  ;;  %1704 = vadd.xlane.f32.xlu1 %v1483_v5  ;;  %1690 = vadd.xlane.f32.xlu0 %v1476_v63  ;;  %v1494_v3 = vmul.f32 %v5403_v14, %v1359_v60  ;;  %v6401_v5 = vld [vmem:[#allocation19_spill] sm:$0xff] }
 0x2a3   :  { %v1577_v46 = vpop.xlane.xlu1 %1576  ;;  %v2076_v49 = vsel %vm1988_vm11, %v2075_v22, %v2071_v30  ;;  %v1575_v45 = vpop.xlane.xlu0 %1574  ;;  %v1505_v22 = vmul.f32 %v5403_v14, %v1370_v47  ;;  %v1360_v63 = vmax.f32 %v6401_v5, 0.0  ;;  %v6404_v47 = vld [vmem:[#allocation22_spill] sm:$0xff]  ;;  %v1375_v5 = vmax.f32 %v5153_v61, 0.0 }
 0x2a4   :  { %v2085_v4 = vrot.slane %v1577_v46, %v5343_v16  ;;  %v2080_v29 = vrot.slane %v1575_v45, %v5347_v56 }
 0x2a5   :  { %v1495_v45 = vmul.f32 %v5403_v14, %v1360_v63  ;;  %v6406_v63 = vld [vmem:[#allocation24_spill] sm:$0xff]  ;;  %v1510_v33 = vmul.f32 %v5403_v14, %v1375_v5  ;;  %v1379_v5 = vmax.f32 %v5191_v32, 0.0 }
 0x2a6   :  { %v2081_v40 = vsel %vm1995_vm12, %v2080_v29, %v2076_v49  ;;  %1706 = vadd.xlane.f32.xlu1 %v1484_v7  ;;  %1722 = vadd.xlane.f32.xlu0 %v1492_v2  ;;  %v1500_v49 = vmul.f32 %v5403_v14, %v1365_v15  ;;  %v6402_v7 = vld [vmem:[#allocation20_spill] sm:$0xff] }
 0x2a7   :  { %v1581_v54 = vpop.xlane.xlu1 %1580  ;;  %v2086_v0 = vsel %vm2002_vm13, %v2085_v4, %v2081_v40  ;;  %v1579_v48 = vpop.xlane.xlu0 %1578  ;;  %v1366_v38 = vmax.f32 %v6402_v7, 0.0  ;;  %v6403_v40 = vld [vmem:[#allocation21_spill] sm:$0xff] }
 0x2a8   :  { %v2095_v25 = vrot.slane %v1581_v54, %v5360_v44  ;;  %v2090_v24 = vrot.slane %v1579_v48, %v5363_v57  ;;  %v1362_v54 = vmax.f32 %v6403_v40, 0.0 }
 0x2a9   :  { %v1501_v2 = vmul.f32 %v5403_v14, %v1366_v38 }
 0x2aa   :  { %v2091_v26 = vsel %vm2009_vm14, %v2090_v24, %v2086_v0  ;;  %1744 = vadd.xlane.f32.xlu1 %v1503_v18  ;;  %1724 = vadd.xlane.f32.xlu0 %v1493_v17  ;;  %v1497_v18 = vmul.f32 %v5403_v14, %v1362_v54  ;;  %v1363_v24 = vmax.f32 %v5140_v37, 0.0 }
 0x2ab   :  { %v2096_v55 = vsel %vm2016_vm15, %v2095_v25, %v2091_v26  ;;  %v5449_v41 = vpop.xlane.xlu1 %1584  ;;  %v5451_v20 = vpop.xlane.xlu0 %1582  ;;  %v1373_v25 = vmax.f32 %v6404_v47, 0.0  ;;  %v6405_v26 = vld [vmem:[#allocation23_spill] sm:$0xff] }
 0x2ac   :  { %v5456_v52 = vsel %vm6194_vm0, %v2096_v55, %v5379_v36  ;;  %v1361_v36 = vmax.f32 %v5119_v53, 0.0  ;;  %v1507_v53 = vmul.f32 %v5403_v14, %v1372_v19  ;;  %v1498_v60 = vmul.f32 %v5403_v14, %v1363_v24 }
 0x2ad   :  { %6400 = vst [vmem:[#allocation86_spill] sm:$0xff] %v5456_v52  ;;  %v1508_v62 = vmul.f32 %v5403_v14, %v1373_v25  ;;  %v1374_v55 = vmax.f32 %v6405_v26, 0.0  ;;  %vm2573_vm0 = vcmask 1042434  }
 0x2ae   :  { %1748 = vadd.xlane.f32.xlu1 %v1505_v22  ;;  %1726 = vadd.xlane.f32.xlu0 %v1494_v3  ;;  %v1496_v28 = vmul.f32 %v5403_v14, %v1361_v36  ;;  %v1499_v3 = vmul.f32 %v5403_v14, %v1364_v11  ;;  %v1376_v36 = vmax.f32 %v5163_v12, 0.0 }
 0x2af   :  { %v5461_v30 = vpop.xlane.xlu1 %1588  ;;  %v5463_v46 = vpop.xlane.xlu0 %1586  ;;  %v1509_v37 = vmul.f32 %v5403_v14, %v1374_v55  ;;  %v1350_v55 = vmax.f32 %v5187_v39, 0.0  ;;  %v1514_v39 = vmul.f32 %v5403_v14, %v1379_v5 }
 0x2b0   :  { %v1511_v40 = vmul.f32 %v5403_v14, %v1376_v36  ;;  %v1382_v36 = vmax.f32 %v5199_v31, 0.0 }
 0x2b2   :  { %1738 = vadd.xlane.f32.xlu1 %v1500_v49  ;;  %1728 = vadd.xlane.f32.xlu0 %v1495_v45  ;;  %v1367_v49 = vmax.f32 %v6406_v63, 0.0  ;;  %v1380_v63 = vmax.f32 %v5195_v21, 0.0  ;;  %v1517_v21 = vmul.f32 %v5403_v14, %v1382_v36 }
 0x2b3   :  { %v5469_v4 = vpop.xlane.xlu1 %1592  ;;  %v5471_v29 = vpop.xlane.xlu0 %1590 }
 0x2b4   :  { %v1502_v38 = vmul.f32 %v5403_v14, %v1367_v49 }
 0x2b6   :  { %1740 = vadd.xlane.f32.xlu1 %v1501_v2  ;;  %1730 = vadd.xlane.f32.xlu0 %v1496_v28  ;;  %v6407_v2 = vld [vmem:[#allocation78_spill] sm:$0xff] }
 0x2b7   :  { %v5477_v0 = vpop.xlane.xlu1 %1596  ;;  %v5479_v48 = vpop.xlane.xlu0 %1594  ;;  %v1369_v28 = vmax.f32 %v6407_v2, 0.0  ;;  %v1381_v2 = vmax.f32 %v5207_v51, 0.0 }
 0x2b9   :  { %v1504_v54 = vmul.f32 %v5403_v14, %v1369_v28 }
 0x2ba   :  { %1752 = vadd.xlane.f32.xlu1 %v1507_v53  ;;  %1732 = vadd.xlane.f32.xlu0 %v1497_v18  ;;  %v1377_v53 = vmax.f32 %v5174_v50, 0.0  ;;  %v6410_v18 = vld [vmem:[#allocation26_spill] sm:$0xff] }
 0x2bb   :  { %v5485_v17 = vpop.xlane.xlu1 %1600  ;;  %v5487_v13 = vpop.xlane.xlu0 %1598  ;;  %v1371_v47 = vmax.f32 %v6410_v18, 0.0 }
 0x2bc   :  { %v1512_v24 = vmul.f32 %v5403_v14, %v1377_v53 }
 0x2be   :  { %1754 = vadd.xlane.f32.xlu1 %v1508_v62  ;;  %1734 = vadd.xlane.f32.xlu0 %v1498_v60  ;;  %v1506_v62 = vmul.f32 %v5403_v14, %v1371_v47  ;;  %v6411_v60 = vld [vmem:[#allocation82_spill] sm:$0xff] }
 0x2bf   :  { %v5493_v15 = vpop.xlane.xlu1 %1604  ;;  %v5495_v22 = vpop.xlane.xlu0 %1602  ;;  %v1378_v26 = vmax.f32 %v6411_v60, 0.0  ;;  %v5563_v60 = vld [vmem:[#allocation7] sm:$0xff] }
 0x2c0   :  { %6414 = vst [vmem:[#allocation100_spill] sm:$0xff] %v5563_v60 }
 0x2c2   :  { %1756 = vadd.xlane.f32.xlu1 %v1509_v37  ;;  %1736 = vadd.xlane.f32.xlu0 %v1499_v3  ;;  %v1513_v37 = vmul.f32 %v5403_v14, %v1378_v26  ;;  %v1485_v3 = vmul.f32 %v5403_v14, %v1350_v55 }
 0x2c3   :  { %v5501_v45 = vpop.xlane.xlu1 %1608  ;;  %v5503_v7 = vpop.xlane.xlu0 %1606 }
 0x2c6   :  { %1758 = vadd.xlane.f32.xlu1 %v1510_v33  ;;  %1742 = vadd.xlane.f32.xlu0 %v1502_v38  ;;  %v1515_v38 = vmul.f32 %v5403_v14, %v1380_v63 }
 0x2c7   :  { %v5509_v19 = vpop.xlane.xlu1 %1612  ;;  %v5511_v61 = vpop.xlane.xlu0 %1610 }
 0x2c8   :  { %6408 = vst [vmem:[#allocation28_spill] sm:$0xff] %v5509_v19  ;;  %6409 = vst [vmem:[#allocation90_spill] sm:$0xff] %v5511_v61 }
 0x2ca   :  { %1760 = vadd.xlane.f32.xlu1 %v1511_v40  ;;  %1746 = vadd.xlane.f32.xlu0 %v1504_v54  ;;  %v1516_v40 = vmul.f32 %v5403_v14, %v1381_v2 }
 0x2cb   :  { %v5517_v25 = vpop.xlane.xlu1 %1648  ;;  %v5519_v12 = vpop.xlane.xlu0 %1646 }
 0x2ce   :  { %1762 = vadd.xlane.f32.xlu1 %v1512_v24  ;;  %1750 = vadd.xlane.f32.xlu0 %v1506_v62 }
 0x2cf   :  { %v5525_v11 = vpop.xlane.xlu1 %1652  ;;  %v5527_v50 = vpop.xlane.xlu0 %1650 }
 0x2d2   :  { %1764 = vadd.xlane.f32.xlu1 %v1513_v37  ;;  %1708 = vadd.xlane.f32.xlu0 %v1485_v3 }
 0x2d3   :  { %v5533_v49 = vpop.xlane.xlu1 %1656  ;;  %v5535_v33 = vpop.xlane.xlu0 %1654 }
 0x2d6   :  { %1766 = vadd.xlane.f32.xlu1 %v1514_v39  ;;  %1768 = vadd.xlane.f32.xlu0 %v1515_v38 }
 0x2d7   :  { %v5541_v28 = vpop.xlane.xlu1 %1660  ;;  %v5543_v32 = vpop.xlane.xlu0 %1658 }
 0x2da   :  { %1772 = vadd.xlane.f32.xlu1 %v1517_v21  ;;  %1770 = vadd.xlane.f32.xlu0 %v1516_v40 }
 0x2db   :  { %v5547_v54 = vpop.xlane.xlu1 %1616  ;;  %v5549_v53 = vpop.xlane.xlu0 %1662 }
 0x2de   :  { %1776 = vadd.xlane.f32.xlu0 %v5563_v60 }
 0x2df   :  { %v5551_v18 = vpop.xlane.xlu1 %1620  ;;  %v5553_v31 = vpop.xlane.xlu0 %1664 }
 0x2e3   :  { %v5555_v51 = vpop.xlane.xlu1 %1624  ;;  %v5557_v47 = vpop.xlane.xlu0 %1666 }
 0x2e4   :  { %6412 = vst [vmem:[#allocation27_spill] sm:$0xff] %v5557_v47 }
 0x2e7   :  { %v5559_v24 = vpop.xlane.xlu1 %1628  ;;  %v5561_v62 = vpop.xlane.xlu0 %1668 }
 0x2e8   :  { %6413 = vst [vmem:[#allocation30_spill] sm:$0xff] %v5561_v62 }
 0x2eb   :  { %v5565_v14 = vpop.xlane.xlu1 %1632  ;;  %v5567_v26 = vpop.xlane.xlu0 %1670 }
 0x2ec   :  { %6415 = vst [vmem:[#allocation29_spill] sm:$0xff] %v5565_v14  ;;  %6416 = vst [vmem:[#allocation32_spill] sm:$0xff] %v5567_v26 }
 0x2ef   :  { %v5570_v55 = vpop.xlane.xlu1 %1636  ;;  %v5572_v37 = vpop.xlane.xlu0 %1672 }
 0x2f0   :  { %6417 = vst [vmem:[#allocation31_spill] sm:$0xff] %v5570_v55  ;;  %6418 = vst [vmem:[#allocation34_spill] sm:$0xff] %v5572_v37 }
 0x2f3   :  { %v5574_v3 = vpop.xlane.xlu1 %1640  ;;  %v5576_v5 = vpop.xlane.xlu0 %1674 }
 0x2f4   :  { %6419 = vst [vmem:[#allocation80_spill] sm:$0xff] %v5574_v3  ;;  %6420 = vst [vmem:[#allocation36_spill] sm:$0xff] %v5576_v5 }
 0x2f7   :  { %v5578_v63 = vpop.xlane.xlu1 %1644  ;;  %v5580_v39 = vpop.xlane.xlu0 %1676 }
 0x2f8   :  { %6421 = vst [vmem:[#allocation84_spill] sm:$0xff] %v5578_v63  ;;  %6422 = vst [vmem:[#allocation49_spill] sm:$0xff] %v5580_v39 }
 0x2fb   :  { %v5582_v38 = vpop.xlane.xlu1 %1678  ;;  %v5584_v36 = vpop.xlane.xlu0 %1614 }
 0x2ff   :  { %v5586_v2 = vpop.xlane.xlu1 %1682  ;;  %v5588_v21 = vpop.xlane.xlu0 %1618 }
 0x303   :  { %v5590_v40 = vpop.xlane.xlu1 %1712  ;;  %v5592_v23 = vpop.xlane.xlu0 %1622 }
 0x304   :  { %6423 = vst [vmem:[#allocation88_spill] sm:$0xff] %v5590_v40 }
 0x307   :  { %v5594_v60 = vpop.xlane.xlu1 %1714  ;;  %v5596_v52 = vpop.xlane.xlu0 %1626 }
 0x308   :  { %6424 = vst [vmem:[#allocation52_spill] sm:$0xff] %v5594_v60 }
 0x30b   :  { %v5598_v3 = vpop.xlane.xlu1 %1716  ;;  %v5600_v63 = vpop.xlane.xlu0 %1630 }
 0x30c   :  { %6425 = vst [vmem:[#allocation51_spill] sm:$0xff] %v5598_v3 }
 0x30f   :  { %v5602_v39 = vpop.xlane.xlu1 %1688  ;;  %v5604_v5 = vpop.xlane.xlu0 %1634 }
 0x310   :  { %6426 = vst [vmem:[#allocation37_spill] sm:$0xff] %v5604_v5 }
 0x313   :  { %v5606_v55 = vpop.xlane.xlu1 %1720  ;;  %v5608_v37 = vpop.xlane.xlu0 %1638 }
 0x314   :  { %6427 = vst [vmem:[#allocation53_spill] sm:$0xff] %v5606_v55  ;;  %6428 = vst [vmem:[#allocation39_spill] sm:$0xff] %v5608_v37  ;;  %v2104_v37 = vrot.slane %v5449_v41, %v5260_v58  ;;  %v2119_v41 = vrot.slane %v5471_v29, %v5282_v8  ;;  %v2134_v29 = vrot.slane %v5477_v0, %v5292_v35 }
 0x315   :  { %v2144_v0 = vrot.slane %v5485_v17, %v5314_v1  ;;  %v2149_v17 = vrot.slane %v5495_v22, %v5336_v34 }
 0x317   :  { %v5610_v26 = vpop.xlane.xlu1 %1692  ;;  %v5612_v40 = vpop.xlane.xlu0 %1642 }
 0x318   :  { %6429 = vst [vmem:[#allocation42_spill] sm:$0xff] %v5612_v40  ;;  %v2100_v40 = vrot.slane %v5451_v20, %v5257_v10 }
 0x31b   :  { %v5614_v19 = vpop.xlane.xlu1 %1694  ;;  %v1681_v60 = vpop.xlane.xlu0 %1680 }
 0x31c   :  { %6430 = vst [vmem:[#allocation33_spill] sm:$0xff] %v5614_v19  ;;  %v2109_v19 = vrot.slane %v5463_v46, %v5270_v6  ;;  %v2124_v46 = vrot.slane %v5469_v4, %v5279_v59  ;;  %v2139_v4 = vrot.slane %v5487_v13, %v5320_v42 }
 0x31f   :  { %v5616_v44 = vpop.xlane.xlu1 %1696  ;;  %v5618_v3 = vpop.xlane.xlu0 %1710 }
 0x320   :  { %6431 = vst [vmem:[#allocation41_spill] sm:$0xff] %v5616_v44  ;;  %6432 = vst [vmem:[#allocation50_spill] sm:$0xff] %v5618_v3 }
 0x323   :  { %v5620_v14 = vpop.xlane.xlu1 %1698  ;;  %v5622_v62 = vpop.xlane.xlu0 %1684 }
 0x324   :  { %6433 = vst [vmem:[#allocation44_spill] sm:$0xff] %v5620_v14  ;;  %v2105_v14 = vsel %vm1918_vm1, %v2104_v37, %v2100_v40  ;;  %v2129_v37 = vrot.slane %v5479_v48, %v5299_v9  ;;  %v2262_v48 = vrot.slane %v5517_v25, %v5260_v58 }
 0x325   :  { %v2110_v47 = vsel %vm1925_vm2, %v2109_v19, %v2105_v14 }
 0x327   :  { %v5624_v5 = vpop.xlane.xlu1 %1700  ;;  %v5626_v55 = vpop.xlane.xlu0 %1686 }
 0x328   :  { %6434 = vst [vmem:[#allocation35_spill] sm:$0xff] %v5624_v5  ;;  %v2114_v5 = vrot.slane %v5461_v30, %v5275_v27 }
 0x32b   :  { %v5634_v44 = vpop.xlane.xlu1 %1702  ;;  %v5636_v3 = vpop.xlane.xlu0 %1718 }
 0x32c   :  { %6435 = vst [vmem:[#allocation43_spill] sm:$0xff] %v5634_v44  ;;  %6436 = vst [vmem:[#allocation38_spill] sm:$0xff] %v5636_v3  ;;  %v2115_v44 = vsel %vm1932_vm3, %v2114_v5, %v2110_v47  ;;  %v2258_v5 = vrot.slane %v5519_v12, %v5257_v10  ;;  %v2188_v12 = vrot.slane %v5588_v21, %v5270_v6 }
 0x32d   :  { %v2120_v3 = vsel %vm1939_vm4, %v2119_v41, %v2115_v44  ;;  %v2267_v41 = vrot.slane %v5527_v50, %v5270_v6  ;;  %v2183_v50 = vrot.slane %v5547_v54, %v5260_v58  ;;  %v2277_v21 = vrot.slane %v5535_v33, %v5282_v8 }
 0x32e   :  { %v2125_v14 = vsel %vm1946_vm5, %v2124_v46, %v2120_v3  ;;  %v2179_v46 = vrot.slane %v5584_v36, %v5257_v10  ;;  %v2337_v36 = vrot.slane %v5582_v38, %v5257_v10  ;;  %v2351_v54 = vrot.slane %v5622_v62, %v5275_v27 }
 0x32f   :  { %v5644_v61 = vpop.xlane.xlu1 %1704  ;;  %v5646_v20 = vpop.xlane.xlu0 %1690  ;;  %v2130_v40 = vsel %vm1953_vm6, %v2129_v37, %v2125_v14  ;;  %v2341_v37 = vrot.slane %v1681_v60, %v5260_v58  ;;  %v2356_v33 = vrot.slane %v5626_v55, %v5282_v8 }
 0x330   :  { %v2135_v3 = vsel %vm1960_vm7, %v2134_v29, %v2130_v40  ;;  %v2263_v29 = vsel %vm1918_vm1, %v2262_v48, %v2258_v5  ;;  %v2272_v40 = vrot.slane %v5525_v11, %v5275_v27  ;;  %v2184_v22 = vsel %vm1918_vm1, %v2183_v50, %v2179_v46 }
 0x331   :  { %v2140_v13 = vsel %vm1967_vm8, %v2139_v4, %v2135_v3  ;;  %v2268_v4 = vsel %vm1925_vm2, %v2267_v41, %v2263_v29  ;;  %v2342_v48 = vsel %vm1918_vm1, %v2341_v37, %v2337_v36  ;;  %v2189_v11 = vsel %vm1925_vm2, %v2188_v12, %v2184_v22 }
 0x332   :  { %v2145_v60 = vsel %vm1974_vm9, %v2144_v0, %v2140_v13  ;;  %v2346_v0 = vrot.slane %v5586_v2, %v5270_v6  ;;  %v2198_v3 = vrot.slane %v5592_v23, %v5282_v8  ;;  %v2154_v41 = vrot.slane %v5493_v15, %v5330_v43 }
 0x333   :  { %v5654_v30 = vpop.xlane.xlu1 %1706  ;;  %v5656_v19 = vpop.xlane.xlu0 %1722  ;;  %v2150_v62 = vsel %vm6195_vm10, %v2149_v17, %v2145_v60  ;;  %v2193_v13 = vrot.slane %v5551_v18, %v5275_v27  ;;  %v2159_v46 = vrot.slane %v5503_v7, %v5347_v56  ;;  %v2282_v2 = vrot.slane %v5533_v49, %v5279_v59 }
 0x334   :  { %v2273_v37 = vsel %vm1932_vm3, %v2272_v40, %v2268_v4  ;;  %v2347_v23 = vsel %vm1925_vm2, %v2346_v0, %v2342_v48  ;;  %v2287_v15 = vrot.slane %v5543_v32, %v5299_v9  ;;  %v2208_v49 = vrot.slane %v5596_v52, %v5299_v9 }
 0x335   :  { %v2278_v55 = vsel %vm1939_vm4, %v2277_v21, %v2273_v37  ;;  %v2194_v12 = vsel %vm1932_vm3, %v2193_v13, %v2189_v11  ;;  %v2352_v17 = vsel %vm1932_vm3, %v2351_v54, %v2347_v23  ;;  %v2366_v36 = vrot.slane %v5646_v20, %v5299_v9  ;;  %v6437_v13 = vld [vmem:[#allocation90_spill] sm:$0xff] }
 0x336   :  { %v2199_v7 = vsel %vm1939_vm4, %v2198_v3, %v2194_v12  ;;  %v2357_v50 = vsel %vm1939_vm4, %v2356_v33, %v2352_v17  ;;  %v2155_v32 = vsel %vm1988_vm11, %v2154_v41, %v2150_v62  ;;  %v2203_v60 = vrot.slane %v5555_v51, %v5279_v59  ;;  %v6440_v12 = vld [vmem:[#allocation33_spill] sm:$0xff] }
 0x337   :  { %v5664_v47 = vpop.xlane.xlu1 %1744  ;;  %v5666_v44 = vpop.xlane.xlu0 %1724  ;;  %v2361_v40 = vrot.slane %v5602_v39, %v5279_v59  ;;  %v2164_v4 = vrot.slane %v5501_v45, %v5343_v16  ;;  %v2160_v21 = vsel %vm1995_vm12, %v2159_v46, %v2155_v32  ;;  %v2292_v52 = vrot.slane %v5541_v28, %v5292_v35 }
 0x338   :  { %v2283_v22 = vsel %vm1946_vm5, %v2282_v2, %v2278_v55  ;;  %v2204_v20 = vsel %vm1946_vm5, %v2203_v60, %v2199_v7  ;;  %v2218_v45 = vrot.slane %v5600_v63, %v5320_v42  ;;  %v2297_v28 = vrot.slane %v5549_v53, %v5320_v42  ;;  %v6443_v60 = vld [vmem:[#allocation50_spill] sm:$0xff] }
 0x339   :  { %v2362_v48 = vsel %vm1946_vm5, %v2361_v40, %v2357_v50  ;;  %v2288_v39 = vsel %vm1953_vm6, %v2287_v15, %v2283_v22  ;;  %v2209_v0 = vsel %vm1953_vm6, %v2208_v49, %v2204_v20  ;;  %v2213_v3 = vrot.slane %v5559_v24, %v5292_v35  ;;  %v6441_v49 = vld [vmem:[#allocation30_spill] sm:$0xff]  ;;  %v6446_v20 = vld [vmem:[#allocation32_spill] sm:$0xff] }
 0x33a   :  { %v2367_v11 = vsel %vm1953_vm6, %v2366_v36, %v2362_v48  ;;  %v2371_v33 = vrot.slane %v5610_v26, %v5292_v35  ;;  %v2165_v41 = vsel %vm2002_vm13, %v2164_v4, %v2160_v21  ;;  %v2302_v62 = vrot.slane %v5553_v31, %v5314_v1  ;;  %v6438_v26 = vld [vmem:[#allocation27_spill] sm:$0xff]  ;;  %v6439_v31 = vld [vmem:[#allocation37_spill] sm:$0xff]  ;;  %v6445_v21 = vld [vmem:[#allocation28_spill] sm:$0xff] }
 0x33b   :  { %v5681_v14 = vpop.xlane.xlu1 %1748  ;;  %v5683_v25 = vpop.xlane.xlu0 %1726  ;;  %v2169_v63 = vrot.slane %v6437_v13, %v5363_v57  ;;  %v2293_v46 = vsel %vm1960_vm7, %v2292_v52, %v2288_v39  ;;  %v2214_v2 = vsel %vm1960_vm7, %v2213_v3, %v2209_v0  ;;  %v2307_v23 = vrot.slane %v6438_v26, %v5336_v34  ;;  %v6442_v36 = vld [vmem:[#allocation29_spill] sm:$0xff]  ;;  %v6447_v0 = vld [vmem:[#allocation34_spill] sm:$0xff] }
 0x33c   :  { %v2372_v53 = vsel %vm1960_vm7, %v2371_v33, %v2367_v11  ;;  %v2219_v55 = vsel %vm1967_vm8, %v2218_v45, %v2214_v2  ;;  %v2228_v15 = vrot.slane %v6439_v31, %v5336_v34  ;;  %v2376_v17 = vrot.slane %v6440_v12, %v5320_v42  ;;  %v6444_v4 = vld [vmem:[#allocation25_spill] sm:$0xff]  ;;  %v6448_v11 = vld [vmem:[#allocation88_spill] sm:$0xff]  ;;  %v6450_v31 = vld [vmem:[#allocation39_spill] sm:$0xff] }
 0x33d   :  { %v2298_v7 = vsel %vm1967_vm8, %v2297_v28, %v2293_v46  ;;  %v2312_v50 = vrot.slane %v6441_v49, %v5330_v43  ;;  %v2223_v32 = vrot.slane %v6442_v36, %v5314_v1  ;;  %v2416_v40 = vrot.slane %v6443_v60, %v5257_v10  ;;  %v6449_v33 = vld [vmem:[#allocation41_spill] sm:$0xff]  ;;  %v6454_v60 = vld [vmem:[#allocation44_spill] sm:$0xff] }
 0x33e   :  { %v2174_v52 = vrot.slane %v6445_v21, %v6444_v4  ;;  %v2303_v22 = vsel %vm1974_vm9, %v2302_v62, %v2298_v7  ;;  %v2317_v48 = vrot.slane %v6446_v20, %v5347_v56  ;;  %v2377_v39 = vsel %vm1967_vm8, %v2376_v17, %v2372_v53  ;;  %v6455_v20 = vld [vmem:[#allocation80_spill] sm:$0xff] }
 0x33f   :  { %v5704_v5 = vpop.xlane.xlu1 %1738  ;;  %v5706_v38 = vpop.xlane.xlu0 %1728  ;;  %v2322_v45 = vrot.slane %v6447_v0, %v5343_v16  ;;  %v2420_v28 = vrot.slane %v6448_v11, %v5260_v58  ;;  %v2224_v3 = vsel %vm1974_vm9, %v2223_v32, %v2219_v55  ;;  %v2381_v13 = vrot.slane %v6449_v33, %v5314_v1  ;;  %v6451_v55 = vld [vmem:[#allocation31_spill] sm:$0xff] }
 0x340   :  { %v2170_v62 = vsel %vm2009_vm14, %v2169_v63, %v2165_v41  ;;  %v2308_v26 = vsel %vm6195_vm10, %v2307_v23, %v2303_v22  ;;  %v2229_v53 = vsel %vm6195_vm10, %v2228_v15, %v2224_v3  ;;  %v2238_v12 = vrot.slane %v6450_v31, %v5347_v56  ;;  %v6452_v41 = vld [vmem:[#allocation36_spill] sm:$0xff]  ;;  %v6456_v3 = vld [vmem:[#allocation38_spill] sm:$0xff] }
 0x341   :  { %v2313_v17 = vsel %vm1988_vm11, %v2312_v50, %v2308_v26  ;;  %v2233_v7 = vrot.slane %v6451_v55, %v5330_v43  ;;  %v2421_v49 = vsel %vm1918_vm1, %v2420_v28, %v2416_v40  ;;  %v2382_v36 = vsel %vm1974_vm9, %v2381_v13, %v2377_v39  ;;  %v6453_v23 = vld [vmem:[#allocation52_spill] sm:$0xff]  ;;  %v6460_v55 = vld [vmem:[#allocation86_spill] sm:$0xff] }
 0x342   :  { %v2318_v32 = vsel %vm1995_vm12, %v2317_v48, %v2313_v17  ;;  %v2327_v63 = vrot.slane %v6452_v41, %v5363_v57  ;;  %v2425_v15 = vrot.slane %v6453_v23, %v5270_v6  ;;  %v2386_v21 = vrot.slane %v6454_v60, %v5336_v34 }
 0x343   :  { %v5731_v18 = vpop.xlane.xlu1 %1740  ;;  %v5733_v29 = vpop.xlane.xlu0 %1730  ;;  %v2175_v50 = vsel %vm2016_vm15, %v2174_v52, %v2170_v62  ;;  %v2323_v22 = vsel %vm2002_vm13, %v2322_v45, %v2318_v32  ;;  %v2243_v40 = vrot.slane %v6455_v20, %v5343_v16  ;;  %v2234_v39 = vsel %vm1988_vm11, %v2233_v7, %v2229_v53  ;;  %v6457_v52 = vld [vmem:[#allocation51_spill] sm:$0xff]  ;;  %v6458_v62 = vld [vmem:[#allocation42_spill] sm:$0xff] }
 0x344   :  { %v2239_v11 = vsel %vm1995_vm12, %v2238_v12, %v2234_v39  ;;  %v2426_v28 = vsel %vm1925_vm2, %v2425_v15, %v2421_v49  ;;  %v2435_v33 = vrot.slane %v6456_v3, %v5282_v8  ;;  %v2387_v13 = vsel %vm6195_vm10, %v2386_v21, %v2382_v36  ;;  %v6459_v53 = vld [vmem:[#allocation35_spill] sm:$0xff] }
 0x345   :  { %v2430_v45 = vrot.slane %v6457_v52, %v5275_v27  ;;  %v2248_v26 = vrot.slane %v6458_v62, %v5363_v57  ;;  %v2391_v31 = vrot.slane %v6459_v53, %v5330_v43  ;;  %v2574_v12 = vsel %vm2573_vm0, %v2175_v50, %v6460_v55 }
 0x346   :  { %v5851_v7 = vsel %vm2009_vm14, %v2327_v63, %v2323_v22  ;;  %v2244_v49 = vsel %vm2002_vm13, %v2243_v40, %v2239_v11  ;;  %v2499_v41 = vrot.slane %v5664_v47, %v5260_v58  ;;  %vm2575_vm10 = vcmask 1043459   ;;  %v6462_v22 = vld [vmem:[#allocation84_spill] sm:$0xff]  ;;  %v6463_v40 = vld [vmem:[#allocation53_spill] sm:$0xff] }
 0x347   :  { %v5754_v54 = vpop.xlane.xlu1 %1752  ;;  %v5756_v51 = vpop.xlane.xlu0 %1732  ;;  %v2431_v36 = vsel %vm1932_vm3, %v2430_v45, %v2426_v28  ;;  %v2392_v32 = vsel %vm1988_vm11, %v2391_v31, %v2387_v13  ;;  %v2445_v63 = vrot.slane %v5656_v19, %v5299_v9  ;;  %v2253_v20 = vrot.slane %v6462_v22, %v6444_v4 }
 0x348   :  { %v2436_v21 = vsel %vm1939_vm4, %v2435_v33, %v2431_v36  ;;  %v2440_v39 = vrot.slane %v6463_v40, %v5279_v59  ;;  %v2249_v58 = vsel %vm2009_vm14, %v2248_v26, %v2244_v49  ;;  %v2450_v19 = vrot.slane %v5666_v44, %v5292_v35 }
 0x349   :  { %v2401_v3 = vrot.slane %v5644_v61, %v5343_v16  ;;  %v2509_v13 = vrot.slane %v5681_v14, %v5275_v27  ;;  %v2455_v52 = vrot.slane %v5683_v25, %v5320_v42  ;;  %v2254_v26 = vsel %vm2016_vm15, %v2253_v20, %v2249_v58 }
 0x34a   :  { %v2441_v33 = vsel %vm1946_vm5, %v2440_v39, %v2436_v21  ;;  %v2460_v44 = vrot.slane %v5706_v38, %v5314_v1  ;;  %v2465_v27 = vrot.slane %v5733_v29, %v5336_v34  ;;  %v2519_v14 = vrot.slane %v5754_v54, %v5279_v59 }
 0x34b   :  { %v5777_v37 = vpop.xlane.xlu1 %1754  ;;  %v5779_v24 = vpop.xlane.xlu0 %1734  ;;  %v2446_v53 = vsel %vm1953_vm6, %v2445_v63, %v2441_v33  ;;  %v2470_v55 = vrot.slane %v5756_v51, %v5330_v43  ;;  %v2485_v40 = vrot.slane %v5704_v5, %v5363_v57  ;;  %v2490_v5 = vrot.slane %v5731_v18, %v6444_v4  ;;  %v6467_v33 = vld [vmem:[#allocation100_spill] sm:$0xff] }
 0x34c   :  { %v2475_v29 = vrot.slane %v5779_v24, %v5347_v56 }
 0x34f   :  { %v5808_v46 = vpop.xlane.xlu1 %1756  ;;  %v5810_v2 = vpop.xlane.xlu0 %1736 }
 0x350   :  { %v2529_v59 = vrot.slane %v5808_v46, %v5292_v35  ;;  %v2480_v51 = vrot.slane %v5810_v2, %v5343_v16 }
 0x353   :  { %v5834_v0 = vpop.xlane.xlu1 %1758  ;;  %v1743_v48 = vpop.xlane.xlu0 %1742 }
 0x354   :  { %v2495_v17 = vrot.slane %v1743_v48, %v5257_v10  ;;  %v6461_v10 = vld [vmem:[#allocation43_spill] sm:$0xff]  ;;  %v6464_v48 = vld [vmem:[#allocation49_spill] sm:$0xff] }
 0x355   :  { %v2396_v60 = vrot.slane %v6461_v10, %v5347_v56  ;;  %v2332_v11 = vrot.slane %v6464_v48, %v6444_v4  ;;  %v2406_v10 = vrot.slane %v5654_v30, %v5363_v57 }
 0x356   :  { %v2500_v47 = vsel %vm1918_vm1, %v2499_v41, %v2495_v17  ;;  %vm2577_vm1 = vcmask 1044484   ;;  %v2451_v17 = vsel %vm1960_vm7, %v2450_v19, %v2446_v53 }
 0x357   :  { %v1761_v23 = vpop.xlane.xlu1 %1760  ;;  %v1747_v15 = vpop.xlane.xlu0 %1746  ;;  %v2397_v28 = vsel %vm1995_vm12, %v2396_v60, %v2392_v32  ;;  %v2456_v49 = vsel %vm1967_vm8, %v2455_v52, %v2451_v17 }
 0x358   :  { %v2504_v50 = vrot.slane %v1747_v15, %v5270_v6  ;;  %v2402_v61 = vsel %vm2002_vm13, %v2401_v3, %v2397_v28  ;;  %v2461_v41 = vsel %vm1974_vm9, %v2460_v44, %v2456_v49  ;;  %v2539_v24 = vrot.slane %v1761_v23, %v5314_v1  ;;  %v6469_v49 = vld [vmem:[#allocation96_spill] sm:$0xff] }
 0x359   :  { %v2407_v22 = vsel %vm2009_vm14, %v2406_v10, %v2402_v61 }
 0x35a   :  { %v2505_v6 = vsel %vm1925_vm2, %v2504_v50, %v2500_v47  ;;  %vm2579_vm2 = vcmask 1045509  }
 0x35b   :  { %v1763_v45 = vpop.xlane.xlu1 %1762  ;;  %v1751_v62 = vpop.xlane.xlu0 %1750  ;;  %v2510_v25 = vsel %vm1932_vm3, %v2509_v13, %v2505_v6  ;;  %vm6465_vm3 = vcmask 720512  }
 0x35c   :  { %v2514_v31 = vrot.slane %v1751_v62, %v5282_v8  ;;  %v2524_v8 = vrot.slane %v5777_v37, %v5299_v9  ;;  %v2534_v9 = vrot.slane %v5834_v0, %v5320_v42  ;;  %v2466_v15 = vsel %vm6465_vm3, %v2465_v27, %v2461_v41 }
 0x35d   :  { %v2471_v60 = vsel %vm1988_vm11, %v2470_v55, %v2466_v15  ;;  %v2544_v2 = vrot.slane %v1763_v45, %v5336_v34  ;;  %v2576_v42 = vsel %vm2575_vm10, %v2254_v26, %v2574_v12 }
 0x35e   :  { %v2515_v38 = vsel %vm1939_vm4, %v2514_v31, %v2510_v25  ;;  %v2476_v0 = vsel %vm1995_vm12, %v2475_v29, %v2471_v60  ;;  %vm6466_vm4 = vmmov %vm6465_vm3  ;;  %v2672_v29 = vsub.s32 1, %v6469_v49 }
 0x35f   :  { %v2520_v54 = vsel %vm1946_vm5, %v2519_v14, %v2515_v38  ;;  %v1765_v36 = vpop.xlane.xlu1 %1764  ;;  %v1709_v32 = vpop.xlane.xlu0 %1708  ;;  %v2481_v30 = vsel %vm2002_vm13, %v2480_v51, %v2476_v0  ;;  %vm2581_vm5 = vcmask 1046534  }
 0x360   :  { %v2525_v37 = vsel %vm1953_vm6, %v2524_v8, %v2520_v54  ;;  %v2411_v46 = vrot.slane %v1709_v32, %v6444_v4  ;;  %v2549_v1 = vrot.slane %v1765_v36, %v5330_v43  ;;  %v2333_v43 = vsel %vm2016_vm15, %v2332_v11, %v5851_v7  ;;  %v6468_v8 = vld [vmem:[#allocation99_spill] sm:$0xff] }
 0x361   :  { %v2530_v35 = vsel %vm1960_vm7, %v2529_v59, %v2525_v37  ;;  %v2486_v48 = vsel %vm2009_vm14, %v2485_v40, %v2481_v30  ;;  %vm2583_vm6 = vcmask 1047559   ;;  %vm1775_vm7 = vcmp.gt.f32.partialorder %v6467_v33, 0.0 }
 0x362   :  { %v2535_v21 = vsel %vm1967_vm8, %v2534_v9, %v2530_v35  ;;  %v2412_v39 = vsel %vm2016_vm15, %v2411_v46, %v2407_v22  ;;  %v2491_v13 = vsel %vm2016_vm15, %v2490_v5, %v2486_v48  ;;  %v2739_v54 = vsub.s32 2, %v6469_v49 }
 0x363   :  { %v2540_v63 = vsel %vm1974_vm9, %v2539_v24, %v2535_v21  ;;  %v1767_v23 = vpop.xlane.xlu1 %1766  ;;  %v1769_v50 = vpop.xlane.xlu0 %1768  ;;  %v2806_v32 = vsub.s32 3, %v6469_v49  ;;  %v2873_v37 = vsub.s32 4, %v6469_v49  ;;  %v3007_v22 = vsub.s32 6, %v6469_v49 }
 0x364   :  { %v2545_v20 = vsel %vm6466_vm4, %v2544_v2, %v2540_v63  ;;  %v2554_v34 = vrot.slane %v1767_v23, %v5347_v56  ;;  %v2559_v58 = vrot.slane %v1769_v50, %v5343_v16  ;;  %v2578_v56 = vsel %vm2577_vm1, %v2333_v43, %v2576_v42 }
 0x365   :  { %v2550_v12 = vsel %vm1988_vm11, %v2549_v1, %v2545_v20  ;;  %v2580_v16 = vsel %vm2579_vm2, %v2412_v39, %v2578_v56  ;;  %v2940_v1 = vsub.s32 5, %v6469_v49  ;;  %vm6470_vm9 = vcmask 1041409  }
 0x366   :  { %v2555_v47 = vsel %vm1995_vm12, %v2554_v34, %v2550_v12  ;;  %v2582_v45 = vsel %vm2581_vm5, %v2491_v13, %v2580_v16  ;;  %v4000_v13 = vld [vmem:[#allocation2 + $0x88] sm:$0xff] }
 0x367   :  { %v1773_v28 = vpop.xlane.xlu1 %1772  ;;  %v1771_v19 = vpop.xlane.xlu0 %1770  ;;  %v2560_v7 = vsel %vm2002_vm13, %v2559_v58, %v2555_v47  ;;  %v3995_v58 = vld [vmem:[#allocation2 + $0x8] sm:$0xff]  ;;  %v3996_v47 = vld [vmem:[#allocation2] sm:$0xff] }
 0x368   :  { %v2569_v6 = vrot.slane %v1773_v28, %v6444_v4  ;;  %v2564_v3 = vrot.slane %v1771_v19, %v5363_v57  ;;  %v3074_v28 = vsub.s32 7, %v6469_v49  ;;  %v3997_v19 = vld [vmem:[#allocation2 + $0x10] sm:$0xff]  ;;  %v4004_v49 = vld [vmem:[#allocation2 + $0xa0] sm:$0xff] }
 0x36a   :  { %v2565_v11 = vsel %vm2009_vm14, %v2564_v3, %v2560_v7  ;;  %v3998_v3 = vld [vmem:[#allocation2 + $0x80] sm:$0xff] }
 0x36b   :  { %v2570_v52 = vsel %vm2016_vm15, %v2569_v6, %v2565_v11  ;;  %v1777_v57 = vpop.xlane.xlu0 %1776  ;;  %v3999_v11 = vld [vmem:[#allocation2 + $0x18] sm:$0xff] }
 0x36c   :  { %v2584_v18 = vsel %vm2583_vm6, %v2570_v52, %v2582_v45  ;;  %vm1778_vm8 = vcmp.gt.f32.partialorder %v1777_v57, 0.0 }
 0x36d   :  { %v2586_v4 = vsel %vm1775_vm7, %v2584_v18, -1e+30 }
 0x36e   :  { %2587 = vmax.xlane.f32.xlu1 %v2586_v4 }
 0x3fb   :  { %v2588_v62 = vpop.xlane.xlu1 %2587 }
 0x3fc   :  { %v2589_v26 = vsel %vm1778_vm8, %v2588_v62, 0.0 }
 0x3fd   :  { %v2590_v53 = vsub.f32 %v2586_v4, %v2589_v26  ;;  %v4001_v4 = vld [vmem:[#allocation2 + $0x20] sm:$0xff] }
 0x3ff   :  { %v2591_v44 = vmul.f32 1.442695, %v2590_v53 }
 0x401   :  { %3990 = vpow2.f32 %v2591_v44  ;;  %v4002_v44 = vld [vmem:[#allocation2 + $0x90] sm:$0xff] }
 0x40b   :  { %v3991_v31 = vpop.eup %3990 }
 0x40c   :  { %v2593_v61 = vsel %vm1775_vm7, %v3991_v31, 0.0 }
 0x40d   :  { %2594 = vadd.xlane.f32.xlu0 %v2593_v61 }
 0x49a   :  { %v2595_v27 = vpop.xlane.xlu0 %2594 }
 0x49b   :  { %v2596_v14 = vmax.f32 %v2595_v27, 1e-30  ;;  %v4003_v27 = vld [vmem:[#allocation2 + $0x98] sm:$0xff] }
 0x49d   :  { %3992 = vrcp.f32 %v2596_v14 }
 0x4a7   :  { %v3993_v25 = vpop.eup %3992 }
 0x4a8   :  { %v2598_v17 = vmul.f32 %v3993_v25, %v2593_v61 }
 0x4aa   :  { %v5951_v55 = vsel %vm1778_vm8, %v2598_v17, 0.0 }
 0x4ab   :  { %v2606_v38 = vrot.slane %v5951_v55, %v6468_v8  ;;  %2602 = vst [vmem:[#allocation12] sm:$0xff] %v5951_v55  ;;  %v2673_v59 = vrot.slane %v5951_v55, %v2672_v29  ;;  %v2740_v36 = vrot.slane %v5951_v55, %v2739_v54  ;;  %v2807_v41 = vrot.slane %v5951_v55, %v2806_v32 }
 0x4ac   :  { %v5966_v35 = vrot.slane %v5951_v55, %v2873_v37  ;;  %v5995_v30 = vrot.slane %v5951_v55, %v2940_v1  ;;  %v6002_v40 = vrot.slane %v5951_v55, %v3007_v22  ;;  %v6012_v45 = vrot.slane %v5951_v55, %v3074_v28  ;;  %v4008_v1 = vld [vmem:[#allocation2 + $0xb0] sm:$0xff]  ;;  %v4010_v28 = vld [vmem:[#allocation2 + $0xc0] sm:$0xff] }
 0x4ad   :  { %2612 = vbcast.lane.b32.xlu0 %v2606_v38, 264  ;;  %2608 = vbcast.lane.b32.xlu1 %v2606_v38, 256 }
 0x4b1   :  { %2628 = vbcast.lane.b32.xlu0 %v2606_v38, 296  ;;  %2616 = vbcast.lane.b32.xlu1 %v2606_v38, 272 }
 0x4b5   :  { %2636 = vbcast.lane.b32.xlu0 %v2606_v38, 312  ;;  %2620 = vbcast.lane.b32.xlu1 %v2606_v38, 280 }
 0x4b9   :  { %2644 = vbcast.lane.b32.xlu0 %v2606_v38, 328  ;;  %2624 = vbcast.lane.b32.xlu1 %v2606_v38, 288 }
 0x4bd   :  { %2652 = vbcast.lane.b32.xlu0 %v2606_v38, 344  ;;  %2632 = vbcast.lane.b32.xlu1 %v2606_v38, 304 }
 0x4c1   :  { %2660 = vbcast.lane.b32.xlu0 %v2606_v38, 360  ;;  %2640 = vbcast.lane.b32.xlu1 %v2606_v38, 320 }
 0x4c5   :  { %2668 = vbcast.lane.b32.xlu0 %v2606_v38, 376  ;;  %2648 = vbcast.lane.b32.xlu1 %v2606_v38, 336 }
 0x4c9   :  { %2679 = vbcast.lane.b32.xlu0 %v2673_v59, 264  ;;  %2656 = vbcast.lane.b32.xlu1 %v2606_v38, 352 }
 0x4cd   :  { %2687 = vbcast.lane.b32.xlu0 %v2673_v59, 280  ;;  %2664 = vbcast.lane.b32.xlu1 %v2606_v38, 368 }
 0x4d1   :  { %2695 = vbcast.lane.b32.xlu0 %v2673_v59, 296  ;;  %2675 = vbcast.lane.b32.xlu1 %v2673_v59, 256 }
 0x4d5   :  { %2703 = vbcast.lane.b32.xlu0 %v2673_v59, 312  ;;  %2683 = vbcast.lane.b32.xlu1 %v2673_v59, 272 }
 0x4d9   :  { %2711 = vbcast.lane.b32.xlu0 %v2673_v59, 328  ;;  %2691 = vbcast.lane.b32.xlu1 %v2673_v59, 288 }
 0x4dd   :  { %2719 = vbcast.lane.b32.xlu0 %v2673_v59, 344  ;;  %2699 = vbcast.lane.b32.xlu1 %v2673_v59, 304 }
 0x4e1   :  { %2727 = vbcast.lane.b32.xlu0 %v2673_v59, 360  ;;  %2707 = vbcast.lane.b32.xlu1 %v2673_v59, 320 }
 0x4e5   :  { %2735 = vbcast.lane.b32.xlu0 %v2673_v59, 376  ;;  %2715 = vbcast.lane.b32.xlu1 %v2673_v59, 336 }
 0x4e9   :  { %2746 = vbcast.lane.b32.xlu0 %v2740_v36, 264  ;;  %2723 = vbcast.lane.b32.xlu1 %v2673_v59, 352 }
 0x4ed   :  { %2754 = vbcast.lane.b32.xlu0 %v2740_v36, 280  ;;  %2731 = vbcast.lane.b32.xlu1 %v2673_v59, 368  ;;  %v4005_v59 = vld [vmem:[#allocation2 + $0x28] sm:$0xff] }
 0x4f1   :  { %2762 = vbcast.lane.b32.xlu0 %v2740_v36, 296  ;;  %2742 = vbcast.lane.b32.xlu1 %v2740_v36, 256 }
 0x4f5   :  { %2770 = vbcast.lane.b32.xlu0 %v2740_v36, 312  ;;  %2750 = vbcast.lane.b32.xlu1 %v2740_v36, 272 }
 0x4f9   :  { %2778 = vbcast.lane.b32.xlu0 %v2740_v36, 328  ;;  %2758 = vbcast.lane.b32.xlu1 %v2740_v36, 288 }
 0x4fd   :  { %2786 = vbcast.lane.b32.xlu0 %v2740_v36, 344  ;;  %2766 = vbcast.lane.b32.xlu1 %v2740_v36, 304 }
 0x501   :  { %2794 = vbcast.lane.b32.xlu0 %v2740_v36, 360  ;;  %2774 = vbcast.lane.b32.xlu1 %v2740_v36, 320 }
 0x505   :  { %2802 = vbcast.lane.b32.xlu0 %v2740_v36, 376  ;;  %2782 = vbcast.lane.b32.xlu1 %v2740_v36, 336 }
 0x509   :  { %2813 = vbcast.lane.b32.xlu0 %v2807_v41, 264  ;;  %2790 = vbcast.lane.b32.xlu1 %v2740_v36, 352 }
 0x50d   :  { %2821 = vbcast.lane.b32.xlu0 %v2807_v41, 280  ;;  %2798 = vbcast.lane.b32.xlu1 %v2740_v36, 368  ;;  %v4006_v36 = vld [vmem:[#allocation2 + $0xa8] sm:$0xff] }
 0x511   :  { %2829 = vbcast.lane.b32.xlu0 %v2807_v41, 296  ;;  %2809 = vbcast.lane.b32.xlu1 %v2807_v41, 256 }
 0x515   :  { %2837 = vbcast.lane.b32.xlu0 %v2807_v41, 312  ;;  %2817 = vbcast.lane.b32.xlu1 %v2807_v41, 272 }
 0x519   :  { %2845 = vbcast.lane.b32.xlu0 %v2807_v41, 328  ;;  %2825 = vbcast.lane.b32.xlu1 %v2807_v41, 288 }
 0x51d   :  { %2853 = vbcast.lane.b32.xlu0 %v2807_v41, 344  ;;  %2833 = vbcast.lane.b32.xlu1 %v2807_v41, 304 }
 0x51f   :  { %v2613_v51 = vpop.permute.xlu0 %2612  ;;  %v2609_v9 = vpop.permute.xlu1 %2608 }
 0x520   :  { %v3140_v43 = vmul.f32 %v3995_v58, %v2613_v51  ;;  %v3139_v48 = vmul.f32 %v3996_v47, %v2609_v9  ;;  %v4007_v9 = vld [vmem:[#allocation2 + $0x30] sm:$0xff] }
 0x521   :  { %2861 = vbcast.lane.b32.xlu0 %v2807_v41, 360  ;;  %2841 = vbcast.lane.b32.xlu1 %v2807_v41, 320 }
 0x522   :  { %v3267_v7 = vadd.f32 %v3140_v43, %v3139_v48 }
 0x523   :  { %v5963_v15 = vpop.permute.xlu0 %2628  ;;  %v2617_v24 = vpop.permute.xlu1 %2616 }
 0x524   :  { %v3141_v56 = vmul.f32 %v3997_v19, %v2617_v24  ;;  %v3144_v54 = vmul.f32 %v4005_v59, %v5963_v15  ;;  %v4009_v15 = vld [vmem:[#allocation2 + $0xb8] sm:$0xff] }
 0x525   :  { %2869 = vbcast.lane.b32.xlu0 %v2807_v41, 376  ;;  %2849 = vbcast.lane.b32.xlu1 %v2807_v41, 336 }
 0x526   :  { %v3268_v18 = vadd.f32 %v3267_v7, %v3141_v56  ;;  %v4011_v56 = vld [vmem:[#allocation2 + $0x38] sm:$0xff]  ;;  %v4013_v7 = vld [vmem:[#allocation2 + $0x40] sm:$0xff] }
 0x527   :  { %v5968_v46 = vpop.permute.xlu0 %2636  ;;  %v2621_v10 = vpop.permute.xlu1 %2620 }
 0x528   :  { %v3142_v33 = vmul.f32 %v3999_v11, %v2621_v10 }
 0x529   :  { %2880 = vbcast.lane.b32.xlu0 %v5966_v35, 264  ;;  %2857 = vbcast.lane.b32.xlu1 %v2807_v41, 352 }
 0x52a   :  { %v3269_v61 = vadd.f32 %v3268_v18, %v3142_v33  ;;  %v4014_v18 = vld [vmem:[#allocation2 + $0xd0] sm:$0xff] }
 0x52b   :  { %v5971_v60 = vpop.permute.xlu0 %2644  ;;  %v2625_v2 = vpop.permute.xlu1 %2624 }
 0x52c   :  { %v3143_v57 = vmul.f32 %v4001_v4, %v2625_v2 }
 0x52d   :  { %2888 = vbcast.lane.b32.xlu0 %v5966_v35, 280  ;;  %2865 = vbcast.lane.b32.xlu1 %v2807_v41, 368 }
 0x52e   :  { %v3270_v17 = vadd.f32 %v3269_v61, %v3143_v57  ;;  %v4016_v61 = vld [vmem:[#allocation2 + $0xe0] sm:$0xff] }
 0x52f   :  { %v5974_v21 = vpop.permute.xlu0 %2652  ;;  %v5976_v42 = vpop.permute.xlu1 %2632 }
 0x530   :  { %v3271_v51 = vadd.f32 %v3270_v17, %v3144_v54  ;;  %v3145_v37 = vmul.f32 %v4007_v9, %v5976_v42  ;;  %v3146_v42 = vmul.f32 %v4011_v56, %v5968_v46  ;;  %v4015_v46 = vld [vmem:[#allocation2 + $0xd8] sm:$0xff] }
 0x531   :  { %2896 = vbcast.lane.b32.xlu0 %v5966_v35, 296  ;;  %2876 = vbcast.lane.b32.xlu1 %v5966_v35, 256 }
 0x532   :  { %v3272_v58 = vadd.f32 %v3271_v51, %v3145_v37 }
 0x533   :  { %v5980_v0 = vpop.permute.xlu0 %2660  ;;  %v5982_v63 = vpop.permute.xlu1 %2640 }
 0x534   :  { %v3147_v11 = vmul.f32 %v4013_v7, %v5982_v63 }
 0x535   :  { %2904 = vbcast.lane.b32.xlu0 %v5966_v35, 312  ;;  %2884 = vbcast.lane.b32.xlu1 %v5966_v35, 272 }
 0x537   :  { %v5987_v23 = vpop.permute.xlu0 %2668  ;;  %v5989_v50 = vpop.permute.xlu1 %2648 }
 0x539   :  { %2912 = vbcast.lane.b32.xlu0 %v5966_v35, 328  ;;  %2892 = vbcast.lane.b32.xlu1 %v5966_v35, 288 }
 0x53b   :  { %v2680_v20 = vpop.permute.xlu0 %2679  ;;  %v5997_v34 = vpop.permute.xlu1 %2656 }
 0x53c   :  { %v3156_v52 = vmul.f32 %v4000_v13, %v2680_v20 }
 0x53d   :  { %2943 = vbcast.lane.b32.xlu0 %v5995_v30, 256  ;;  %2900 = vbcast.lane.b32.xlu1 %v5966_v35, 304 }
 0x53f   :  { %v2688_v12 = vpop.permute.xlu0 %2687  ;;  %v6004_v39 = vpop.permute.xlu1 %2664 }
 0x540   :  { %v3158_v14 = vmul.f32 %v4003_v27, %v2688_v12 }
 0x541   :  { %3010 = vbcast.lane.b32.xlu0 %v6002_v40, 256  ;;  %2908 = vbcast.lane.b32.xlu1 %v5966_v35, 320 }
 0x543   :  { %v2696_v5 = vpop.permute.xlu0 %2695  ;;  %v2676_v6 = vpop.permute.xlu1 %2675 }
 0x544   :  { %v3155_v16 = vmul.f32 %v3998_v3, %v2676_v6  ;;  %v3160_v32 = vmul.f32 %v4006_v36, %v2696_v5  ;;  %v4012_v5 = vld [vmem:[#allocation2 + $0xc8] sm:$0xff]  ;;  %v4020_v36 = vld [vmem:[#allocation2 + $0xf0] sm:$0xff] }
 0x545   :  { %2951 = vbcast.lane.b32.xlu0 %v5995_v30, 272  ;;  %2916 = vbcast.lane.b32.xlu1 %v5966_v35, 336 }
 0x546   :  { %v3288_v53 = vadd.f32 %v3156_v52, %v3155_v16  ;;  %v3273_v16 = vadd.f32 %v3272_v58, %v3146_v42  ;;  %v4027_v42 = vld [vmem:[#allocation2 + $0x118] sm:$0xff] }
 0x547   :  { %v2704_v62 = vpop.permute.xlu0 %2703  ;;  %v2684_v26 = vpop.permute.xlu1 %2683 }
 0x548   :  { %v3157_v31 = vmul.f32 %v4002_v44, %v2684_v26  ;;  %v3162_v20 = vmul.f32 %v4009_v15, %v2704_v62  ;;  %v3274_v26 = vadd.f32 %v3273_v16, %v3147_v11  ;;  %v4024_v15 = vld [vmem:[#allocation2 + $0x58] sm:$0xff]  ;;  %v4028_v11 = vld [vmem:[#allocation2 + $0x120] sm:$0xff] }
 0x549   :  { %3081 = vbcast.lane.b32.xlu0 %v6012_v45, 264  ;;  %2947 = vbcast.lane.b32.xlu1 %v5995_v30, 264 }
 0x54a   :  { %v3289_v25 = vadd.f32 %v3288_v53, %v3157_v31 }
 0x54b   :  { %v2712_v8 = vpop.permute.xlu0 %2711  ;;  %v2692_v55 = vpop.permute.xlu1 %2691 }
 0x54c   :  { %v3290_v38 = vadd.f32 %v3289_v25, %v3158_v14  ;;  %v3159_v29 = vmul.f32 %v4004_v49, %v2692_v55  ;;  %v3164_v6 = vmul.f32 %v4012_v5, %v2712_v8  ;;  %v4017_v14 = vld [vmem:[#allocation2 + $0x48] sm:$0xff] }
 0x54d   :  { %2955 = vbcast.lane.b32.xlu0 %v5995_v30, 280  ;;  %3014 = vbcast.lane.b32.xlu1 %v6002_v40, 264  ;;  %v3148_v63 = vmul.f32 %v4017_v14, %v5971_v60  ;;  %v4018_v25 = vld [vmem:[#allocation2 + $0xe8] sm:$0xff]  ;;  %v4021_v60 = vld [vmem:[#allocation2 + $0xf8] sm:$0xff] }
 0x54e   :  { %v3291_v41 = vadd.f32 %v3290_v38, %v3159_v29  ;;  %v4019_v38 = vld [vmem:[#allocation2 + $0x50] sm:$0xff] }
 0x54f   :  { %v2720_v24 = vpop.permute.xlu0 %2719  ;;  %v2700_v10 = vpop.permute.xlu1 %2699  ;;  %v3275_v55 = vadd.f32 %v3274_v26, %v3148_v63  ;;  %v3149_v49 = vmul.f32 %v4019_v38, %v5989_v50  ;;  %v4023_v50 = vld [vmem:[#allocation2 + $0x100] sm:$0xff] }
 0x550   :  { %v3292_v2 = vadd.f32 %v3291_v41, %v3160_v32  ;;  %v3161_v22 = vmul.f32 %v4008_v1, %v2700_v10  ;;  %v3166_v57 = vmul.f32 %v4015_v46, %v2720_v24  ;;  %v4022_v10 = vld [vmem:[#allocation2 + $0x108] sm:$0xff] }
 0x551   :  { %3022 = vbcast.lane.b32.xlu0 %v6002_v40, 280  ;;  %3077 = vbcast.lane.b32.xlu1 %v6012_v45, 256  ;;  %v3276_v9 = vadd.f32 %v3275_v55, %v3149_v49  ;;  %v4034_v55 = vld [vmem:[#allocation2 + $0x140] sm:$0xff]  ;;  %v4035_v49 = vld [vmem:[#allocation2 + $0x78] sm:$0xff] }
 0x552   :  { %v3293_v12 = vadd.f32 %v3292_v2, %v3161_v22 }
 0x553   :  { %v2728_v43 = vpop.permute.xlu0 %2727  ;;  %v2708_v47 = vpop.permute.xlu1 %2707 }
 0x554   :  { %v3294_v48 = vadd.f32 %v3293_v12, %v3162_v20  ;;  %v3163_v19 = vmul.f32 %v4010_v28, %v2708_v47  ;;  %v3168_v17 = vmul.f32 %v4018_v25, %v2728_v43  ;;  %v3150_v20 = vmul.f32 %v4024_v15, %v5974_v21  ;;  %v4025_v43 = vld [vmem:[#allocation2 + $0x60] sm:$0xff] }
 0x555   :  { %3089 = vbcast.lane.b32.xlu0 %v6012_v45, 280  ;;  %3018 = vbcast.lane.b32.xlu1 %v6002_v40, 272  ;;  %v3151_v47 = vmul.f32 %v4025_v43, %v5997_v34  ;;  %v4040_v43 = vld [vmem:[#allocation2 + $0x168] sm:$0xff] }
 0x556   :  { %v3295_v3 = vadd.f32 %v3294_v48, %v3163_v19  ;;  %v3277_v58 = vadd.f32 %v3276_v9, %v3150_v20  ;;  %v4026_v19 = vld [vmem:[#allocation2 + $0x110] sm:$0xff]  ;;  %v4039_v20 = vld [vmem:[#allocation2 + $0x160] sm:$0xff] }
 0x557   :  { %v2736_v33 = vpop.permute.xlu0 %2735  ;;  %v2716_v13 = vpop.permute.xlu1 %2715 }
 0x558   :  { %v3296_v52 = vadd.f32 %v3295_v3, %v3164_v6  ;;  %v3165_v4 = vmul.f32 %v4014_v18, %v2716_v13  ;;  %v3170_v41 = vmul.f32 %v4021_v60, %v2736_v33  ;;  %v3278_v6 = vadd.f32 %v3277_v58, %v3151_v47  ;;  %v4029_v13 = vld [vmem:[#allocation2 + $0x68] sm:$0xff] }
 0x559   :  { %2963 = vbcast.lane.b32.xlu0 %v5995_v30, 296  ;;  %3085 = vbcast.lane.b32.xlu1 %v6012_v45, 272  ;;  %v3152_v34 = vmul.f32 %v4029_v13, %v5980_v0  ;;  %v4033_v0 = vld [vmem:[#allocation2 + $0x138] sm:$0xff]  ;;  %v4043_v13 = vld [vmem:[#allocation2 + $0x188] sm:$0xff] }
 0x55a   :  { %v3297_v62 = vadd.f32 %v3296_v52, %v3165_v4  ;;  %v4030_v52 = vld [vmem:[#allocation2 + $0x128] sm:$0xff] }
 0x55b   :  { %v2747_v53 = vpop.permute.xlu0 %2746  ;;  %v2724_v44 = vpop.permute.xlu1 %2723  ;;  %v3279_v46 = vadd.f32 %v3278_v6, %v3152_v34 }
 0x55c   :  { %v3298_v31 = vadd.f32 %v3297_v62, %v3166_v57  ;;  %v3167_v27 = vmul.f32 %v4016_v61, %v2724_v44  ;;  %v3172_v2 = vmul.f32 %v4022_v10, %v2747_v53  ;;  %v4031_v57 = vld [vmem:[#allocation2 + $0x70] sm:$0xff] }
 0x55d   :  { %3030 = vbcast.lane.b32.xlu0 %v6002_v40, 296  ;;  %2959 = vbcast.lane.b32.xlu1 %v5995_v30, 288  ;;  %v3153_v62 = vmul.f32 %v4031_v57, %v6004_v39  ;;  %v3154_v39 = vmul.f32 %v4035_v49, %v5987_v23  ;;  %v4038_v23 = vld [vmem:[#allocation2 + $0x158] sm:$0xff] }
 0x55e   :  { %v3299_v8 = vadd.f32 %v3298_v31, %v3167_v27  ;;  %v4032_v31 = vld [vmem:[#allocation2 + $0x130] sm:$0xff] }
 0x55f   :  { %v2755_v29 = vpop.permute.xlu0 %2754  ;;  %v2732_v59 = vpop.permute.xlu1 %2731  ;;  %v3280_v63 = vadd.f32 %v3279_v46, %v3153_v62 }
 0x560   :  { %v3300_v54 = vadd.f32 %v3299_v8, %v3168_v17  ;;  %v3169_v32 = vmul.f32 %v4020_v36, %v2732_v59  ;;  %v3174_v5 = vmul.f32 %v4027_v42, %v2755_v29  ;;  %v4036_v29 = vld [vmem:[#allocation2 + $0x148] sm:$0xff] }
 0x561   :  { %3097 = vbcast.lane.b32.xlu0 %v6012_v45, 296  ;;  %3026 = vbcast.lane.b32.xlu1 %v6002_v40, 288  ;;  %v3281_v36 = vadd.f32 %v3280_v63, %v3154_v39 }
 0x562   :  { %v3301_v51 = vadd.f32 %v3300_v54, %v3169_v32 }
 0x563   :  { %v2763_v37 = vpop.permute.xlu0 %2762  ;;  %v2743_v24 = vpop.permute.xlu1 %2742 }
 0x564   :  { %v6034_v1 = vadd.f32 %v3301_v51, %v3170_v41  ;;  %v3171_v22 = vmul.f32 %v4023_v50, %v2743_v24  ;;  %v3176_v18 = vmul.f32 %v4030_v52, %v2763_v37  ;;  %v4037_v51 = vld [vmem:[#allocation2 + $0x150] sm:$0xff] }
 0x565   :  { %2971 = vbcast.lane.b32.xlu0 %v5995_v30, 312  ;;  %3093 = vbcast.lane.b32.xlu1 %v6012_v45, 288 }
 0x566   :  { %v3309_v12 = vadd.f32 %v3172_v2, %v3171_v22  ;;  %v3303_v37 = vrot.slane %v6034_v1, 4  ;;  %v3282_v2 = vrot.slane %v3281_v36, 4 }
 0x567   :  { %v2771_v48 = vpop.permute.xlu0 %2770  ;;  %v2751_v28 = vpop.permute.xlu1 %2750 }
 0x568   :  { %v3173_v56 = vmul.f32 %v4026_v19, %v2751_v28  ;;  %v3178_v27 = vmul.f32 %v4033_v0, %v2771_v48  ;;  %v3304_v58 = vadd.f32 %v3303_v37, %v6034_v1  ;;  %v3283_v28 = vadd.f32 %v3282_v2, %v3281_v36 }
 0x569   :  { %3038 = vbcast.lane.b32.xlu0 %v6002_v40, 312  ;;  %2967 = vbcast.lane.b32.xlu1 %v5995_v30, 304 }
 0x56a   :  { %v3310_v21 = vadd.f32 %v3309_v12, %v3173_v56  ;;  %v3305_v6 = vrot.slane %v3304_v58, 2 }
 0x56b   :  { %v2779_v3 = vpop.permute.xlu0 %2778  ;;  %v2759_v16 = vpop.permute.xlu1 %2758 }
 0x56c   :  { %v3311_v7 = vadd.f32 %v3310_v21, %v3174_v5  ;;  %v3175_v33 = vmul.f32 %v4028_v11, %v2759_v16  ;;  %v3180_v59 = vmul.f32 %v4036_v29, %v2779_v3  ;;  %v4041_v5 = vld [vmem:[#allocation2 + $0x170] sm:$0xff]  ;;  %v4042_v3 = vld [vmem:[#allocation2 + $0x178] sm:$0xff]  ;;  %v3306_v46 = vadd.f32 %v3305_v6, %v3304_v58  ;;  %v4047_v29 = vld [vmem:[#allocation2 + $0x1a0] sm:$0xff] }
 0x56d   :  { %3105 = vbcast.lane.b32.xlu0 %v6012_v45, 312  ;;  %3034 = vbcast.lane.b32.xlu1 %v6002_v40, 304 }
 0x56e   :  { %v3312_v4 = vadd.f32 %v3311_v7, %v3175_v33  ;;  %v3284_v7 = vrot.slane %v3283_v28, 2 }
 0x56f   :  { %v2787_v26 = vpop.permute.xlu0 %2786  ;;  %v2767_v53 = vpop.permute.xlu1 %2766 }
 0x570   :  { %v3313_v44 = vadd.f32 %v3312_v4, %v3176_v18  ;;  %v3177_v61 = vmul.f32 %v4032_v31, %v2767_v53  ;;  %v3182_v24 = vmul.f32 %v4038_v23, %v2787_v26  ;;  %v4044_v18 = vld [vmem:[#allocation2 + $0x180] sm:$0xff]  ;;  %v3285_v26 = vadd.f32 %v3284_v7, %v3283_v28 }
 0x571   :  { %2979 = vbcast.lane.b32.xlu0 %v5995_v30, 328  ;;  %3101 = vbcast.lane.b32.xlu1 %v6012_v45, 304 }
 0x572   :  { %v3314_v14 = vadd.f32 %v3313_v44, %v3177_v61  ;;  %v4045_v61 = vld [vmem:[#allocation2 + $0x190] sm:$0xff] }
 0x573   :  { %v2795_v25 = vpop.permute.xlu0 %2794  ;;  %v2775_v17 = vpop.permute.xlu1 %2774 }
 0x574   :  { %v3315_v8 = vadd.f32 %v3314_v14, %v3178_v27  ;;  %v3179_v38 = vmul.f32 %v4034_v55, %v2775_v17  ;;  %v3184_v47 = vmul.f32 %v4040_v43, %v2795_v25  ;;  %v3307_v27 = vrot.slane %v3306_v46, 1  ;;  %v4046_v14 = vld [vmem:[#allocation2 + $0x198] sm:$0xff] }
 0x575   :  { %3046 = vbcast.lane.b32.xlu0 %v6002_v40, 328  ;;  %2975 = vbcast.lane.b32.xlu1 %v5995_v30, 320 }
 0x576   :  { %v3316_v54 = vadd.f32 %v3315_v8, %v3179_v38  ;;  %v3286_v8 = vrot.slane %v3285_v26, 1 }
 0x577   :  { %v2803_v32 = vpop.permute.xlu0 %2802  ;;  %v2783_v60 = vpop.permute.xlu1 %2782 }
 0x578   :  { %v3317_v41 = vadd.f32 %v3316_v54, %v3180_v59  ;;  %v3181_v9 = vmul.f32 %v4037_v51, %v2783_v60  ;;  %v3186_v1 = vmul.f32 %v4042_v3, %v2803_v32  ;;  %v3308_v54 = vadd.f32 %v3307_v27, %v3306_v46  ;;  %v4048_v32 = vld [vmem:[#allocation2 + $0x1a8] sm:$0xff]  ;;  %v4053_v3 = vld [vmem:[#allocation2 + $0x1d0] sm:$0xff] }
 0x579   :  { %3113 = vbcast.lane.b32.xlu0 %v6012_v45, 328  ;;  %3042 = vbcast.lane.b32.xlu1 %v6002_v40, 320  ;;  %v3287_v51 = vadd.f32 %v3286_v8, %v3285_v26 }
 0x57a   :  { %v3318_v10 = vadd.f32 %v3317_v41, %v3181_v9 }
 0x57b   :  { %v2814_v50 = vpop.permute.xlu0 %2813  ;;  %v2791_v22 = vpop.permute.xlu1 %2790 }
 0x57c   :  { %v3319_v15 = vadd.f32 %v3318_v10, %v3182_v24  ;;  %v3183_v12 = vmul.f32 %v4039_v20, %v2791_v22  ;;  %v3188_v34 = vmul.f32 %v4043_v13, %v2814_v50  ;;  %v4049_v10 = vld [vmem:[#allocation2 + $0x1b0] sm:$0xff]  ;;  %v3443_v50 = vsel %vm6470_vm9, %v3308_v54, %v3287_v51  ;;  %v4050_v22 = vld [vmem:[#allocation2 + $0x1b8] sm:$0xff] }
 0x57d   :  { %3050 = vbcast.lane.b32.xlu0 %v6002_v40, 336  ;;  %3109 = vbcast.lane.b32.xlu1 %v6012_v45, 320 }
 0x57e   :  { %v3320_v48 = vadd.f32 %v3319_v15, %v3183_v12 }
 0x57f   :  { %v2822_v19 = vpop.permute.xlu0 %2821  ;;  %v2799_v56 = vpop.permute.xlu1 %2798 }
 0x580   :  { %v3321_v42 = vadd.f32 %v3320_v48, %v3184_v47  ;;  %v3185_v21 = vmul.f32 %v4041_v5, %v2799_v56  ;;  %v3190_v63 = vmul.f32 %v4046_v14, %v2822_v19  ;;  %v4051_v48 = vld [vmem:[#allocation2 + $0x1c0] sm:$0xff]  ;;  %v4052_v19 = vld [vmem:[#allocation2 + $0x1c8] sm:$0xff] }
 0x581   :  { %3117 = vbcast.lane.b32.xlu0 %v6012_v45, 336  ;;  %2983 = vbcast.lane.b32.xlu1 %v5995_v30, 336 }
 0x582   :  { %v3322_v16 = vadd.f32 %v3321_v42, %v3185_v21 }
 0x583   :  { %v2830_v11 = vpop.permute.xlu0 %2829  ;;  %v2810_v33 = vpop.permute.xlu1 %2809 }
 0x584   :  { %v3323_v52 = vadd.f32 %v3322_v16, %v3186_v1  ;;  %v3187_v4 = vmul.f32 %v4044_v18, %v2810_v33  ;;  %v3192_v60 = vmul.f32 %v4048_v32, %v2830_v11  ;;  %v4054_v16 = vld [vmem:[#allocation2 + $0x1d8] sm:$0xff] }
 0x585   :  { %3054 = vbcast.lane.b32.xlu0 %v6002_v40, 344  ;;  %2920 = vbcast.lane.b32.xlu1 %v5966_v35, 344 }
 0x586   :  { %v3324_v57 = vrot.slane %v3323_v52, 4  ;;  %v3330_v62 = vadd.f32 %v3188_v34, %v3187_v4  ;;  %v4056_v4 = vld [vmem:[#allocation2 + $0x1e8] sm:$0xff] }
 0x587   :  { %v2838_v53 = vpop.permute.xlu0 %2837  ;;  %v2818_v44 = vpop.permute.xlu1 %2817 }
 0x588   :  { %v3325_v31 = vadd.f32 %v3324_v57, %v3323_v52  ;;  %v3189_v0 = vmul.f32 %v4045_v61, %v2818_v44  ;;  %v3194_v15 = vmul.f32 %v4050_v22, %v2838_v53  ;;  %v4055_v52 = vld [vmem:[#allocation2 + $0x1e0] sm:$0xff]  ;;  %v4057_v44 = vld [vmem:[#allocation2 + $0x1f0] sm:$0xff]  ;;  %v4058_v61 = vld [vmem:[#allocation2 + $0x1f8] sm:$0xff] }
 0x589   :  { %3121 = vbcast.lane.b32.xlu0 %v6012_v45, 344  ;;  %2987 = vbcast.lane.b32.xlu1 %v5995_v30, 344 }
 0x58a   :  { %v3326_v25 = vrot.slane %v3325_v31, 2  ;;  %v3331_v17 = vadd.f32 %v3330_v62, %v3189_v0 }
 0x58b   :  { %v2846_v55 = vpop.permute.xlu0 %2845  ;;  %v2826_v38 = vpop.permute.xlu1 %2825 }
 0x58c   :  { %v3327_v49 = vadd.f32 %v3326_v25, %v3325_v31  ;;  %v3332_v39 = vadd.f32 %v3331_v17, %v3190_v63  ;;  %v3191_v59 = vmul.f32 %v4047_v29, %v2826_v38  ;;  %v3196_v56 = vmul.f32 %v4052_v19, %v2846_v55  ;;  %v4059_v25 = vld [vmem:[#allocation2 + $0x208] sm:$0xff]  ;;  %v4060_v55 = vld [vmem:[#allocation2 + $0x200] sm:$0xff] }
 0x58d   :  { %3058 = vbcast.lane.b32.xlu0 %v6002_v40, 352  ;;  %2924 = vbcast.lane.b32.xlu1 %v5966_v35, 352 }
 0x58e   :  { %v3328_v36 = vrot.slane %v3327_v49, 1  ;;  %v3333_v41 = vadd.f32 %v3332_v39, %v3191_v59 }
 0x58f   :  { %v2854_v9 = vpop.permute.xlu0 %2853  ;;  %v2834_v37 = vpop.permute.xlu1 %2833 }
 0x590   :  { %v3329_v23 = vadd.f32 %v3328_v36, %v3327_v49  ;;  %v3334_v24 = vadd.f32 %v3333_v41, %v3192_v60  ;;  %v3193_v2 = vmul.f32 %v4049_v10, %v2834_v37  ;;  %v3198_v7 = vmul.f32 %v4054_v16, %v2854_v9  ;;  %v4061_v36 = vld [vmem:[#allocation2 + $0x210] sm:$0xff]  ;;  %v4062_v60 = vld [vmem:[#allocation2 + $0x218] sm:$0xff] }
 0x591   :  { %3125 = vbcast.lane.b32.xlu0 %v6012_v45, 352  ;;  %2991 = vbcast.lane.b32.xlu1 %v5995_v30, 352 }
 0x592   :  { %v3335_v20 = vadd.f32 %v3334_v24, %v3193_v2  ;;  %v6069_v12 = vsel %vm2573_vm0, %v3329_v23, %v3443_v50  ;;  %v4064_v50 = vld [vmem:[#allocation2 + $0x228] sm:$0xff] }
 0x593   :  { %v2862_v58 = vpop.permute.xlu0 %2861  ;;  %v2842_v43 = vpop.permute.xlu1 %2841 }
 0x594   :  { %v3336_v47 = vadd.f32 %v3335_v20, %v3194_v15  ;;  %v3195_v28 = vmul.f32 %v4051_v48, %v2842_v43  ;;  %v3200_v46 = vmul.f32 %v4056_v4, %v2862_v58 }
 0x595   :  { %3062 = vbcast.lane.b32.xlu0 %v6002_v40, 360  ;;  %2928 = vbcast.lane.b32.xlu1 %v5966_v35, 360 }
 0x596   :  { %v3337_v42 = vadd.f32 %v3336_v47, %v3195_v28  ;;  %v4065_v47 = vld [vmem:[#allocation2 + $0x230] sm:$0xff]  ;;  %v4066_v28 = vld [vmem:[#allocation2 + $0x238] sm:$0xff] }
 0x597   :  { %v2870_v5 = vpop.permute.xlu0 %2869  ;;  %v2850_v21 = vpop.permute.xlu1 %2849 }
 0x598   :  { %v3338_v6 = vadd.f32 %v3337_v42, %v3196_v56  ;;  %v3197_v1 = vmul.f32 %v4053_v3, %v2850_v21  ;;  %v3202_v0 = vmul.f32 %v4058_v61, %v2870_v5 }
 0x599   :  { %3129 = vbcast.lane.b32.xlu0 %v6012_v45, 360  ;;  %2995 = vbcast.lane.b32.xlu1 %v5995_v30, 360 }
 0x59a   :  { %v3339_v11 = vadd.f32 %v3338_v6, %v3197_v1  ;;  %v4067_v6 = vld [vmem:[#allocation2 + $0x240] sm:$0xff]  ;;  %v4068_v1 = vld [vmem:[#allocation2 + $0x248] sm:$0xff] }
 0x59b   :  { %v2881_v33 = vpop.permute.xlu0 %2880  ;;  %v2858_v13 = vpop.permute.xlu1 %2857 }
 0x59c   :  { %v3340_v34 = vadd.f32 %v3339_v11, %v3198_v7  ;;  %v3199_v18 = vmul.f32 %v4055_v52, %v2858_v13  ;;  %v3204_v17 = vmul.f32 %v4059_v25, %v2881_v33 }
 0x59d   :  { %3066 = vbcast.lane.b32.xlu0 %v6002_v40, 368  ;;  %2932 = vbcast.lane.b32.xlu1 %v5966_v35, 368 }
 0x59e   :  { %v3341_v57 = vadd.f32 %v3340_v34, %v3199_v18 }
 0x59f   :  { %v2889_v62 = vpop.permute.xlu0 %2888  ;;  %v2866_v26 = vpop.permute.xlu1 %2865 }
 0x5a0   :  { %v3342_v53 = vadd.f32 %v3341_v57, %v3200_v46  ;;  %v3201_v31 = vmul.f32 %v4057_v44, %v2866_v26  ;;  %v3206_v41 = vmul.f32 %v4062_v60, %v2889_v62 }
 0x5a1   :  { %3133 = vbcast.lane.b32.xlu0 %v6012_v45, 368  ;;  %2999 = vbcast.lane.b32.xlu1 %v5995_v30, 368 }
 0x5a2   :  { %v3343_v27 = vadd.f32 %v3342_v53, %v3201_v31 }
 0x5a3   :  { %v2897_v14 = vpop.permute.xlu0 %2896  ;;  %v2877_v63 = vpop.permute.xlu1 %2876 }
 0x5a4   :  { %v3344_v8 = vadd.f32 %v3343_v27, %v3202_v0  ;;  %v3203_v38 = vmul.f32 %v4060_v55, %v2877_v63  ;;  %v3208_v22 = vmul.f32 %v4064_v50, %v2897_v14 }
 0x5a5   :  { %3137 = vbcast.lane.b32.xlu0 %v6012_v45, 376  ;;  %2936 = vbcast.lane.b32.xlu1 %v5966_v35, 376  ;;  %v4063_v45 = vld [vmem:[#allocation2 + $0x220] sm:$0xff] }
 0x5a6   :  { %v3345_v49 = vrot.slane %v3344_v8, 4  ;;  %v3351_v39 = vadd.f32 %v3204_v17, %v3203_v38 }
 0x5a7   :  { %v2905_v29 = vpop.permute.xlu0 %2904  ;;  %v2885_v59 = vpop.permute.xlu1 %2884 }
 0x5a8   :  { %v3346_v54 = vadd.f32 %v3345_v49, %v3344_v8  ;;  %v3205_v32 = vmul.f32 %v4061_v36, %v2885_v59  ;;  %v3210_v19 = vmul.f32 %v4066_v28, %v2905_v29 }
 0x5a9   :  { %3003 = vbcast.lane.b32.xlu1 %v5995_v30, 376 }
 0x5aa   :  { %v3347_v51 = vrot.slane %v3346_v54, 2  ;;  %v3352_v9 = vadd.f32 %v3351_v39, %v3205_v32 }
 0x5ab   :  { %v2913_v37 = vpop.permute.xlu0 %2912  ;;  %v2893_v23 = vpop.permute.xlu1 %2892 }
 0x5ac   :  { %v3348_v24 = vadd.f32 %v3347_v51, %v3346_v54  ;;  %v3353_v10 = vadd.f32 %v3352_v9, %v3206_v41  ;;  %v3207_v2 = vmul.f32 %v4063_v45, %v2893_v23  ;;  %v3212_v16 = vmul.f32 %v4068_v1, %v2913_v37 }
 0x5ad   :  { %3070 = vbcast.lane.b32.xlu1 %v6002_v40, 376 }
 0x5ae   :  { %v3349_v35 = vrot.slane %v3348_v24, 1  ;;  %v3354_v15 = vadd.f32 %v3353_v10, %v3207_v2 }
 0x5af   :  { %v2944_v20 = vpop.permute.xlu0 %2943  ;;  %v2901_v58 = vpop.permute.xlu1 %2900 }
 0x5b0   :  { %v3350_v43 = vadd.f32 %v3349_v35, %v3348_v24  ;;  %v3355_v30 = vadd.f32 %v3354_v15, %v3208_v22  ;;  %v3209_v48 = vmul.f32 %v4065_v47, %v2901_v58 }
 0x5b2   :  { %v3356_v56 = vadd.f32 %v3355_v30, %v3209_v48  ;;  %v6085_v42 = vsel %vm2575_vm10, %v3350_v43, %v6069_v12 }
 0x5b3   :  { %v3011_v5 = vpop.permute.xlu0 %3010  ;;  %v2909_v21 = vpop.permute.xlu1 %2908 }
 0x5b4   :  { %v3357_v40 = vadd.f32 %v3356_v56, %v3210_v19  ;;  %v3211_v3 = vmul.f32 %v4067_v6, %v2909_v21 }
 0x5b6   :  { %v3358_v7 = vadd.f32 %v3357_v40, %v3211_v3 }
 0x5b7   :  { %4244 = shalt.err (!%p4241_p2)
}
 0x5b8   :  { %s4245_s26 = scalar_lea.hbm %s6184_s8, 128 }
 0x5b9   :  { %p4246_p3 = scmp.ne.s32.totalorder %s6184_s8, %s4245_s26  ;;  %p4249_p4 = scmp.lt.u32.totalorder %s4245_s26, %s6184_s8 }
 0x5bb   :  { %p4251_p5 = pnand %p4249_p4, %p4246_p3 }
 0x5bd   :  { %4254 = shalt.err (!%p4251_p5)
}
 0x5be   :  { %3471 = dma.vmem_to_hbm [thread:$0]  %s3469_s22, 128, %s6184_s8, [#allocation13]   ;;  %v2952_v12 = vpop.permute.xlu0 %2951  ;;  %v2917_v11 = vpop.permute.xlu1 %2916  ;;  %v3359_v33 = vadd.f32 %v3358_v7, %v3212_v16  ;;  %v4069_v13 = vld [vmem:[#allocation2 + $0x250] sm:$0xff]  ;;  %v4070_v46 = vld [vmem:[#allocation2 + $0x280] sm:$0xff]  ;;  %v4071_v62 = vld [vmem:[#allocation2 + $0x288] sm:$0xff] }
 0x5bf   :  { %v3213_v34 = vmul.f32 %v4069_v13, %v2917_v11  ;;  %v3219_v57 = vmul.f32 %v4070_v46, %v2944_v20  ;;  %v4072_v53 = vld [vmem:[#allocation2 + $0x290] sm:$0xff]  ;;  %v4073_v27 = vld [vmem:[#allocation2 + $0x300] sm:$0xff]  ;;  %v4074_v25 = vld [vmem:[#allocation2 + $0x308] sm:$0xff]  ;;  %s4299_s8 = smov [#allocation11]  }
 0x5c0   :  { %v3221_v44 = vmul.f32 %v4072_v53, %v2952_v12  ;;  %v3235_v14 = vmul.f32 %v4073_v27, %v3011_v5  ;;  %v4075_v49 = vld [vmem:[#allocation2 + $0x388] sm:$0xff]  ;;  %v4076_v29 = vld [vmem:[#allocation2 + $0x380] sm:$0xff]  ;;  %v4077_v28 = vld [vmem:[#allocation2 + $0x390] sm:$0xff]  ;;  %s3458_s10 = sshll.u32 %s4299_s8, 4  ;;  %s3459_s10 = int_to_ptr.vmem [resolvable:$true] %s3458_s10 }
 0x5c1   :  { %v6099_v52 = vadd.f32 %v3359_v33, %v3213_v34  ;;  %v4078_v3 = vld [vmem:[#allocation2 + $0x398] sm:$0xff]  ;;  %v4079_v16 = vld [vmem:[#allocation2 + $0x310] sm:$0xff]  ;;  %v4080_v12 = vld [vmem:[#allocation2 + $0x3a0] sm:$0xff]  ;;  %s4255_s11 = scalar_lea.vmem %s3459_s10, 128  ;;  %p4260_p7 = scmp.lt.s32.totalorder %s3459_s10, %s3459_s10 }
 0x5c2   :  { %v3082_v18 = vpop.permute.xlu0 %3081  ;;  %v2948_v4 = vpop.permute.xlu1 %2947  ;;  %v4081_v13 = vld [vmem:[#allocation2 + $0x298] sm:$0xff]  ;;  %v4085_v27 = vld [vmem:[#allocation2 + $0x320] sm:$0xff]  ;;  %p4256_p6 = scmp.ne.s32.totalorder %s3459_s10, %s4255_s11  ;;  %p4261_p8 = scmp.lt.s32.totalorder %s4255_s11, %s4255_s11 }
 0x5c3   :  { %v3220_v26 = vmul.f32 %v4071_v62, %v2948_v4  ;;  %v3252_v39 = vmul.f32 %v4075_v49, %v3082_v18  ;;  %v4082_v62 = vld [vmem:[#allocation2 + $0x2a0] sm:$0xff]  ;;  %v4083_v53 = vld [vmem:[#allocation2 + $0x318] sm:$0xff] }
 0x5c4   :  { %p4262_p9 = por %p4261_p8, %p4260_p7 }
 0x5c5   :  { %v3372_v31 = vadd.f32 %v3220_v26, %v3219_v57 }
 0x5c6   :  { %v2956_v61 = vpop.permute.xlu0 %2955  ;;  %v3015_v0 = vpop.permute.xlu1 %3014  ;;  %p4263_p10 = pnand %p4262_p9, %p4256_p6 }
 0x5c7   :  { %v6101_v63 = vadd.f32 %v3372_v31, %v3221_v44  ;;  %v3236_v17 = vmul.f32 %v4074_v25, %v3015_v0  ;;  %v3222_v34 = vmul.f32 %v4081_v13, %v2956_v61  ;;  %v4084_v31 = vld [vmem:[#allocation2 + $0x3a8] sm:$0xff]  ;;  %v4086_v25 = vld [vmem:[#allocation2 + $0x3b0] sm:$0xff]  ;;  %v4093_v13 = vld [vmem:[#allocation2 + $0x2b8] sm:$0xff] }
 0x5c9   :  { %v3393_v8 = vadd.f32 %v3236_v17, %v3235_v14 }
 0x5ca   :  { %v3023_v55 = vpop.permute.xlu0 %3022  ;;  %v3078_v38 = vpop.permute.xlu1 %3077 }
 0x5cb   :  { %v3251_v59 = vmul.f32 %v4076_v29, %v3078_v38  ;;  %v3238_v44 = vmul.f32 %v4083_v53, %v3023_v55  ;;  %v3374_v38 = vadd.f32 %v6101_v63, %v3222_v34 }
 0x5cd   :  { %v3414_v54 = vadd.f32 %v3252_v39, %v3251_v59 }
 0x5ce   :  { %v3090_v36 = vpop.permute.xlu0 %3089  ;;  %v3019_v32 = vpop.permute.xlu1 %3018 }
 0x5cf   :  { %v3254_v1 = vmul.f32 %v4078_v3, %v3090_v36  ;;  %v3237_v7 = vmul.f32 %v4079_v16, %v3019_v32  ;;  %v4087_v36 = vld [vmem:[#allocation2 + $0x2a8] sm:$0xff] }
 0x5d1   :  { %v3394_v46 = vadd.f32 %v3393_v8, %v3237_v7 }
 0x5d2   :  { %v2964_v60 = vpop.permute.xlu0 %2963  ;;  %v3086_v41 = vpop.permute.xlu1 %3085 }
 0x5d3   :  { %v3253_v19 = vmul.f32 %v4077_v28, %v3086_v41  ;;  %v3395_v39 = vadd.f32 %v3394_v46, %v3238_v44  ;;  %v3224_v32 = vmul.f32 %v4087_v36, %v2964_v60  ;;  %v4088_v41 = vld [vmem:[#allocation2 + $0x2b0] sm:$0xff]  ;;  %v4094_v46 = vld [vmem:[#allocation2 + $0x2c0] sm:$0xff] }
 0x5d4   :  { %v4091_v28 = vld [vmem:[#allocation2 + $0x330] sm:$0xff] }
 0x5d5   :  { %v3415_v21 = vadd.f32 %v3414_v54, %v3253_v19 }
 0x5d6   :  { %v6103_v51 = vpop.permute.xlu0 %3030  ;;  %v2960_v9 = vpop.permute.xlu1 %2959 }
 0x5d7   :  { %v3416_v33 = vadd.f32 %v3415_v21, %v3254_v1  ;;  %v3223_v26 = vmul.f32 %v4082_v62, %v2960_v9  ;;  %v4092_v21 = vld [vmem:[#allocation2 + $0x3c0] sm:$0xff] }
 0x5d8   :  { %v4097_v62 = vld [vmem:[#allocation2 + $0x340] sm:$0xff] }
 0x5d9   :  { %v3375_v59 = vadd.f32 %v3374_v38, %v3223_v26 }
 0x5da   :  { %v3098_v37 = vpop.permute.xlu0 %3097  ;;  %v3027_v23 = vpop.permute.xlu1 %3026 }
 0x5db   :  { %v3256_v0 = vmul.f32 %v4084_v31, %v3098_v37  ;;  %v3239_v14 = vmul.f32 %v4085_v27, %v3027_v23  ;;  %v4089_v23 = vld [vmem:[#allocation2 + $0x328] sm:$0xff]  ;;  %v3376_v1 = vadd.f32 %v3375_v59, %v3224_v32  ;;  %v4098_v27 = vld [vmem:[#allocation2 + $0x3d0] sm:$0xff] }
 0x5dd   :  { %v3396_v8 = vadd.f32 %v3395_v39, %v3239_v14 }
 0x5de   :  { %v6105_v24 = vpop.permute.xlu0 %2971  ;;  %v3094_v10 = vpop.permute.xlu1 %3093 }
 0x5df   :  { %v3255_v11 = vmul.f32 %v4080_v12, %v3094_v10  ;;  %v3240_v10 = vmul.f32 %v4089_v23, %v6103_v51  ;;  %v3226_v34 = vmul.f32 %v4093_v13, %v6105_v24  ;;  %v4105_v23 = vld [vmem:[#allocation2 + $0x3e0] sm:$0xff] }
 0x5e1   :  { %v3417_v57 = vadd.f32 %v3416_v33, %v3255_v11  ;;  %v3397_v16 = vadd.f32 %v3396_v8, %v3240_v10  ;;  %v4103_v8 = vld [vmem:[#allocation2 + $0x260] sm:$0xff] }
 0x5e2   :  { %v6107_v45 = vpop.permute.xlu0 %3038  ;;  %v2968_v2 = vpop.permute.xlu1 %2967 }
 0x5e3   :  { %v3418_v29 = vadd.f32 %v3417_v57, %v3256_v0  ;;  %v3225_v55 = vmul.f32 %v4088_v41, %v2968_v2  ;;  %v4096_v57 = vld [vmem:[#allocation2 + $0x3c8] sm:$0xff] }
 0x5e5   :  { %v3377_v12 = vadd.f32 %v3376_v1, %v3225_v55 }
 0x5e6   :  { %v3106_v35 = vpop.permute.xlu0 %3105  ;;  %v3035_v50 = vpop.permute.xlu1 %3034 }
 0x5e7   :  { %v3241_v19 = vmul.f32 %v4091_v28, %v3035_v50  ;;  %v3378_v53 = vadd.f32 %v3377_v12, %v3226_v34  ;;  %v4111_v12 = vld [vmem:[#allocation2 + $0x270] sm:$0xff] }
 0x5e9   :  { %v3398_v2 = vadd.f32 %v3397_v16, %v3241_v19  ;;  %v4108_v19 = vld [vmem:[#allocation2 + $0x350] sm:$0xff] }
 0x5ea   :  { %v6109_v22 = vpop.permute.xlu0 %2979  ;;  %v3102_v15 = vpop.permute.xlu1 %3101 }
 0x5eb   :  { %v3257_v17 = vmul.f32 %v4086_v25, %v3102_v15  ;;  %v4090_v15 = vld [vmem:[#allocation2 + $0x3b8] sm:$0xff] }
 0x5ec   :  { %v3258_v63 = vmul.f32 %v4090_v15, %v3106_v35  ;;  %v4095_v35 = vld [vmem:[#allocation2 + $0x338] sm:$0xff] }
 0x5ed   :  { %v3419_v54 = vadd.f32 %v3418_v29, %v3257_v17  ;;  %v3242_v50 = vmul.f32 %v4095_v35, %v6107_v45  ;;  %v4099_v17 = vld [vmem:[#allocation2 + $0x258] sm:$0xff] }
 0x5ee   :  { %v6111_v20 = vpop.permute.xlu0 %3046  ;;  %v6113_v58 = vpop.permute.xlu1 %2975  ;;  %v4100_v45 = vld [vmem:[#allocation2 + $0x3d8] sm:$0xff] }
 0x5ef   :  { %v3420_v7 = vadd.f32 %v3419_v54, %v3258_v63  ;;  %v3227_v51 = vmul.f32 %v4094_v46, %v6113_v58  ;;  %v3399_v0 = vadd.f32 %v3398_v2, %v3242_v50  ;;  %v4114_v50 = vld [vmem:[#allocation2 + $0x2e8] sm:$0xff] }
 0x5f1   :  { %v3379_v25 = vadd.f32 %v3378_v53, %v3227_v51 }
 0x5f2   :  { %v6115_v43 = vpop.permute.xlu0 %3113  ;;  %v6117_v30 = vpop.permute.xlu1 %3042 }
 0x5f3   :  { %v3243_v26 = vmul.f32 %v4097_v62, %v6117_v30  ;;  %v4102_v30 = vld [vmem:[#allocation2 + $0x2d0] sm:$0xff]  ;;  %v4115_v62 = vld [vmem:[#allocation2 + $0x360] sm:$0xff] }
 0x5f5   :  { %v3400_v38 = vadd.f32 %v3399_v0, %v3243_v26 }
 0x5f6   :  { %v6119_v47 = vpop.permute.xlu0 %3050  ;;  %v3110_v48 = vpop.permute.xlu1 %3109 }
 0x5f7   :  { %v3259_v3 = vmul.f32 %v4092_v21, %v3110_v48  ;;  %v3260_v48 = vmul.f32 %v4096_v57, %v6115_v43  ;;  %v4101_v43 = vld [vmem:[#allocation2 + $0x2c8] sm:$0xff] }
 0x5f8   :  { %v3228_v29 = vmul.f32 %v4101_v43, %v6109_v22  ;;  %v4107_v22 = vld [vmem:[#allocation2 + $0x268] sm:$0xff] }
 0x5f9   :  { %v3421_v33 = vadd.f32 %v3420_v7, %v3259_v3  ;;  %v4109_v3 = vld [vmem:[#allocation2 + $0x3e8] sm:$0xff]  ;;  %v4110_v7 = vld [vmem:[#allocation2 + $0x2e0] sm:$0xff] }
 0x5fa   :  { %v6121_v56 = vpop.permute.xlu0 %3117  ;;  %v6123_v5 = vpop.permute.xlu1 %2983  ;;  %v3380_v10 = vadd.f32 %v3379_v25, %v3228_v29  ;;  %v4117_v25 = vld [vmem:[#allocation2 + $0x3f8] sm:$0xff] }
 0x5fb   :  { %v3261_v14 = vmul.f32 %v4098_v27, %v6121_v56  ;;  %v3422_v24 = vadd.f32 %v3421_v33, %v3260_v48  ;;  %v3229_v59 = vmul.f32 %v4102_v30, %v6123_v5  ;;  %v4104_v56 = vld [vmem:[#allocation2 + $0x348] sm:$0xff]  ;;  %v3245_v5 = vmul.f32 %v4108_v19, %v6119_v47 }
 0x5fc   :  { %v3244_v41 = vmul.f32 %v4104_v56, %v6111_v20 }
 0x5fd   :  { %v3423_v55 = vadd.f32 %v3422_v24, %v3261_v14  ;;  %v3381_v16 = vadd.f32 %v3380_v10, %v3229_v59  ;;  %v4116_v14 = vld [vmem:[#allocation2 + $0x2f0] sm:$0xff] }
 0x5fe   :  { %v6125_v40 = vpop.permute.xlu0 %3054  ;;  %v6127_v6 = vpop.permute.xlu1 %2920 }
 0x5ff   :  { %v3214_v58 = vmul.f32 %v4099_v17, %v6127_v6 }
 0x601   :  { %v3361_v15 = vadd.f32 %v6099_v52, %v3214_v58  ;;  %v4118_v58 = vld [vmem:[#allocation2 + $0x278] sm:$0xff] }
 0x602   :  { %v6129_v18 = vpop.permute.xlu0 %3121  ;;  %v6131_v4 = vpop.permute.xlu1 %2987 }
 0x603   :  { %v3262_v39 = vmul.f32 %v4100_v45, %v6129_v18  ;;  %v4106_v18 = vld [vmem:[#allocation2 + $0x2d8] sm:$0xff]  ;;  %v4119_v45 = vld [vmem:[#allocation2 + $0x368] sm:$0xff] }
 0x604   :  { %v3230_v63 = vmul.f32 %v4106_v18, %v6131_v4  ;;  %v4112_v4 = vld [vmem:[#allocation2 + $0x3f0] sm:$0xff] }
 0x605   :  { %v3424_v21 = vadd.f32 %v3423_v55, %v3262_v39 }
 0x606   :  { %v6134_v49 = vpop.permute.xlu0 %3058  ;;  %v2925_v61 = vpop.permute.xlu1 %2924  ;;  %v3382_v47 = vadd.f32 %v3381_v16, %v3230_v63 }
 0x607   :  { %v3215_v54 = vmul.f32 %v4103_v8, %v2925_v61  ;;  %v3401_v61 = vadd.f32 %v3400_v38, %v3244_v41  ;;  %v3247_v26 = vmul.f32 %v4115_v62, %v6134_v49  ;;  %v4120_v49 = vld [vmem:[#allocation2 + $0x370] sm:$0xff]  ;;  %v4121_v41 = vld [vmem:[#allocation2 + $0x2f8] sm:$0xff] }
 0x609   :  { %v3362_v20 = vadd.f32 %v3361_v15, %v3215_v54  ;;  %v3402_v48 = vadd.f32 %v3401_v61, %v3245_v5 }
 0x60a   :  { %v3126_v9 = vpop.permute.xlu0 %3125  ;;  %v6136_v37 = vpop.permute.xlu1 %2991 }
 0x60b   :  { %v3263_v6 = vmul.f32 %v4105_v23, %v3126_v9  ;;  %v3231_v9 = vmul.f32 %v4110_v7, %v6136_v37 }
 0x60d   :  { %v3425_v13 = vadd.f32 %v3424_v21, %v3263_v6  ;;  %v3383_v37 = vadd.f32 %v3382_v47, %v3231_v9 }
 0x60e   :  { %v6139_v11 = vpop.permute.xlu0 %3062  ;;  %v2929_v60 = vpop.permute.xlu1 %2928 }
 0x60f   :  { %v3216_v28 = vmul.f32 %v4107_v22, %v2929_v60  ;;  %v4113_v60 = vld [vmem:[#allocation2 + $0x358] sm:$0xff]  ;;  %v3248_v39 = vmul.f32 %v4119_v45, %v6139_v11 }
 0x610   :  { %v3246_v46 = vmul.f32 %v4113_v60, %v6125_v40 }
 0x611   :  { %v3363_v51 = vadd.f32 %v3362_v20, %v3216_v28  ;;  %v4122_v28 = vld [vmem:[#allocation2 + $0x378] sm:$0xff] }
 0x612   :  { %v3130_v44 = vpop.permute.xlu0 %3129  ;;  %v2996_v31 = vpop.permute.xlu1 %2995  ;;  %v3403_v38 = vadd.f32 %v3402_v48, %v3246_v46 }
 0x613   :  { %v3264_v1 = vmul.f32 %v4109_v3, %v3130_v44  ;;  %v3232_v57 = vmul.f32 %v4114_v50, %v2996_v31 }
 0x614   :  { %v3404_v30 = vadd.f32 %v3403_v38, %v3247_v26 }
 0x615   :  { %v3426_v35 = vadd.f32 %v3425_v13, %v3264_v1  ;;  %v3384_v31 = vadd.f32 %v3383_v37, %v3232_v57 }
 0x616   :  { %v3067_v36 = vpop.permute.xlu0 %3066  ;;  %v2933_v32 = vpop.permute.xlu1 %2932  ;;  %v3405_v23 = vadd.f32 %v3404_v30, %v3248_v39 }
 0x617   :  { %v3217_v2 = vmul.f32 %v4111_v12, %v2933_v32  ;;  %v3249_v59 = vmul.f32 %v4120_v49, %v3067_v36 }
 0x619   :  { %v3364_v53 = vadd.f32 %v3363_v51, %v3217_v2  ;;  %v3406_v63 = vadd.f32 %v3405_v23, %v3249_v59 }
 0x61a   :  { %v3134_v52 = vpop.permute.xlu0 %3133  ;;  %v3000_v33 = vpop.permute.xlu1 %2999 }
 0x61b   :  { %v3265_v34 = vmul.f32 %v4112_v4, %v3134_v52  ;;  %v3233_v24 = vmul.f32 %v4116_v14, %v3000_v33 }
 0x61d   :  { %v3427_v27 = vadd.f32 %v3426_v35, %v3265_v34  ;;  %v3385_v54 = vadd.f32 %v3384_v31, %v3233_v24 }
 0x61e   :  { %v3138_v44 = vpop.permute.xlu0 %3137  ;;  %v2937_v0 = vpop.permute.xlu1 %2936 }
 0x61f   :  { %v3266_v17 = vmul.f32 %v4117_v25, %v3138_v44  ;;  %v3218_v40 = vmul.f32 %v4118_v58, %v2937_v0 }
 0x621   :  { %v3428_v43 = vadd.f32 %v3427_v27, %v3266_v17  ;;  %v3365_v29 = vadd.f32 %v3364_v53, %v3218_v40 }
 0x622   :  { %v3004_v8 = vpop.permute.xlu1 %3003 }
 0x623   :  { %v3429_v32 = vrot.slane %v3428_v43, 4  ;;  %v3366_v56 = vrot.slane %v3365_v29, 4  ;;  %v3234_v55 = vmul.f32 %v4121_v41, %v3004_v8 }
 0x625   :  { %v3367_v6 = vadd.f32 %v3366_v56, %v3365_v29  ;;  %v3386_v10 = vadd.f32 %v3385_v54, %v3234_v55  ;;  %v3430_v15 = vadd.f32 %v3429_v32, %v3428_v43 }
 0x626   :  { %v3071_v18 = vpop.permute.xlu1 %3070 }
 0x627   :  { %v3368_v22 = vrot.slane %v3367_v6, 2  ;;  %v3387_v11 = vrot.slane %v3386_v10, 4  ;;  %v3250_v19 = vmul.f32 %v4122_v28, %v3071_v18  ;;  %v3431_v36 = vrot.slane %v3430_v15, 2 }
 0x629   :  { %v3369_v5 = vadd.f32 %v3368_v22, %v3367_v6  ;;  %v3388_v61 = vadd.f32 %v3387_v11, %v3386_v10  ;;  %v3407_v21 = vadd.f32 %v3406_v63, %v3250_v19  ;;  %v3432_v12 = vadd.f32 %v3431_v36, %v3430_v15 }
 0x62b   :  { %v3370_v3 = vrot.slane %v3369_v5, 1  ;;  %v3389_v1 = vrot.slane %v3388_v61, 2  ;;  %v3408_v16 = vrot.slane %v3407_v21, 4  ;;  %v3433_v34 = vrot.slane %v3432_v12, 1 }
 0x62d   :  { %v3371_v20 = vadd.f32 %v3370_v3, %v3369_v5  ;;  %v3390_v7 = vadd.f32 %v3389_v1, %v3388_v61  ;;  %v3409_v9 = vadd.f32 %v3408_v16, %v3407_v21  ;;  %v3434_v51 = vadd.f32 %v3433_v34, %v3432_v12 }
 0x62f   :  { %v3391_v2 = vrot.slane %v3390_v7, 1  ;;  %v3410_v52 = vrot.slane %v3409_v9, 2  ;;  %v3446_v33 = vsel %vm2577_vm1, %v3371_v20, %v6085_v42 }
 0x631   :  { %v3392_v13 = vadd.f32 %v3391_v2, %v3390_v7  ;;  %v3411_v4 = vadd.f32 %v3410_v52, %v3409_v9 }
 0x633   :  { %v3412_v60 = vrot.slane %v3411_v4, 1  ;;  %v3447_v46 = vsel %vm2579_vm2, %v3392_v13, %v3446_v33 }
 0x635   :  { %v3413_v47 = vadd.f32 %v3412_v60, %v3411_v4 }
 0x637   :  { %v3448_v35 = vsel %vm2581_vm5, %v3413_v47, %v3447_v46 }
 0x638   :  { %v3449_v50 = vsel %vm2583_vm6, %v3434_v51, %v3448_v35 }
 0x639   :  { %3451 = vst [vmem:[#allocation11] sm:$0xff] %v3449_v50 }
 0x63a   :  { %4266 = shalt.err (!%p4263_p10)
}
 0x63b   :  { %s4267_s14 = scalar_lea.hbm %s6183_s7, 128 }
 0x63c   :  { %p4268_p11 = scmp.ne.s32.totalorder %s6183_s7, %s4267_s14  ;;  %p4271_p12 = scmp.lt.u32.totalorder %s4267_s14, %s6183_s7 }
 0x63e   :  { %p4273_p13 = pnand %p4271_p12, %p4268_p11 }
 0x640   :  { %4276 = shalt.err (!%p4273_p13)
}
 0x641   :  { %3461 = dma.vmem_to_hbm [thread:$0]  %s3459_s10, 128, %s6183_s7, [#allocation4]  }
 0x642   :  { %4283 = dma.done.wait [#allocation4], 128  }
 0x643   :  { %4284 = vsyncadd [#allocation4], 4294967168 }
 0x644   :  { %4285 = dma.done.wait [#allocation13], 128  }
 0x645   :  { %4286 = vsyncadd [#allocation13], 4294967168 }
 0x646   :  { %3478 = vsyncpa [#allocation3], 1 }
 0x647   :  { %3479 = vsyncpa [#allocation6], 1 }
 0x648   :  { %3480 = vsyncpa [#allocation9], 1 }
 0x649   :  { %3481 = vsyncpa [#allocation4], 1 }
 0x64a   :  { %3482 = vsyncpa [#allocation13], 1 }

</bundles_post_ra>
